<compile_context>
chip_gen: v7x
topology: tpu7x:2x2x1
jax: 0.10.0
libtpu: 0.0.40
codegen_flags: <defaults>
</compile_context>

<pallas_src>
import functools

import jax
import jax.numpy as jnp
from jax.experimental import pallas as pl
from jax.experimental.pallas import tpu as pltpu


def make_divisible(v, divisor=8, min_value=None):
    if min_value is None:
        min_value = divisor
    new_v = max(min_value, int(v + divisor / 2) // divisor * divisor)
    if new_v < 0.9 * v:
        new_v += divisor
    return new_v


def _is_pow2(v):
    return v > 0 and (v & (v - 1)) == 0


# ---------------------------------------------------------------------------
# Fused InvertedResidual kernel: one grid step = Nb images, channel-major
# (C, Nb*HWp) layout so every matmul output and the final store is lane-dense.
# ---------------------------------------------------------------------------
def _inverted_residual_kernel(
    x_ref,      # (Cin,  L)    VMEM, L = Nb * HWp
    w1_ref,     # (Cmid, Cin)  VMEM  pointwise expand
    w2_ref,     # (Cout, Cmid) VMEM  pointwise linear
    pk_ref,     # (P, 16)      VMEM  packed params: col0=b1, cols1..9=wd, col10=bd, col11=b2
    scale_ref,  # (1,)         SMEM  frozen residual scale
    o_ref,      # (Cout, L)    VMEM
    *,
    H, W, HWp, Cmid, Cout, has_residual, mxu_bf16,
):
    L = x_ref.shape[-1]
    x = x_ref[...]                                        # (Cin, L), f32

    pk = pk_ref[...]                                      # single hoisted load
    b1 = pk[:Cmid, 0:1]
    wd = pk[:Cmid, 1:10]
    bd = pk[:Cmid, 10:11]
    b2 = pk[:Cout, 11:12]

    # ---- conv_pw: 1x1 expand (bf16 MXU inputs, f32 accumulation) ----
    if mxu_bf16:
        h = jnp.dot(w1_ref[...].astype(jnp.bfloat16), x.astype(jnp.bfloat16),
                    preferred_element_type=jnp.float32)
    else:
        h = jnp.dot(w1_ref[...], x, preferred_element_type=jnp.float32)
    h = jnp.maximum(h + b1, 0.0)                          # act1, (Cmid, L), f32

    # ---- conv_dw: depthwise 3x3, padding=1, stride=1 ----
    # Spatial shifts are static rolls along the flattened lane axis (XLU slot);
    # per-image edge masks replace explicit zero padding and also neutralize any
    # bleed across image / HW-pad boundaries (valid outputs never read pad lanes).
    flat = jax.lax.broadcasted_iota(jnp.int32, (1, L), 1)
    pos = (flat & (HWp - 1)) if _is_pow2(HWp) else (flat % HWp)   # index within image
    col = (pos & (W - 1)) if _is_pow2(W) else (pos % W)
    # Hoisted boundary conditions (keep redundant compares out of the tap loop).
    row_ok = {-1: pos >= W, 0: None, 1: pos < (H - 1) * W}
    col_ok = {-1: col >= 1, 0: None, 1: col <= W - 2}

    acc = jnp.zeros((Cmid, L), jnp.float32)
    # TODO(synk): run h/shifted in bf16 with an f32 accumulator on v6e/v7x
    # (bf16 VALU); kept f32 here so the same kernel stays safe on v5e.
    for ky in (-1, 0, 1):
        for kx in (-1, 0, 1):
            ti = (ky + 1) * 3 + (kx + 1)
            tap = wd[:, ti:ti + 1]                        # (Cmid, 1)
            d = ky * W + kx                               # flat neighbour offset
            if d == 0:
                acc = acc + tap * h
                continue
            # pltpu.roll follows the jnp.roll convention (result[i] = x[i - shift]),
            # so shifting by (-d) gives shifted[p] = h[p + d].
            shifted = pltpu.roll(h, (-d) % L, axis=1)
            mask = row_ok[ky]
            if col_ok[kx] is not None:
                mask = col_ok[kx] if mask is None else jnp.logical_and(mask, col_ok[kx])
            acc = acc + tap * jnp.where(mask, shifted, 0.0)
    acc = jnp.maximum(acc + bd, 0.0)                      # act2, (Cmid, L)

    # ---- conv_pwl: 1x1 project (linear) ----
    if mxu_bf16:
        out = jnp.dot(w2_ref[...].astype(jnp.bfloat16), acc.astype(jnp.bfloat16),
                      preferred_element_type=jnp.float32)
    else:
        out = jnp.dot(w2_ref[...], acc, preferred_element_type=jnp.float32)
    out = out + b2                                        # (Cout, L)

    # ---- optional residual (scale is a frozen scalar parameter, default 1.0) ----
    if has_residual:
        out = out + scale_ref[0] * x

    o_ref[...] = jnp.maximum(out, 0.0)                    # act3, lane-dense store


def _pick_images_per_block(n, per_image_vmem_bytes, vmem_budget_bytes=12 * 2**20):
    """Largest convenient image count per grid step that (a) keeps >= 2 grid
    steps when n >= 2 (so both v7x TensorCores get work) and (b) stays under a
    conservative VMEM budget.  Must divide the batch."""
    cap = max(1, vmem_budget_bytes // max(per_image_vmem_bytes, 1))
    nb = min(cap, n // 2) if n >= 2 else 1
    nb = max(nb, 1)
    while nb > 1 and n % nb:
        nb -= 1
    return nb


def inverted_residual_pallas(x_nchw, params, *, has_residual,
                             images_per_block=None, mxu_bf16=True):
    N, Cin, H, W = x_nchw.shape
    Cmid = params["w1"].shape[0]
    Cout = params["w2"].shape[0]
    if has_residual:
        assert Cin == Cout, "residual path requires in_chs == out_chs and stride == 1"

    HW = H * W
    HWp = ((HW + 127) // 128) * 128       # lane axis per image: multiple of 128
    P = max(Cmid, Cout)

    # Rough per-image VMEM footprint (live f32 temporaries + in/out blocks).
    per_image_vmem = (8 * Cmid + 2 * Cin + 2 * Cout) * HWp * 4
    Nb = _pick_images_per_block(N, per_image_vmem) if images_per_block is None \
        else images_per_block
    assert N % Nb == 0, "images_per_block must divide the batch"
    G = N // Nb
    L = Nb * HWp

    # Channel-major slab with images folded into the lane axis: (Cin, N*HWp).
    x3 = x_nchw.reshape(N, Cin, HW)
    if HWp != HW:
        x3 = jnp.pad(x3, ((0, 0), (0, 0), (0, HWp - HW)))
    x_cm = x3.transpose(1, 0, 2).reshape(Cin, N * HWp)

    # Pack the tiny per-channel params into one (P, 16) tensor -> one DMA.
    pk = jnp.zeros((P, 16), jnp.float32)
    pk = pk.at[:Cmid, 0:1].set(params["b1"])
    pk = pk.at[:Cmid, 1:10].set(params["wd"])
    pk = pk.at[:Cmid, 10:11].set(params["bd"])
    pk = pk.at[:Cout, 11:12].set(params["b2"])

    kernel = functools.partial(
        _inverted_residual_kernel,
        H=H, W=W, HWp=HWp, Cmid=Cmid, Cout=Cout,
        has_residual=has_residual, mxu_bf16=mxu_bf16,
    )

    grid_spec = pltpu.PrefetchScalarGridSpec(
        num_scalar_prefetch=0,
        grid=(G,),
        in_specs=[
            pl.BlockSpec((Cin, L), lambda g: (0, g)),
            pl.BlockSpec((Cmid, Cin), lambda g: (0, 0)),
            pl.BlockSpec((Cout, Cmid), lambda g: (0, 0)),
            pl.BlockSpec((P, 16), lambda g: (0, 0)),
            pl.BlockSpec(memory_space=pltpu.MemorySpace.SMEM),   # scale scalar
        ],
        out_specs=pl.BlockSpec((Cout, L), lambda g: (0, g)),
    )

    flops = 2 * N * HW * (Cmid * Cin + 9 * Cmid + Cout * Cmid)
    bytes_accessed = 4 * (N * HWp * (Cin + Cout) + Cmid * Cin + Cout * Cmid + P * 16 + 1)
    vmem_est = (2 * 4 * L * (Cin + Cout)                     # double-buffered in/out
                + 2 * 4 * (Cmid * Cin + Cout * Cmid + P * 16)
                + 8 * Cmid * L * 4)                          # live f32 temporaries
    vmem_limit = int(min(48 * 2**20, max(32 * 2**20, 2 * vmem_est)))

    out_cm = pl.pallas_call(
        kernel,
        out_shape=jax.ShapeDtypeStruct((Cout, N * HWp), jnp.float32),
        grid_spec=grid_spec,
        compiler_params=pltpu.CompilerParams(
            dimension_semantics=("parallel",),
            vmem_limit_bytes=vmem_limit,
        ),
        cost_estimate=pl.CostEstimate(
            flops=flops, transcendentals=0, bytes_accessed=bytes_accessed),
    )(x_cm, params["w1"], params["w2"], pk, params["scale"])

    out = out_cm.reshape(Cout, N, HWp)[:, :, :HW]
    return out.transpose(1, 0, 2).reshape(N, Cout, H, W)


def init_params(key, in_chs, out_chs, exp_ratio):
    """Deterministic init mimicking PyTorch Conv2d default (uniform +/- 1/sqrt(fan_in))."""
    mid_chs = make_divisible(in_chs * exp_ratio)
    ks = jax.random.split(key, 6)

    def u(k, shape, fan_in):
        bound = 1.0 / jnp.sqrt(float(fan_in))
        return jax.random.uniform(k, shape, jnp.float32, -bound, bound)

    # conv_pw: PyTorch weight (Cmid, Cin, 1, 1) -> (Cmid, Cin)
    w1 = u(ks[0], (mid_chs, in_chs), in_chs)
    b1 = u(ks[1], (mid_chs, 1), in_chs)
    # conv_dw: PyTorch weight (Cmid, 1, 3, 3) -> (Cmid, 9)
    wd = u(ks[2], (mid_chs, 9), 9)
    bd = u(ks[3], (mid_chs, 1), 9)
    # conv_pwl: PyTorch weight (Cout, Cmid, 1, 1) -> (Cout, Cmid)
    w2 = u(ks[4], (out_chs, mid_chs), mid_chs)
    b2 = u(ks[5], (out_chs, 1), mid_chs)
    scale = jnp.ones((1,), jnp.float32)  # Scale() with scale=1, frozen
    return dict(w1=w1, b1=b1, wd=wd, bd=bd, w2=w2, b2=b2, scale=scale)


def reference_jax(x_nchw, params, *, has_residual, mxu_bf16=True):
    """Plain-JAX reference of the same math (NCHW). mxu_bf16=True mirrors the
    kernel's bf16 MXU inputs (f32 accumulation) for a tight comparison."""
    N, C, H, W = x_nchw.shape
    w1, w2 = params["w1"], params["w2"]
    if mxu_bf16:
        h = jnp.einsum("mc,nchw->nmhw", w1.astype(jnp.bfloat16),
                       x_nchw.astype(jnp.bfloat16),
                       preferred_element_type=jnp.float32)
    else:
        h = jnp.einsum("mc,nchw->nmhw", w1, x_nchw)
    h = jnp.maximum(h + params["b1"].reshape(1, -1, 1, 1), 0.0)
    hp = jnp.pad(h, ((0, 0), (0, 0), (1, 1), (1, 1)))
    acc = jnp.zeros_like(h)
    for ky in range(3):
        for kx in range(3):
            tap = params["wd"][:, ky * 3 + kx].reshape(1, -1, 1, 1)
            acc = acc + hp[:, :, ky:ky + H, kx:kx + W] * tap
    acc = jnp.maximum(acc + params["bd"].reshape(1, -1, 1, 1), 0.0)
    if mxu_bf16:
        out = jnp.einsum("om,nmhw->nohw", w2.astype(jnp.bfloat16),
                         acc.astype(jnp.bfloat16),
                         preferred_element_type=jnp.float32)
    else:
        out = jnp.einsum("om,nmhw->nohw", w2, acc)
    out = out + params["b2"].reshape(1, -1, 1, 1)
    if has_residual:
        out = out + params["scale"][0] * x_nchw
    return jnp.maximum(out, 0.0)


if __name__ == "__main__":
    # Config consistent with InvertedResidual(in_chs=8, out_chs=8, stride=1,
    # exp_ratio=6.0, slice=1): mid_chs = make_divisible(48) = 48, has_residual=True.
    # N=4 exercises the lane-folded batching (2 images per grid step, grid=(2,)).
    N, C, H, W = 4, 8, 16, 16
    in_chs = out_chs = C
    exp_ratio = 6.0
    stride = 1
    has_residual = (in_chs == out_chs) and (stride == 1)

    key = jax.random.PRNGKey(0)
    k_x, k_p = jax.random.split(key)
    x_nchw = jax.random.normal(k_x, (N, C, H, W), jnp.float32)  # PyTorch NCHW input
    params = init_params(k_p, in_chs, out_chs, exp_ratio)

    out_nchw = inverted_residual_pallas(x_nchw, params, has_residual=has_residual)
    out_nchw = jax.block_until_ready(out_nchw)
    assert out_nchw.shape == (N, out_chs, H, W)

    # Tight check vs a reference using the same bf16-MXU / f32-elementwise precision.
    ref_matched = reference_jax(x_nchw, params, has_residual=has_residual, mxu_bf16=True)
    assert jnp.allclose(out_nchw, ref_matched, atol=2e-3, rtol=2e-3), \
        "mismatch vs matched-precision reference"
    # Loose sanity check vs the pure-f32 reference (bounds bf16 quantization error).
    ref_f32 = reference_jax(x_nchw, params, has_residual=has_residual, mxu_bf16=False)
    assert jnp.allclose(out_nchw, ref_f32, atol=5e-2, rtol=5e-2), \
        "mismatch vs f32 reference"

    print("KERNEL_OK")
</pallas_src>

<mosaic_0001>
module attributes {stable_mosaic.version = 11 : i64} {
  func.func @_inverted_residual_kernel(%arg0: i32, %arg1: memref<8x512xf32, #tpu.memory_space<vmem>>, %arg2: memref<48x8xf32, #tpu.memory_space<vmem>>, %arg3: memref<8x48xf32, #tpu.memory_space<vmem>>, %arg4: memref<48x16xf32, #tpu.memory_space<vmem>>, %arg5: memref<1xf32, #tpu.memory_space<smem>>, %arg6: memref<8x512xf32, #tpu.memory_space<vmem>>) attributes {dimension_semantics = [#tpu.dimension_semantics<parallel>], iteration_bounds = array<i64: 2>, scalar_prefetch = 0 : i64, scratch_operands = 0 : i64, tpu.core_type = #tpu.core_type<tc>, window_params = [{transform_indices = @transform_0, window_bounds = array<i64: 8, 512>}, {pipeline_mode = #tpu.pipeline_mode<synchronous>, transform_indices = @transform_1, window_bounds = array<i64: 48, 8>}, {pipeline_mode = #tpu.pipeline_mode<synchronous>, transform_indices = @transform_2, window_bounds = array<i64: 8, 48>}, {pipeline_mode = #tpu.pipeline_mode<synchronous>, transform_indices = @transform_3, window_bounds = array<i64: 48, 16>}, {transform_indices = @transform_4, window_bounds = array<i64: 1>}, {transform_indices = @transform_5, window_bounds = array<i64: 8, 512>}]} {
    %c0 = arith.constant 0 : index
    %c0_0 = arith.constant 0 : index
    %0 = vector.load %arg1[%c0, %c0_0] : memref<8x512xf32, #tpu.memory_space<vmem>>, vector<8x512xf32>
    %c0_1 = arith.constant 0 : index
    %c0_2 = arith.constant 0 : index
    %1 = vector.load %arg4[%c0_1, %c0_2] : memref<48x16xf32, #tpu.memory_space<vmem>>, vector<48x16xf32>
    %2 = vector.extract_strided_slice %1 {offsets = [0, 0], sizes = [48, 1], strides = [1, 1]} : vector<48x16xf32> to vector<48x1xf32>
    %3 = vector.extract_strided_slice %1 {offsets = [0, 1], sizes = [48, 9], strides = [1, 1]} : vector<48x16xf32> to vector<48x9xf32>
    %4 = vector.extract_strided_slice %1 {offsets = [0, 10], sizes = [48, 1], strides = [1, 1]} : vector<48x16xf32> to vector<48x1xf32>
    %5 = vector.extract_strided_slice %1 {offsets = [0, 11], sizes = [8, 1], strides = [1, 1]} : vector<48x16xf32> to vector<8x1xf32>
    %c0_3 = arith.constant 0 : index
    %c0_4 = arith.constant 0 : index
    %6 = vector.load %arg2[%c0_3, %c0_4] : memref<48x8xf32, #tpu.memory_space<vmem>>, vector<48x8xf32>
    %7 = arith.truncf %6 : vector<48x8xf32> to vector<48x8xbf16>
    %8 = arith.truncf %0 : vector<8x512xf32> to vector<8x512xbf16>
    %cst = arith.constant dense<0.000000e+00> : vector<48x512xf32>
    %9 = tpu.matmul %7, %8, %cst {dimension_numbers = #tpu.dot_dimension_numbers<[1], [0], [0], [1], [0, 0, 1, 1], [], []>} : vector<48x8xbf16>, vector<8x512xbf16>, vector<48x512xf32> -> vector<48x512xf32>
    %10 = vector.broadcast %2 : vector<48x1xf32> to vector<48x512xf32>
    %11 = arith.addf %9, %10 : vector<48x512xf32>
    %cst_5 = arith.constant 0.000000e+00 : f32
    %12 = vector.broadcast %cst_5 : f32 to vector<48x512xf32>
    %13 = arith.maximumf %11, %12 : vector<48x512xf32>
    %14 = tpu.iota {dimensions = array<i32: 1>} : vector<1x512xi32>
    %c255_i32 = arith.constant 255 : i32
    %15 = vector.broadcast %c255_i32 : i32 to vector<1x512xi32>
    %16 = arith.andi %14, %15 : vector<1x512xi32>
    %c15_i32 = arith.constant 15 : i32
    %17 = vector.broadcast %c15_i32 : i32 to vector<1x512xi32>
    %18 = arith.andi %16, %17 : vector<1x512xi32>
    %c16_i32 = arith.constant 16 : i32
    %19 = vector.broadcast %c16_i32 : i32 to vector<1x512xi32>
    %20 = arith.cmpi sge, %16, %19 : vector<1x512xi32>
    %c240_i32 = arith.constant 240 : i32
    %21 = vector.broadcast %c240_i32 : i32 to vector<1x512xi32>
    %22 = arith.cmpi slt, %16, %21 : vector<1x512xi32>
    %c1_i32 = arith.constant 1 : i32
    %23 = vector.broadcast %c1_i32 : i32 to vector<1x512xi32>
    %24 = arith.cmpi sge, %18, %23 : vector<1x512xi32>
    %c14_i32 = arith.constant 14 : i32
    %25 = vector.broadcast %c14_i32 : i32 to vector<1x512xi32>
    %26 = arith.cmpi sle, %18, %25 : vector<1x512xi32>
    %cst_6 = arith.constant 0.000000e+00 : f32
    %27 = vector.broadcast %cst_6 : f32 to vector<48x512xf32>
    %28 = vector.extract_strided_slice %3 {offsets = [0, 0], sizes = [48, 1], strides = [1, 1]} : vector<48x9xf32> to vector<48x1xf32>
    %c17_i32 = arith.constant 17 : i32
    %29 = tpu.dynamic_rotate %13 by %c17_i32 dim 1 : vector<48x512xf32>, i32 -> vector<48x512xf32>
    %30 = arith.andi %20, %24 : vector<1x512xi1>
    %cst_7 = arith.constant 0.000000e+00 : f32
    %31 = vector.shape_cast %30 : vector<1x512xi1> to vector<1x512xi1>
    %32 = vector.broadcast %31 : vector<1x512xi1> to vector<48x512xi1>
    %33 = vector.broadcast %cst_7 : f32 to vector<48x512xf32>
    %34 = arith.select %32, %29, %33 : vector<48x512xi1>, vector<48x512xf32>
    %35 = vector.broadcast %28 : vector<48x1xf32> to vector<48x512xf32>
    %36 = arith.mulf %35, %34 : vector<48x512xf32>
    %37 = arith.addf %27, %36 : vector<48x512xf32>
    %38 = vector.extract_strided_slice %3 {offsets = [0, 1], sizes = [48, 1], strides = [1, 1]} : vector<48x9xf32> to vector<48x1xf32>
    %c16_i32_8 = arith.constant 16 : i32
    %39 = tpu.dynamic_rotate %13 by %c16_i32_8 dim 1 : vector<48x512xf32>, i32 -> vector<48x512xf32>
    %cst_9 = arith.constant 0.000000e+00 : f32
    %40 = vector.shape_cast %20 : vector<1x512xi1> to vector<1x512xi1>
    %41 = vector.broadcast %40 : vector<1x512xi1> to vector<48x512xi1>
    %42 = vector.broadcast %cst_9 : f32 to vector<48x512xf32>
    %43 = arith.select %41, %39, %42 : vector<48x512xi1>, vector<48x512xf32>
    %44 = vector.broadcast %38 : vector<48x1xf32> to vector<48x512xf32>
    %45 = arith.mulf %44, %43 : vector<48x512xf32>
    %46 = arith.addf %37, %45 : vector<48x512xf32>
    %47 = vector.extract_strided_slice %3 {offsets = [0, 2], sizes = [48, 1], strides = [1, 1]} : vector<48x9xf32> to vector<48x1xf32>
    %c15_i32_10 = arith.constant 15 : i32
    %48 = tpu.dynamic_rotate %13 by %c15_i32_10 dim 1 : vector<48x512xf32>, i32 -> vector<48x512xf32>
    %49 = arith.andi %20, %26 : vector<1x512xi1>
    %cst_11 = arith.constant 0.000000e+00 : f32
    %50 = vector.shape_cast %49 : vector<1x512xi1> to vector<1x512xi1>
    %51 = vector.broadcast %50 : vector<1x512xi1> to vector<48x512xi1>
    %52 = vector.broadcast %cst_11 : f32 to vector<48x512xf32>
    %53 = arith.select %51, %48, %52 : vector<48x512xi1>, vector<48x512xf32>
    %54 = vector.broadcast %47 : vector<48x1xf32> to vector<48x512xf32>
    %55 = arith.mulf %54, %53 : vector<48x512xf32>
    %56 = arith.addf %46, %55 : vector<48x512xf32>
    %57 = vector.extract_strided_slice %3 {offsets = [0, 3], sizes = [48, 1], strides = [1, 1]} : vector<48x9xf32> to vector<48x1xf32>
    %c1_i32_12 = arith.constant 1 : i32
    %58 = tpu.dynamic_rotate %13 by %c1_i32_12 dim 1 : vector<48x512xf32>, i32 -> vector<48x512xf32>
    %cst_13 = arith.constant 0.000000e+00 : f32
    %59 = vector.shape_cast %24 : vector<1x512xi1> to vector<1x512xi1>
    %60 = vector.broadcast %59 : vector<1x512xi1> to vector<48x512xi1>
    %61 = vector.broadcast %cst_13 : f32 to vector<48x512xf32>
    %62 = arith.select %60, %58, %61 : vector<48x512xi1>, vector<48x512xf32>
    %63 = vector.broadcast %57 : vector<48x1xf32> to vector<48x512xf32>
    %64 = arith.mulf %63, %62 : vector<48x512xf32>
    %65 = arith.addf %56, %64 : vector<48x512xf32>
    %66 = vector.extract_strided_slice %3 {offsets = [0, 4], sizes = [48, 1], strides = [1, 1]} : vector<48x9xf32> to vector<48x1xf32>
    %67 = vector.broadcast %66 : vector<48x1xf32> to vector<48x512xf32>
    %68 = arith.mulf %67, %13 : vector<48x512xf32>
    %69 = arith.addf %65, %68 : vector<48x512xf32>
    %70 = vector.extract_strided_slice %3 {offsets = [0, 5], sizes = [48, 1], strides = [1, 1]} : vector<48x9xf32> to vector<48x1xf32>
    %c511_i32 = arith.constant 511 : i32
    %71 = tpu.dynamic_rotate %13 by %c511_i32 dim 1 : vector<48x512xf32>, i32 -> vector<48x512xf32>
    %cst_14 = arith.constant 0.000000e+00 : f32
    %72 = vector.shape_cast %26 : vector<1x512xi1> to vector<1x512xi1>
    %73 = vector.broadcast %72 : vector<1x512xi1> to vector<48x512xi1>
    %74 = vector.broadcast %cst_14 : f32 to vector<48x512xf32>
    %75 = arith.select %73, %71, %74 : vector<48x512xi1>, vector<48x512xf32>
    %76 = vector.broadcast %70 : vector<48x1xf32> to vector<48x512xf32>
    %77 = arith.mulf %76, %75 : vector<48x512xf32>
    %78 = arith.addf %69, %77 : vector<48x512xf32>
    %79 = vector.extract_strided_slice %3 {offsets = [0, 6], sizes = [48, 1], strides = [1, 1]} : vector<48x9xf32> to vector<48x1xf32>
    %c497_i32 = arith.constant 497 : i32
    %80 = tpu.dynamic_rotate %13 by %c497_i32 dim 1 : vector<48x512xf32>, i32 -> vector<48x512xf32>
    %81 = arith.andi %22, %24 : vector<1x512xi1>
    %cst_15 = arith.constant 0.000000e+00 : f32
    %82 = vector.shape_cast %81 : vector<1x512xi1> to vector<1x512xi1>
    %83 = vector.broadcast %82 : vector<1x512xi1> to vector<48x512xi1>
    %84 = vector.broadcast %cst_15 : f32 to vector<48x512xf32>
    %85 = arith.select %83, %80, %84 : vector<48x512xi1>, vector<48x512xf32>
    %86 = vector.broadcast %79 : vector<48x1xf32> to vector<48x512xf32>
    %87 = arith.mulf %86, %85 : vector<48x512xf32>
    %88 = arith.addf %78, %87 : vector<48x512xf32>
    %89 = vector.extract_strided_slice %3 {offsets = [0, 7], sizes = [48, 1], strides = [1, 1]} : vector<48x9xf32> to vector<48x1xf32>
    %c496_i32 = arith.constant 496 : i32
    %90 = tpu.dynamic_rotate %13 by %c496_i32 dim 1 : vector<48x512xf32>, i32 -> vector<48x512xf32>
    %cst_16 = arith.constant 0.000000e+00 : f32
    %91 = vector.shape_cast %22 : vector<1x512xi1> to vector<1x512xi1>
    %92 = vector.broadcast %91 : vector<1x512xi1> to vector<48x512xi1>
    %93 = vector.broadcast %cst_16 : f32 to vector<48x512xf32>
    %94 = arith.select %92, %90, %93 : vector<48x512xi1>, vector<48x512xf32>
    %95 = vector.broadcast %89 : vector<48x1xf32> to vector<48x512xf32>
    %96 = arith.mulf %95, %94 : vector<48x512xf32>
    %97 = arith.addf %88, %96 : vector<48x512xf32>
    %98 = vector.extract_strided_slice %3 {offsets = [0, 8], sizes = [48, 1], strides = [1, 1]} : vector<48x9xf32> to vector<48x1xf32>
    %c495_i32 = arith.constant 495 : i32
    %99 = tpu.dynamic_rotate %13 by %c495_i32 dim 1 : vector<48x512xf32>, i32 -> vector<48x512xf32>
    %100 = arith.andi %22, %26 : vector<1x512xi1>
    %cst_17 = arith.constant 0.000000e+00 : f32
    %101 = vector.shape_cast %100 : vector<1x512xi1> to vector<1x512xi1>
    %102 = vector.broadcast %101 : vector<1x512xi1> to vector<48x512xi1>
    %103 = vector.broadcast %cst_17 : f32 to vector<48x512xf32>
    %104 = arith.select %102, %99, %103 : vector<48x512xi1>, vector<48x512xf32>
    %105 = vector.broadcast %98 : vector<48x1xf32> to vector<48x512xf32>
    %106 = arith.mulf %105, %104 : vector<48x512xf32>
    %107 = arith.addf %97, %106 : vector<48x512xf32>
    %108 = vector.broadcast %4 : vector<48x1xf32> to vector<48x512xf32>
    %109 = arith.addf %107, %108 : vector<48x512xf32>
    %cst_18 = arith.constant 0.000000e+00 : f32
    %110 = vector.broadcast %cst_18 : f32 to vector<48x512xf32>
    %111 = arith.maximumf %109, %110 : vector<48x512xf32>
    %c0_19 = arith.constant 0 : index
    %c0_20 = arith.constant 0 : index
    %112 = vector.load %arg3[%c0_19, %c0_20] : memref<8x48xf32, #tpu.memory_space<vmem>>, vector<8x48xf32>
    %113 = arith.truncf %112 : vector<8x48xf32> to vector<8x48xbf16>
    %114 = arith.truncf %111 : vector<48x512xf32> to vector<48x512xbf16>
    %cst_21 = arith.constant dense<0.000000e+00> : vector<8x512xf32>
    %115 = tpu.matmul %113, %114, %cst_21 {dimension_numbers = #tpu.dot_dimension_numbers<[1], [0], [0], [1], [0, 0, 1, 1], [], []>} : vector<8x48xbf16>, vector<48x512xbf16>, vector<8x512xf32> -> vector<8x512xf32>
    %116 = vector.broadcast %5 : vector<8x1xf32> to vector<8x512xf32>
    %117 = arith.addf %115, %116 : vector<8x512xf32>
    %c0_22 = arith.constant 0 : index
    %118 = memref.load %arg5[%c0_22] : memref<1xf32, #tpu.memory_space<smem>>
    %119 = vector.broadcast %118 : f32 to vector<8x512xf32>
    %120 = arith.mulf %119, %0 : vector<8x512xf32>
    %121 = arith.addf %117, %120 : vector<8x512xf32>
    %cst_23 = arith.constant 0.000000e+00 : f32
    %122 = vector.broadcast %cst_23 : f32 to vector<8x512xf32>
    %123 = arith.maximumf %121, %122 : vector<8x512xf32>
    %c0_24 = arith.constant 0 : index
    %c0_25 = arith.constant 0 : index
    %124 = vector.load %arg6[%c0_24, %c0_25] : memref<8x512xf32, #tpu.memory_space<vmem>>, vector<8x512xf32>
    tpu.vector_store %arg6[%c0_24, %c0_25], %123 {strides = array<i32>} : memref<8x512xf32, #tpu.memory_space<vmem>>, vector<8x512xf32>,
    return
  }
  func.func @transform_0(%arg0: i32) -> (i32, i32) {
    %c0_i32 = arith.constant 0 : i32
    %c0_i32_0 = arith.constant 0 : i32
    return %c0_i32, %arg0 : i32, i32
  }
  func.func @transform_1(%arg0: i32) -> (i32, i32) {
    %c0_i32 = arith.constant 0 : i32
    %c0_i32_0 = arith.constant 0 : i32
    %c0_i32_1 = arith.constant 0 : i32
    return %c0_i32, %c0_i32_0 : i32, i32
  }
  func.func @transform_2(%arg0: i32) -> (i32, i32) {
    %c0_i32 = arith.constant 0 : i32
    %c0_i32_0 = arith.constant 0 : i32
    %c0_i32_1 = arith.constant 0 : i32
    return %c0_i32, %c0_i32_0 : i32, i32
  }
  func.func @transform_3(%arg0: i32) -> (i32, i32) {
    %c0_i32 = arith.constant 0 : i32
    %c0_i32_0 = arith.constant 0 : i32
    %c0_i32_1 = arith.constant 0 : i32
    return %c0_i32, %c0_i32_0 : i32, i32
  }
  func.func @transform_4(%arg0: i32) -> i32 {
    %c0_i32 = arith.constant 0 : i32
    %c0_i32_0 = arith.constant 0 : i32
    return %c0_i32 : i32
  }
  func.func @transform_5(%arg0: i32) -> (i32, i32) {
    %c0_i32 = arith.constant 0 : i32
    %c0_i32_0 = arith.constant 0 : i32
    return %c0_i32, %arg0 : i32, i32
  }
}

</mosaic_0001>

<bundles_post_ra>
// kernel: tpu_custom_call.1
= control target key start
LH: loop header
LB: loop body
LE: loop exit
PB: predicated region body
PF: predicated region fallthrough
CT: control target
= control target key end

     0   :  { %s5372_s0 = inlined_call_operand.vmem [shape: f32[8,1024], index: 0, kind: input, shape index: {}]   ;;  %s5373_s1 = inlined_call_operand.vmem [shape: f32[48,8], index: 1, kind: input, shape index: {}]   ;;  %s5374_s2 = inlined_call_operand.vmem [shape: f32[8,48], index: 2, kind: input, shape index: {}]   ;;  %s5375_s3 = inlined_call_operand.vmem [shape: f32[48,16], index: 3, kind: input, shape index: {}]   ;;  %s5376_s4 = inlined_call_operand.<no memory space> [shape: f32[1], index: 4, kind: input, shape index: {}]   ;;  %s5377_s5 = inlined_call_operand.hbm [shape: f32[8,1024], index: 5, kind: output, shape index: {}]  }
   0x1   :  { %10 = sst [smem:[#allocation2]] %s5376_s4 }
   0x2   :  { %11 = vsyncpa [#allocation4], 0 }
   0x3   :  { %13 = vsyncpa [#allocation4 + $0x1], 0  ;;  %s2497_s20 = smov 0   ;;  %s2499_s21 = smov 0  }
   0x4   :  { %s2501_s22 = smov 0   ;;  %s2503_s23 = smov 0  }
   0x5 LB: > { %s2518_s4 = sadd.s32 4294967295, %s2441_s23   ;;  %s2255_s24 = sadd.s32 4294967294, %s2441_s23   ;;  %s2441_s23 = sphi %s2503_s23, %s6199_s23   ;;  %s2437_s22 = sphi %s2501_s22, %s6198_s22   ;;  %s2433_s21 = sphi %s2499_s21, %s6197_s21   ;;  %s2429_s20 = sphi %s2497_s20, %s6196_s20  }
   0x6   : > { %s2522_s25 = sadd.s32 1, %s2441_s23   ;;  %s136_s26 = sadd.s32 1, %s2437_s22 }
   0x7   : > { %s133_s27 = ssub.s32 %s2441_s23, %s2522_s25  ;;  %p146_p0 = scmp.ne.s32.totalorder %s2437_s22, %s2433_s21 }
   0x8   : > { %p134_p1 = scmp.eq.s32.totalorder %s133_s27, 0  ;;  %p147_p2 = scmp.eq.s32.totalorder %s2518_s4, 1 }
   0x9   : > { %p152_p3 = scmp.ne.s32.totalorder %s2433_s21, %s2429_s20  ;;  %p153_p4 = scmp.eq.s32.totalorder %s2255_s24, 1 }
   0xa   : > { %s2533_s28 = scalar_select %p134_p1, %s2437_s22, %s136_s26  }
   0xb   : > { %p2535_p5 = por %p147_p2, %p146_p0  ;;  %p2539_p6 = por %p153_p4, %p152_p3 }
   0xc   : > { %p2258_p7 = scmp.ge.s32.totalorder %s2441_s23, 1  ;;  %p192_p8 = scmp.lt.s32.totalorder %s2441_s23, 3 }
   0xe   : > { %p193_p9 = pnand %p2258_p7, %p192_p8 }
  0x10   : > { %196 = sbr.rel (%p193_p9) target bundleno = 1130 (0x46a), region = 40 }
  0x17   : > { %s2260_s6 = sshll.u32 %s2518_s4, 2  ;;  %v2443_v0 = vmov 0   ;;  %v2552_v1 = vld [vmem:[%s5375_s3] sm:$0xff]  ;;  %v2559_v2 = vld [vmem:[%s5375_s3 + $0x10] sm:$0xff]  ;;  %v2564_v3 = vld [vmem:[%s5375_s3 + $0x8] sm:$0xff]  ;;  %vm291_vm0 = vcmask 1043456  }
  0x18   : > { %p221_p10 = scmp.lt.s32.totalorder %s2260_s6, 7  ;;  %336 = vmatprep.mubr.bf16.mxu0 %v2443_v0  ;;  %399 = vmatprep.mubr.bf16.mxu1 %v2443_v0  ;;  %v2570_v4 = vld [vmem:[%s5375_s3 + $0x18] sm:$0xff]  ;;  %v238_v5 = vld [vmem:[%s5373_s1] sm:$0xff]  ;;  %v239_v12 = vld [vmem:[%s5373_s1 + $0x8] sm:$0xff]  ;;  %vm281_vm1 = vcmask 64512   ;;  %v2444_v22 = vmov 1  }
  0x19   : > { %2337 = vset.pattern.permute.xlu0 %v2443_v0  ;;  %2338 = vset.pattern.permute.xlu1 %v2443_v0  ;;  %v2591_v13 = vld [vmem:[%s5375_s3 + $0x20] sm:$0xff]  ;;  %v2599_v16 = vld [vmem:[%s5375_s3 + $0x28] sm:$0xff]  ;;  %v244_v19 = vpack.c.bf16 %v239_v12, %v238_v5  ;;  %v240_v20 = vld [vmem:[%s5373_s1 + $0x10] sm:$0xff]  ;;  %v2445_v27 = vmov 2   ;;  %v2446_v28 = vmov 3   ;;  %v2447_v29 = vmov 4  }
  0x1a   : > { %s6201_s6 = smov (!%p221_p10, %s2260_s6), 7  ;;  %253 = vperm.xlu0 %2337, %v2552_v1   ;;  %263 = vperm.xlu1 %2338, %v2559_v2   ;;  %v241_v21 = vld [vmem:[%s5373_s1 + $0x18] sm:$0xff]  ;;  %v242_v24 = vld [vmem:[%s5373_s1 + $0x20] sm:$0xff]  ;;  %v243_v25 = vld [vmem:[%s5373_s1 + $0x28] sm:$0xff]  ;;  %s2448_s19 = smov 16  }
  0x1b   : > { %s2261_s13 = sshll.u32 %s6201_s6, 3  ;;  %v245_v23 = vpack.c.bf16 %v241_v21, %v240_v20  ;;  %v246_v26 = vpack.c.bf16 %v243_v25, %v242_v24  ;;  %s2449_s24 = smov 17  }
  0x1c   : > { %s2575_s18 = scalar_lea.vmem %s5372_s0, %s2261_s13  ;;  %s2450_s26 = smov 1  }
  0x1d   : > { %v229_v6 = vld [vmem:[%s2575_s18 + $0x8] sm:$0xff]  ;;  %v231_v7 = vld [vmem:[%s2575_s18 + $0x18] sm:$0xff]  ;;  %v228_v8 = vld [vmem:[%s2575_s18] sm:$0xff]  ;;  %s2451_s27 = smov 15   ;;  %s2453_s6 = smov 127  }
  0x1e   : > { %258 = vperm.xlu0 %2337, %v2564_v3   ;;  %v248_v9 = vpack.c.bf16 %v229_v6, %v229_v6  ;;  %v250_v10 = vpack.c.bf16 %v231_v7, %v231_v7  ;;  %v230_v11 = vld [vmem:[%s2575_s18 + $0x10] sm:$0xff]  ;;  %268 = vperm.xlu1 %2338, %v2570_v4   ;;  %v247_v14 = vpack.c.bf16 %v228_v8, %v228_v8  ;;  %s2456_s7 = smov 113   ;;  %s2459_s8 = smov 112  }
  0x1f   : > { %v249_v15 = vpack.c.bf16 %v230_v11, %v230_v11  ;;  %s2460_s9 = smov 111   ;;  %s2277_s10 = sshll.u32 %s2518_s4, 9 }
  0x20   : > { %2262 = vmatprep.subr.msk.bf16.mxu0 %vm291_vm0, %v248_v9  ;;  %2266 = vmatprep.subr.msk.bf16.mxu1 %vm291_vm0, %v250_v10  ;;  %v293_v17 = vsel %vm291_vm0, %v247_v14, 0  ;;  %s5328_s13 = scalar_lea.hbm %s5377_s5, %s2277_s10  ;;  %s2463_s15 = smov [#allocation3]  }
  0x21   : > { %v299_v18 = vsel %vm291_vm0, %v249_v15, 0  ;;  %305 = vmatpush1.bf16.msra.mxu0 %v293_v17  ;;  %s2383_s16 = sshll.u32 %s2463_s15, 4  ;;  %s2384_s16 = int_to_ptr.vmem [resolvable:$false] %s2383_s16 }
  0x22   : > { %273 = vperm.xlu0 %2337, %v2591_v13   ;;  %368 = vmatpush1.bf16.msra.mxu1 %v299_v18  ;;  %s2385_s17 = scalar_lea.vmem %s2384_s16, 1024 }
  0x23   : > { %278 = vperm.xlu1 %2338, %v2599_v16  }
  0x24   : > { %2263 = vmatmul.mubr.msk.bf16.vlgmr.msra.gmra.mrb[0].mxu0 %vm281_vm1, %v244_v19 }
  0x25   : > { %2267 = vmatmul.mubr.msk.bf16.vlgmr.msra.gmra.mrb[0].mxu1 %vm281_vm1, %v244_v19  ;;  %346 = vmatprep.mubr.bf16.mxu0 %v2443_v0 }
  0x26   : > { %409 = vmatprep.mubr.bf16.mxu1 %v2443_v0  ;;  %2339 = vset.pattern.permute.xlu0 %v2444_v22 }
  0x27   : > { %2340 = vset.pattern.permute.xlu1 %v2444_v22  ;;  %593 = vperm.xlu0 %2339, %v2552_v1  }
  0x28   : > { %597 = vperm.xlu1 %2340, %v2564_v3  }
  0x2b   : > { %605 = vperm.xlu0 %2339, %v2570_v4  }
  0x2c   : > { %601 = vperm.xlu1 %2340, %v2559_v2   ;;  %2264 = vmatmul.mubr.msk.bf16.gmra.mrb[4].mxu0 %vm281_vm1, %v245_v23 }
  0x2d   : > { %2268 = vmatmul.mubr.msk.bf16.gmra.mrb[4].mxu1 %vm281_vm1, %v245_v23  ;;  %356 = vmatprep.mubr.bf16.mxu0 %v2443_v0 }
  0x2e   : > { %419 = vmatprep.mubr.bf16.mxu1 %v2443_v0 }
  0x2f   : > { %613 = vperm.xlu0 %2339, %v2599_v16  }
  0x30   : > { %609 = vperm.xlu1 %2340, %v2591_v13  }
  0x33   : > { %2342 = vset.pattern.permute.xlu0 %v2445_v27 }
  0x34   : > { %2341 = vset.pattern.permute.xlu1 %v2445_v27  ;;  %2265 = vmatmul.mubr.msk.bf16.gmra.mrb[8].mxu0 %vm281_vm1, %v246_v26 }
  0x35   : > { %2269 = vmatmul.mubr.msk.bf16.gmra.mrb[8].mxu1 %vm281_vm1, %v246_v26  ;;  %770 = vperm.xlu1 %2341, %v2552_v1  }
  0x36   : > { %774 = vperm.xlu0 %2342, %v2564_v3   ;;  %2113 = vmatprep.mubr.bf16.mxu0 %v2443_v0 }
  0x37   : > { %2154 = vmatprep.mubr.bf16.mxu1 %v2443_v0 }
  0x39   : > { %778 = vperm.xlu1 %2341, %v2559_v2  }
  0x3a   : > { %786 = vperm.xlu0 %2342, %v2591_v13  }
  0x3d   : > { %782 = vperm.xlu1 %2341, %v2570_v4  }
  0x3e   : > { %2343 = vset.pattern.permute.xlu0 %v2446_v28 }
  0x3f   : > { %951 = vperm.xlu0 %2343, %v2552_v1  }
  0x41   : > { %790 = vperm.xlu1 %2341, %v2599_v16  }
  0x43   : > { %963 = vperm.xlu0 %2343, %v2570_v4  }
  0x45   : > { %2344 = vset.pattern.permute.xlu1 %v2446_v28 }
  0x46   : > { %955 = vperm.xlu1 %2344, %v2564_v3  }
  0x47   : > { %971 = vperm.xlu0 %2343, %v2599_v16  }
  0x4a   : > { %959 = vperm.xlu1 %2344, %v2559_v2  }
  0x4b   : > { %2346 = vset.pattern.permute.xlu0 %v2447_v29 }
  0x4e   : > { %967 = vperm.xlu1 %2344, %v2591_v13  }
  0x52   : > { %2345 = vset.pattern.permute.xlu1 %v2447_v29 }
  0x53   : > { %1128 = vperm.xlu1 %2345, %v2552_v1  }
  0x99   : > { %v254_v30 = vpop.permute.xlu0 %253  ;;  %v264_v7 = vpop.permute.xlu1 %263 }
  0x9d   : > { %v259_v63 = vpop.permute.xlu0 %258  ;;  %v2730_v9 = vpop.permute.xlu1 %268 }
  0xa1   : > { %v2770_v22 = vpop.permute.xlu0 %273 }
  0xa2   : > { %v2740_v11 = vpop.permute.xlu1 %278 }
  0xa6   : > { %v2781_v26 = vpop.permute.xlu0 %593 }
  0xa7   : > { %v2748_v15 = vpop.permute.xlu1 %597 }
  0xa8   : > { %5606 = vst [vmem:[#allocation13_spill] sm:$0xff] %v2748_v15 }
  0xaa   : > { %v2793_v28 = vpop.permute.xlu0 %605 }
  0xab   : > { %v2756_v18 = vpop.permute.xlu1 %601  ;;  %5611 = vst [vmem:[#allocation18_spill] sm:$0xff] %v2793_v28 }
  0xac   : > { %5608 = vst [vmem:[#allocation15_spill] sm:$0xff] %v2756_v18 }
  0xaf   : > { %v2768_v21 = vpop.permute.xlu1 %609 }
  0xb0   : > { %5609 = vst [vmem:[#allocation16_spill] sm:$0xff] %v2768_v21 }
  0xb4   : > { %v2779_v25 = vpop.permute.xlu1 %770 }
  0xb8   : > { %v2791_v27 = vpop.permute.xlu1 %778 }
  0xb9   : > { %5610 = vst [vmem:[#allocation17_spill] sm:$0xff] %v2791_v27 }
  0xf7   : > { %v338_v31 = vpop.f32.mrb[0].mxu0 }
  0xf8   : > { %v401_v32 = vpop.f32.mrb[0].mxu1  ;;  %v339_v33 = vadd.f32 %v338_v31, %v254_v30  ;;  %v340_v34 = vpop.f32.mrb[1].mxu0 }
  0xf9   : > { %v403_v35 = vpop.f32.mrb[1].mxu1  ;;  %v342_v36 = vpop.f32.mrb[2].mxu0  ;;  %v402_v39 = vadd.f32 %v401_v32, %v254_v30  ;;  %v341_v51 = vadd.f32 %v340_v34, %v254_v30 }
  0xfa   : > { %v405_v37 = vpop.f32.mrb[2].mxu1  ;;  %v2648_v38 = vmax.f32 %v339_v33, 0.0  ;;  %v344_v40 = vpop.f32.mrb[3].mxu0  ;;  %v404_v59 = vadd.f32 %v403_v35, %v254_v30  ;;  %v343_v0 = vadd.f32 %v342_v36, %v259_v63 }
  0xfb   : > { %v407_v41 = vpop.f32.mrb[3].mxu1  ;;  %v2654_v42 = vmax.f32 %v402_v39, 0.0  ;;  %v2694_v58 = vmax.f32 %v341_v51, 0.0  ;;  %v406_v6 = vadd.f32 %v405_v37, %v259_v63  ;;  %v345_v10 = vadd.f32 %v344_v40, %v259_v63  ;;  %v2803_v32 = vpop.permute.xlu1 %782 }
  0xfc   : > { %5599 = vst [vmem:[#allocation6_spill] sm:$0xff] %v2648_v38  ;;  %664 = vrot.lane.b32.xlu1 %v2648_v38, %s2448_s19  ;;  %483 = vrot.lane.b32.xlu0 %v2648_v38, %s2449_s24  ;;  %v2704_v62 = vmax.f32 %v404_v59, 0.0  ;;  %v2718_v5 = vmax.f32 %v343_v0, 0.0  ;;  %v408_v14 = vadd.f32 %v407_v41, %v259_v63  ;;  %5612 = vst [vmem:[#allocation19_spill] sm:$0xff] %v2803_v32  ;;  %v2805_v33 = vpop.permute.xlu0 %613 }
  0xfd   : > { %5600 = vst [vmem:[#allocation7_spill] sm:$0xff] %v2654_v42  ;;  %5601 = vst [vmem:[#allocation8_spill] sm:$0xff] %v2694_v58  ;;  %v2724_v8 = vmax.f32 %v406_v6, 0.0  ;;  %v2742_v12 = vmax.f32 %v345_v10, 0.0 }
  0xfe   : > { %5602 = vst [vmem:[#allocation9_spill] sm:$0xff] %v2704_v62  ;;  %5603 = vst [vmem:[#allocation10_spill] sm:$0xff] %v2718_v5  ;;  %v2750_v17 = vmax.f32 %v408_v14, 0.0 }
  0xff   : > { %v348_v43 = vpop.f32.mrb[4].mxu0  ;;  %5604 = vst [vmem:[#allocation11_spill] sm:$0xff] %v2724_v8  ;;  %5605 = vst [vmem:[#allocation12_spill] sm:$0xff] %v2742_v12  ;;  %v2817_v35 = vpop.permute.xlu1 %790 }
 0x100   : > { %v2656_v44 = vpop.f32.mrb[4].mxu1  ;;  %688 = vrot.lane.b32.xlu1 %v2654_v42, %s2448_s19  ;;  %507 = vrot.lane.b32.xlu0 %v2654_v42, %s2449_s24  ;;  %v2662_v45 = vpop.f32.mrb[5].mxu0  ;;  %5607 = vst [vmem:[#allocation14_spill] sm:$0xff] %v2750_v17  ;;  %v349_v19 = vadd.f32 %v348_v43, %v264_v7  ;;  %5613 = vst [vmem:[#allocation20_spill] sm:$0xff] %v2805_v33 }
 0x101   : > { %v2664_v46 = vpop.f32.mrb[5].mxu1  ;;  %v2666_v47 = vpop.f32.mrb[6].mxu0  ;;  %v412_v23 = vadd.f32 %v2656_v44, %v264_v7  ;;  %v351_v29 = vadd.f32 %v2662_v45, %v264_v7  ;;  %5614 = vst [vmem:[#allocation21_spill] sm:$0xff] %v2817_v35 }
 0x102   : > { %v2668_v48 = vpop.f32.mrb[6].mxu1  ;;  %v2670_v49 = vpop.f32.mrb[7].mxu0  ;;  %v2762_v20 = vmax.f32 %v349_v19, 0.0  ;;  %v414_v30 = vadd.f32 %v2664_v46, %v264_v7  ;;  %v353_v37 = vadd.f32 %v2666_v47, %v2730_v9 }
 0x103   : > { %v2672_v50 = vpop.f32.mrb[7].mxu1  ;;  %v2777_v24 = vmax.f32 %v412_v23, 0.0  ;;  %v2801_v31 = vmax.f32 %v351_v29, 0.0  ;;  %v2819_v36 = vpop.permute.xlu0 %774  ;;  %v416_v41 = vadd.f32 %v2668_v48, %v2730_v9  ;;  %v355_v51 = vadd.f32 %v2670_v49, %v2730_v9 }
 0x104   : > { %1022 = vrot.lane.b32.xlu1 %v2648_v38, %s2450_s26  ;;  %841 = vrot.lane.b32.xlu0 %v2648_v38, %s2451_s27  ;;  %v2811_v34 = vmax.f32 %v414_v30, 0.0  ;;  %5615 = vst [vmem:[#allocation22_spill] sm:$0xff] %v2819_v36  ;;  %v2827_v39 = vpop.permute.xlu1 %955  ;;  %v2837_v43 = vmax.f32 %v353_v37, 0.0  ;;  %v418_v0 = vadd.f32 %v2672_v50, %v2730_v9 }
 0x105   : > { %5616 = vst [vmem:[#allocation23_spill] sm:$0xff] %v2827_v39  ;;  %v2847_v46 = vmax.f32 %v416_v41, 0.0  ;;  %v2873_v6 = vmax.f32 %v355_v51, 0.0 }
 0x106   : > { %5618 = vst [vmem:[#allocation25_spill] sm:$0xff] %v2837_v43  ;;  %v2879_v49 = vmax.f32 %v418_v0, 0.0 }
 0x107   : > { %v2678_v52 = vpop.f32.mrb[8].mxu0  ;;  %v2829_v40 = vpop.permute.xlu0 %786  ;;  %5620 = vst [vmem:[#allocation27_spill] sm:$0xff] %v2847_v46  ;;  %5624 = vst [vmem:[#allocation31_spill] sm:$0xff] %v2873_v6 }
 0x108   : > { %v2680_v53 = vpop.f32.mrb[8].mxu1  ;;  %v2682_v54 = vpop.f32.mrb[9].mxu0  ;;  %1046 = vrot.lane.b32.xlu1 %v2654_v42, %s2450_s26  ;;  %865 = vrot.lane.b32.xlu0 %v2654_v42, %s2451_s27  ;;  %5617 = vst [vmem:[#allocation24_spill] sm:$0xff] %v2829_v40  ;;  %5625 = vst [vmem:[#allocation32_spill] sm:$0xff] %v2879_v49  ;;  %v359_v14 = vadd.f32 %v2678_v52, %v2770_v22 }
 0x109   : > { %v2684_v55 = vpop.f32.mrb[9].mxu1  ;;  %v2690_v56 = vpop.f32.mrb[10].mxu0  ;;  %v422_v30 = vadd.f32 %v2680_v53, %v2770_v22 }
 0x10a   : > { %v2692_v57 = vpop.f32.mrb[10].mxu1  ;;  %v2696_v60 = vpop.f32.mrb[11].mxu0  ;;  %v2907_v29 = vmax.f32 %v359_v14, 0.0 }
 0x10b   : > { %v2698_v61 = vpop.f32.mrb[11].mxu1  ;;  %v2843_v44 = vpop.permute.xlu1 %959  ;;  %v2919_v52 = vmax.f32 %v422_v30, 0.0  ;;  %v361_v30 = vadd.f32 %v2682_v54, %v2770_v22 }
 0x10c   : > { %676 = vrot.lane.b32.xlu1 %v2694_v58, %s2448_s19  ;;  %495 = vrot.lane.b32.xlu0 %v2694_v58, %s2449_s24  ;;  %5619 = vst [vmem:[#allocation26_spill] sm:$0xff] %v2843_v44  ;;  %v2845_v45 = vpop.permute.xlu0 %951  ;;  %5626 = vst [vmem:[#allocation33_spill] sm:$0xff] %v2907_v29  ;;  %v426_v44 = vadd.f32 %v2692_v57, %v2740_v11  ;;  %v428_v36 = vadd.f32 %v2698_v61, %v2740_v11 }
 0x10d   : > { %5627 = vst [vmem:[#allocation34_spill] sm:$0xff] %v2919_v52  ;;  %v2947_v33 = vmax.f32 %v361_v30, 0.0 }
 0x10f   : > { %v2853_v47 = vpop.permute.xlu1 %967  ;;  %5628 = vst [vmem:[#allocation35_spill] sm:$0xff] %v2947_v33 }
 0x110   : > { %700 = vrot.lane.b32.xlu1 %v2704_v62, %s2448_s19  ;;  %519 = vrot.lane.b32.xlu0 %v2704_v62, %s2449_s24  ;;  %5621 = vst [vmem:[#allocation28_spill] sm:$0xff] %v2853_v47  ;;  %v2855_v48 = vpop.permute.xlu0 %963  ;;  %v424_v47 = vadd.f32 %v2684_v55, %v2770_v22 }
 0x111   : > { %5622 = vst [vmem:[#allocation29_spill] sm:$0xff] %v2855_v48 }
 0x112   : > { %v2959_v54 = vmax.f32 %v424_v47, 0.0  ;;  %v363_v47 = vadd.f32 %v2690_v56, %v2740_v11  ;;  %v2999_v56 = vmax.f32 %v426_v44, 0.0  ;;  %v365_v44 = vadd.f32 %v2696_v60, %v2740_v11 }
 0x113   : > { %v2867_v59 = vpop.permute.xlu1 %1128  ;;  %v3039_v60 = vmax.f32 %v428_v36, 0.0 }
 0x114   : > { %1034 = vrot.lane.b32.xlu1 %v2694_v58, %s2450_s26  ;;  %853 = vrot.lane.b32.xlu0 %v2694_v58, %s2451_s27  ;;  %v2869_v63 = vpop.permute.xlu0 %971  ;;  %5629 = vst [vmem:[#allocation36_spill] sm:$0xff] %v2959_v54  ;;  %v2989_v18 = vmax.f32 %v363_v47, 0.0  ;;  %5635 = vst [vmem:[#allocation42_spill] sm:$0xff] %v2999_v56 }
 0x115   : > { %5623 = vst [vmem:[#allocation30_spill] sm:$0xff] %v2869_v63  ;;  %5641 = vst [vmem:[#allocation48_spill] sm:$0xff] %v3039_v60 }
 0x118   : > { %1058 = vrot.lane.b32.xlu1 %v2704_v62, %s2450_s26  ;;  %877 = vrot.lane.b32.xlu0 %v2704_v62, %s2451_s27 }
 0x11c   : > { %485 = vrot.lane.b32.xlu1 %v2718_v5, %s2449_s24  ;;  %666 = vrot.lane.b32.xlu0 %v2718_v5, %s2448_s19 }
 0x120   : > { %509 = vrot.lane.b32.xlu1 %v2724_v8, %s2449_s24  ;;  %690 = vrot.lane.b32.xlu0 %v2724_v8, %s2448_s19 }
 0x124   : > { %843 = vrot.lane.b32.xlu1 %v2718_v5, %s2451_s27  ;;  %1024 = vrot.lane.b32.xlu0 %v2718_v5, %s2450_s26 }
 0x128   : > { %867 = vrot.lane.b32.xlu1 %v2724_v8, %s2451_s27  ;;  %1048 = vrot.lane.b32.xlu0 %v2724_v8, %s2450_s26 }
 0x12c   : > { %497 = vrot.lane.b32.xlu1 %v2742_v12, %s2449_s24  ;;  %678 = vrot.lane.b32.xlu0 %v2742_v12, %s2448_s19 }
 0x130   : > { %521 = vrot.lane.b32.xlu1 %v2750_v17, %s2449_s24  ;;  %702 = vrot.lane.b32.xlu0 %v2750_v17, %s2448_s19 }
 0x134   : > { %855 = vrot.lane.b32.xlu1 %v2742_v12, %s2451_s27  ;;  %1036 = vrot.lane.b32.xlu0 %v2742_v12, %s2450_s26 }
 0x138   : > { %879 = vrot.lane.b32.xlu1 %v2750_v17, %s2451_s27  ;;  %1060 = vrot.lane.b32.xlu0 %v2750_v17, %s2450_s26 }
 0x13c   : > { %668 = vrot.lane.b32.xlu1 %v2762_v20, %s2448_s19  ;;  %487 = vrot.lane.b32.xlu0 %v2762_v20, %s2449_s24 }
 0x140   : > { %692 = vrot.lane.b32.xlu1 %v2777_v24, %s2448_s19  ;;  %511 = vrot.lane.b32.xlu0 %v2777_v24, %s2449_s24 }
 0x144   : > { %1026 = vrot.lane.b32.xlu1 %v2762_v20, %s2450_s26  ;;  %845 = vrot.lane.b32.xlu0 %v2762_v20, %s2451_s27 }
 0x148   : > { %1050 = vrot.lane.b32.xlu1 %v2777_v24, %s2450_s26  ;;  %869 = vrot.lane.b32.xlu0 %v2777_v24, %s2451_s27 }
 0x14c   : > { %680 = vrot.lane.b32.xlu1 %v2801_v31, %s2448_s19  ;;  %499 = vrot.lane.b32.xlu0 %v2801_v31, %s2449_s24 }
 0x150   : > { %704 = vrot.lane.b32.xlu1 %v2811_v34, %s2448_s19  ;;  %523 = vrot.lane.b32.xlu0 %v2811_v34, %s2449_s24 }
 0x154   : > { %1038 = vrot.lane.b32.xlu1 %v2801_v31, %s2450_s26  ;;  %857 = vrot.lane.b32.xlu0 %v2801_v31, %s2451_s27 }
 0x158   : > { %1062 = vrot.lane.b32.xlu1 %v2811_v34, %s2450_s26  ;;  %881 = vrot.lane.b32.xlu0 %v2811_v34, %s2451_s27 }
 0x15c   : > { %489 = vrot.lane.b32.xlu1 %v2837_v43, %s2449_s24  ;;  %670 = vrot.lane.b32.xlu0 %v2837_v43, %s2448_s19 }
 0x160   : > { %513 = vrot.lane.b32.xlu1 %v2847_v46, %s2449_s24  ;;  %694 = vrot.lane.b32.xlu0 %v2847_v46, %s2448_s19 }
 0x164   : > { %847 = vrot.lane.b32.xlu1 %v2837_v43, %s2451_s27  ;;  %1028 = vrot.lane.b32.xlu0 %v2837_v43, %s2450_s26 }
 0x168   : > { %871 = vrot.lane.b32.xlu1 %v2847_v46, %s2451_s27  ;;  %1052 = vrot.lane.b32.xlu0 %v2847_v46, %s2450_s26 }
 0x16c   : > { %501 = vrot.lane.b32.xlu1 %v2873_v6, %s2449_s24  ;;  %682 = vrot.lane.b32.xlu0 %v2873_v6, %s2448_s19 }
 0x16e   : > { %v2881_v7 = vpop.permute.xlu1 %664  ;;  %v2883_v10 = vpop.permute.xlu0 %483 }
 0x170   : > { %525 = vrot.lane.b32.xlu1 %v2879_v49, %s2449_s24  ;;  %706 = vrot.lane.b32.xlu0 %v2879_v49, %s2448_s19 }
 0x172   : > { %v2889_v50 = vpop.permute.xlu1 %688  ;;  %v2891_v9 = vpop.permute.xlu0 %507 }
 0x174   : > { %859 = vrot.lane.b32.xlu1 %v2873_v6, %s2451_s27  ;;  %1040 = vrot.lane.b32.xlu0 %v2873_v6, %s2450_s26 }
 0x176   : > { %v2899_v19 = vpop.permute.xlu1 %1022  ;;  %v2901_v23 = vpop.permute.xlu0 %841 }
 0x178   : > { %883 = vrot.lane.b32.xlu1 %v2879_v49, %s2451_s27  ;;  %1064 = vrot.lane.b32.xlu0 %v2879_v49, %s2450_s26 }
 0x17a   : > { %v2911_v37 = vpop.permute.xlu1 %1046  ;;  %v2913_v41 = vpop.permute.xlu0 %865 }
 0x17c   : > { %672 = vrot.lane.b32.xlu1 %v2907_v29, %s2448_s19  ;;  %491 = vrot.lane.b32.xlu0 %v2907_v29, %s2449_s24 }
 0x17e   : > { %v2921_v51 = vpop.permute.xlu1 %676  ;;  %v2923_v0 = vpop.permute.xlu0 %495 }
 0x180   : > { %696 = vrot.lane.b32.xlu1 %v2919_v52, %s2448_s19  ;;  %515 = vrot.lane.b32.xlu0 %v2919_v52, %s2449_s24 }
 0x182   : > { %v2929_v53 = vpop.permute.xlu1 %700  ;;  %v2931_v14 = vpop.permute.xlu0 %519 }
 0x184   : > { %1030 = vrot.lane.b32.xlu1 %v2907_v29, %s2450_s26  ;;  %849 = vrot.lane.b32.xlu0 %v2907_v29, %s2451_s27 }
 0x186   : > { %v2939_v63 = vpop.permute.xlu1 %1034  ;;  %v2941_v35 = vpop.permute.xlu0 %853 }
 0x188   : > { %1054 = vrot.lane.b32.xlu1 %v2919_v52, %s2450_s26  ;;  %873 = vrot.lane.b32.xlu0 %v2919_v52, %s2451_s27 }
 0x18a   : > { %v2951_v21 = vpop.permute.xlu1 %1058  ;;  %v2953_v40 = vpop.permute.xlu0 %877 }
 0x18c   : > { %684 = vrot.lane.b32.xlu1 %v2947_v33, %s2448_s19  ;;  %503 = vrot.lane.b32.xlu0 %v2947_v33, %s2449_s24 }
 0x18e   : > { %v2961_v48 = vpop.permute.xlu1 %485  ;;  %v2963_v28 = vpop.permute.xlu0 %666 }
 0x18f   : > { %5630 = vst [vmem:[#allocation37_spill] sm:$0xff] %v2963_v28 }
 0x190   : > { %708 = vrot.lane.b32.xlu1 %v2959_v54, %s2448_s19  ;;  %527 = vrot.lane.b32.xlu0 %v2959_v54, %s2449_s24 }
 0x192   : > { %v2969_v55 = vpop.permute.xlu1 %509  ;;  %v2971_v22 = vpop.permute.xlu0 %690 }
 0x194   : > { %1042 = vrot.lane.b32.xlu1 %v2947_v33, %s2450_s26  ;;  %861 = vrot.lane.b32.xlu0 %v2947_v33, %s2451_s27 }
 0x196   : > { %v2979_v30 = vpop.permute.xlu1 %843  ;;  %v2981_v32 = vpop.permute.xlu0 %1024 }
 0x197   : > { %5631 = vst [vmem:[#allocation38_spill] sm:$0xff] %v2979_v30  ;;  %5632 = vst [vmem:[#allocation39_spill] sm:$0xff] %v2981_v32  ;;  %v3027_v30 = vmax.f32 %v365_v44, 0.0 }
 0x198   : > { %1066 = vrot.lane.b32.xlu1 %v2959_v54, %s2450_s26  ;;  %885 = vrot.lane.b32.xlu0 %v2959_v54, %s2451_s27 }
 0x19a   : > { %v2991_v27 = vpop.permute.xlu1 %867  ;;  %v2993_v39 = vpop.permute.xlu0 %1048 }
 0x19b   : > { %5633 = vst [vmem:[#allocation40_spill] sm:$0xff] %v2991_v27  ;;  %5634 = vst [vmem:[#allocation41_spill] sm:$0xff] %v2993_v39 }
 0x19c   : > { %493 = vrot.lane.b32.xlu1 %v2989_v18, %s2449_s24  ;;  %674 = vrot.lane.b32.xlu0 %v2989_v18, %s2448_s19 }
 0x19e   : > { %v3001_v32 = vpop.permute.xlu1 %497  ;;  %v3003_v15 = vpop.permute.xlu0 %678 }
 0x1a0   : > { %517 = vrot.lane.b32.xlu1 %v2999_v56, %s2449_s24  ;;  %698 = vrot.lane.b32.xlu0 %v2999_v56, %s2448_s19 }
 0x1a2   : > { %v3009_v57 = vpop.permute.xlu1 %521  ;;  %v3011_v47 = vpop.permute.xlu0 %702 }
 0x1a3   : > { %5636 = vst [vmem:[#allocation43_spill] sm:$0xff] %v3011_v47 }
 0x1a4   : > { %851 = vrot.lane.b32.xlu1 %v2989_v18, %s2451_s27  ;;  %1032 = vrot.lane.b32.xlu0 %v2989_v18, %s2450_s26 }
 0x1a6   : > { %v3019_v39 = vpop.permute.xlu1 %855  ;;  %v3021_v27 = vpop.permute.xlu0 %1036 }
 0x1a7   : > { %5637 = vst [vmem:[#allocation44_spill] sm:$0xff] %v3019_v39  ;;  %5638 = vst [vmem:[#allocation45_spill] sm:$0xff] %v3021_v27 }
 0x1a8   : > { %875 = vrot.lane.b32.xlu1 %v2999_v56, %s2451_s27  ;;  %1056 = vrot.lane.b32.xlu0 %v2999_v56, %s2450_s26 }
 0x1aa   : > { %v3031_v47 = vpop.permute.xlu1 %879  ;;  %v3033_v28 = vpop.permute.xlu0 %1060 }
 0x1ab   : > { %5639 = vst [vmem:[#allocation46_spill] sm:$0xff] %v3031_v47  ;;  %5640 = vst [vmem:[#allocation47_spill] sm:$0xff] %v3033_v28 }
 0x1ac   : > { %505 = vrot.lane.b32.xlu1 %v3027_v30, %s2449_s24  ;;  %686 = vrot.lane.b32.xlu0 %v3027_v30, %s2448_s19 }
 0x1ae   : > { %v3041_v27 = vpop.permute.xlu1 %668  ;;  %v3043_v39 = vpop.permute.xlu0 %487 }
 0x1af   : > { %5642 = vst [vmem:[#allocation49_spill] sm:$0xff] %v3041_v27  ;;  %5643 = vst [vmem:[#allocation50_spill] sm:$0xff] %v3043_v39 }
 0x1b0   : > { %529 = vrot.lane.b32.xlu1 %v3039_v60, %s2449_s24  ;;  %710 = vrot.lane.b32.xlu0 %v3039_v60, %s2448_s19 }
 0x1b2   : > { %v3049_v61 = vpop.permute.xlu1 %692  ;;  %v3051_v11 = vpop.permute.xlu0 %511 }
 0x1b3   : > { %5644 = vst [vmem:[#allocation51_spill] sm:$0xff] %v3049_v61  ;;  %5645 = vst [vmem:[#allocation52_spill] sm:$0xff] %v3051_v11 }
 0x1b4   : > { %863 = vrot.lane.b32.xlu1 %v3027_v30, %s2451_s27  ;;  %1044 = vrot.lane.b32.xlu0 %v3027_v30, %s2450_s26 }
 0x1b6   : > { %v3057_v36 = vpop.permute.xlu1 %1026  ;;  %v3059_v44 = vpop.permute.xlu0 %845 }
 0x1b7   : > { %5646 = vst [vmem:[#allocation53_spill] sm:$0xff] %v3057_v36  ;;  %5647 = vst [vmem:[#allocation54_spill] sm:$0xff] %v3059_v44 }
 0x1b8   : > { %887 = vrot.lane.b32.xlu1 %v3039_v60, %s2451_s27  ;;  %1068 = vrot.lane.b32.xlu0 %v3039_v60, %s2450_s26 }
 0x1ba   : > { %v3065_v28 = vpop.permute.xlu1 %1050  ;;  %v3067_v27 = vpop.permute.xlu0 %869 }
 0x1bb   : > { %5648 = vst [vmem:[#allocation55_spill] sm:$0xff] %v3065_v28  ;;  %5649 = vst [vmem:[#allocation56_spill] sm:$0xff] %v3067_v27  ;;  %v2452_v28 = vmov 5  }
 0x1bc   : > { %1136 = vperm.xlu1 %2345, %v2559_v2   ;;  %1132 = vperm.xlu0 %2346, %v2564_v3  }
 0x1be   : > { %v3071_v11 = vpop.permute.xlu1 %680  ;;  %v3073_v61 = vpop.permute.xlu0 %499 }
 0x1bf   : > { %5650 = vst [vmem:[#allocation57_spill] sm:$0xff] %v3071_v11  ;;  %5651 = vst [vmem:[#allocation58_spill] sm:$0xff] %v3073_v61 }
 0x1c0   : > { %1140 = vperm.xlu1 %2345, %v2570_v4   ;;  %1144 = vperm.xlu0 %2346, %v2591_v13  }
 0x1c2   : > { %v3077_v36 = vpop.permute.xlu1 %704  ;;  %v3079_v44 = vpop.permute.xlu0 %523 }
 0x1c3   : > { %5652 = vst [vmem:[#allocation59_spill] sm:$0xff] %v3077_v36  ;;  %5653 = vst [vmem:[#allocation60_spill] sm:$0xff] %v3079_v44 }
 0x1c4   : > { %1148 = vperm.xlu1 %2345, %v2599_v16   ;;  %2347 = vset.pattern.permute.xlu0 %v2452_v28 }
 0x1c5   : > { %1200 = vperm.xlu0 %2347, %v2552_v1  }
 0x1c6   : > { %v3083_v27 = vpop.permute.xlu1 %1038  ;;  %v3085_v47 = vpop.permute.xlu0 %857 }
 0x1c7   : > { %5654 = vst [vmem:[#allocation61_spill] sm:$0xff] %v3083_v27  ;;  %5655 = vst [vmem:[#allocation62_spill] sm:$0xff] %v3085_v47 }
 0x1c8   : > { %2348 = vset.pattern.permute.xlu1 %v2452_v28 }
 0x1c9   : > { %1204 = vperm.xlu1 %2348, %v2564_v3   ;;  %1212 = vperm.xlu0 %2347, %v2570_v4  }
 0x1ca   : > { %v3089_v11 = vpop.permute.xlu1 %1062  ;;  %v3091_v36 = vpop.permute.xlu0 %881 }
 0x1cb   : > { %5656 = vst [vmem:[#allocation63_spill] sm:$0xff] %v3089_v11  ;;  %5657 = vst [vmem:[#allocation64_spill] sm:$0xff] %v3091_v36  ;;  %v5423_v11 = vmov 6   ;;  %v5426_v36 = vmov 7  }
 0x1cd   : > { %1208 = vperm.xlu1 %2348, %v2559_v2   ;;  %1220 = vperm.xlu0 %2347, %v2599_v16  }
 0x1ce   : > { %v3095_v44 = vpop.permute.xlu1 %489  ;;  %v3097_v39 = vpop.permute.xlu0 %670 }
 0x1cf   : > { %5658 = vst [vmem:[#allocation65_spill] sm:$0xff] %v3095_v44  ;;  %5659 = vst [vmem:[#allocation66_spill] sm:$0xff] %v3097_v39 }
 0x1d1   : > { %1216 = vperm.xlu1 %2348, %v2591_v13   ;;  %1273 = vrot.lane.b32.xlu0 %v2718_v5, %s2453_s6 }
 0x1d2   : > { %v3102_v28 = vpop.permute.xlu1 %513  ;;  %v3104_v27 = vpop.permute.xlu0 %694  ;;  %2350 = vset.pattern.permute.xlu0 %v5423_v11 }
 0x1d3   : > { %5660 = vst [vmem:[#allocation67_spill] sm:$0xff] %v3102_v28  ;;  %5661 = vst [vmem:[#allocation68_spill] sm:$0xff] %v3104_v27 }
 0x1d5   : > { %1271 = vrot.lane.b32.xlu1 %v2648_v38, %s2453_s6  ;;  %1381 = vperm.xlu0 %2350, %v2564_v3  }
 0x1d6   : > { %v3110_v44 = vpop.permute.xlu1 %847  ;;  %v3112_v39 = vpop.permute.xlu0 %1028  ;;  %2349 = vset.pattern.permute.xlu1 %v5423_v11 }
 0x1d7   : > { %5662 = vst [vmem:[#allocation69_spill] sm:$0xff] %v3110_v44  ;;  %5663 = vst [vmem:[#allocation70_spill] sm:$0xff] %v3112_v39 }
 0x1d9   : > { %1377 = vperm.xlu1 %2349, %v2552_v1   ;;  %1385 = vperm.xlu0 %2350, %v2559_v2  }
 0x1da   : > { %v3117_v28 = vpop.permute.xlu1 %871  ;;  %v3119_v27 = vpop.permute.xlu0 %1052 }
 0x1db   : > { %5664 = vst [vmem:[#allocation71_spill] sm:$0xff] %v3117_v28  ;;  %5665 = vst [vmem:[#allocation72_spill] sm:$0xff] %v3119_v27 }
 0x1dd   : > { %2351 = vset.pattern.permute.xlu1 %v5426_v36  ;;  %1285 = vrot.lane.b32.xlu0 %v2742_v12, %s2453_s6  ;;  %v5670_v36 = vmov 6  }
 0x1de   : > { %1558 = vperm.xlu1 %2351, %v2552_v1   ;;  %v3125_v44 = vpop.permute.xlu1 %501  ;;  %v3127_v39 = vpop.permute.xlu0 %682 }
 0x1df   : > { %5666 = vst [vmem:[#allocation73_spill] sm:$0xff] %v3125_v44  ;;  %5667 = vst [vmem:[#allocation74_spill] sm:$0xff] %v3127_v39 }
 0x1e1   : > { %1297 = vrot.lane.b32.xlu0 %v2724_v8, %s2453_s6 }
 0x1e2   : > { %1562 = vperm.xlu1 %2351, %v2564_v3   ;;  %v3132_v11 = vpop.permute.xlu1 %525  ;;  %v3134_v27 = vpop.permute.xlu0 %706 }
 0x1e3   : > { %5668 = vst [vmem:[#allocation75_spill] sm:$0xff] %v3132_v11  ;;  %5669 = vst [vmem:[#allocation76_spill] sm:$0xff] %v3134_v27  ;;  %v5437_v27 = vmov 8  }
 0x1e5   : > { %1309 = vrot.lane.b32.xlu0 %v2750_v17, %s2453_s6 }
 0x1e6   : > { %2352 = vset.pattern.permute.xlu1 %v5670_v36  ;;  %v3139_v28 = vpop.permute.xlu1 %859  ;;  %v3141_v47 = vpop.permute.xlu0 %1040 }
 0x1e7   : > { %5671 = vst [vmem:[#allocation77_spill] sm:$0xff] %v3139_v28  ;;  %5672 = vst [vmem:[#allocation78_spill] sm:$0xff] %v3141_v47  ;;  %1389 = vperm.xlu1 %2352, %v2570_v4  }
 0x1e9   : > { %1448 = vrot.lane.b32.xlu0 %v2648_v38, %s2456_s7 }
 0x1ea   : > { %v3146_v39 = vpop.permute.xlu1 %883  ;;  %v3148_v11 = vpop.permute.xlu0 %1064 }
 0x1eb   : > { %5673 = vst [vmem:[#allocation79_spill] sm:$0xff] %v3146_v39  ;;  %5674 = vst [vmem:[#allocation80_spill] sm:$0xff] %v3148_v11  ;;  %2353 = vset.pattern.permute.xlu1 %v5437_v27  ;;  %v5677_v39 = vmov 7  }
 0x1ec   : > { %1739 = vperm.xlu1 %2353, %v2564_v3  }
 0x1ed   : > { %1460 = vrot.lane.b32.xlu0 %v2694_v58, %s2456_s7 }
 0x1ee   : > { %v3154_v28 = vpop.permute.xlu1 %672  ;;  %v3156_v47 = vpop.permute.xlu0 %491 }
 0x1ef   : > { %5675 = vst [vmem:[#allocation81_spill] sm:$0xff] %v3154_v28  ;;  %5676 = vst [vmem:[#allocation82_spill] sm:$0xff] %v3156_v47 }
 0x1f0   : > { %1283 = vrot.lane.b32.xlu1 %v2694_v58, %s2453_s6 }
 0x1f1   : > { %1472 = vrot.lane.b32.xlu0 %v2654_v42, %s2456_s7  ;;  %2354 = vset.pattern.permute.xlu1 %v5677_v39 }
 0x1f2   : > { %v3163_v11 = vpop.permute.xlu1 %696  ;;  %v3165_v27 = vpop.permute.xlu0 %515 }
 0x1f3   : > { %5678 = vst [vmem:[#allocation83_spill] sm:$0xff] %v3163_v11  ;;  %5679 = vst [vmem:[#allocation84_spill] sm:$0xff] %v3165_v27 }
 0x1f4   : > { %1295 = vrot.lane.b32.xlu1 %v2654_v42, %s2453_s6 }
 0x1f5   : > { %1484 = vrot.lane.b32.xlu0 %v2704_v62, %s2456_s7 }
 0x1f6   : > { %v3171_v28 = vpop.permute.xlu1 %1030  ;;  %v3173_v47 = vpop.permute.xlu0 %849 }
 0x1f7   : > { %5680 = vst [vmem:[#allocation85_spill] sm:$0xff] %v3171_v28  ;;  %5681 = vst [vmem:[#allocation86_spill] sm:$0xff] %v3173_v47  ;;  %v5450_v47 = vmov 9  }
 0x1f8   : > { %1307 = vrot.lane.b32.xlu1 %v2704_v62, %s2453_s6 }
 0x1f9   : > { %1393 = vperm.xlu0 %2350, %v2591_v13  }
 0x1fa   : > { %v3178_v44 = vpop.permute.xlu1 %1054  ;;  %v3180_v11 = vpop.permute.xlu0 %873 }
 0x1fb   : > { %5682 = vst [vmem:[#allocation87_spill] sm:$0xff] %v3178_v44  ;;  %5683 = vst [vmem:[#allocation88_spill] sm:$0xff] %v3180_v11 }
 0x1fc   : > { %1566 = vperm.xlu1 %2354, %v2559_v2  }
 0x1fd   : > { %2356 = vset.pattern.permute.xlu0 %v5677_v39 }
 0x1fe   : > { %v3184_v27 = vpop.permute.xlu1 %684  ;;  %1570 = vperm.xlu0 %2356, %v2570_v4   ;;  %v3187_v28 = vpop.permute.xlu0 %503 }
 0x1ff   : > { %5684 = vst [vmem:[#allocation89_spill] sm:$0xff] %v3184_v27  ;;  %5685 = vst [vmem:[#allocation90_spill] sm:$0xff] %v3187_v28 }
 0x200   : > { %2355 = vset.pattern.permute.xlu1 %v5450_v47 }
 0x201   : > { %1916 = vperm.xlu1 %2355, %v2552_v1  }
 0x202   : > { %v3191_v61 = vpop.permute.xlu1 %708  ;;  %1287 = vrot.lane.b32.xlu0 %v2801_v31, %s2453_s6  ;;  %v3195_v44 = vpop.permute.xlu0 %527 }
 0x203   : > { %5686 = vst [vmem:[#allocation91_spill] sm:$0xff] %v3191_v61  ;;  %5687 = vst [vmem:[#allocation92_spill] sm:$0xff] %v3195_v44 }
 0x205   : > { %1920 = vperm.xlu1 %2355, %v2564_v3  }
 0x206   : > { %v3198_v11 = vpop.permute.xlu1 %1042  ;;  %1299 = vrot.lane.b32.xlu0 %v2777_v24, %s2453_s6  ;;  %v3202_v28 = vpop.permute.xlu0 %861 }
 0x207   : > { %5688 = vst [vmem:[#allocation93_spill] sm:$0xff] %v3198_v11  ;;  %5689 = vst [vmem:[#allocation94_spill] sm:$0xff] %v3202_v28 }
 0x209   : > { %1450 = vrot.lane.b32.xlu1 %v2718_v5, %s2456_s7 }
 0x20a   : > { %v3206_v47 = vpop.permute.xlu1 %1066  ;;  %1311 = vrot.lane.b32.xlu0 %v2811_v34, %s2453_s6  ;;  %v3210_v61 = vpop.permute.xlu0 %885  ;;  %2357 = vset.pattern.permute.xlu1 %v5670_v36 }
 0x20b   : > { %5690 = vst [vmem:[#allocation95_spill] sm:$0xff] %v3206_v47  ;;  %5691 = vst [vmem:[#allocation96_spill] sm:$0xff] %v3210_v61 }
 0x20d   : > { %1462 = vrot.lane.b32.xlu1 %v2742_v12, %s2456_s7 }
 0x20e   : > { %v3215_v11 = vpop.permute.xlu1 %493  ;;  %1629 = vrot.lane.b32.xlu0 %v2648_v38, %s2459_s8  ;;  %v3219_v28 = vpop.permute.xlu0 %674 }
 0x20f   : > { %5692 = vst [vmem:[#allocation97_spill] sm:$0xff] %v3215_v11  ;;  %5693 = vst [vmem:[#allocation98_spill] sm:$0xff] %v3219_v28  ;;  %v5698_v28 = vmov 8  }
 0x211   : > { %1474 = vrot.lane.b32.xlu1 %v2724_v8, %s2456_s7 }
 0x212   : > { %1641 = vrot.lane.b32.xlu0 %v2694_v58, %s2459_s8  ;;  %v3225_v47 = vpop.permute.xlu1 %517  ;;  %v3227_v36 = vpop.permute.xlu0 %698 }
 0x213   : > { %5694 = vst [vmem:[#allocation99_spill] sm:$0xff] %v3225_v47  ;;  %5695 = vst [vmem:[#allocation100_spill] sm:$0xff] %v3227_v36 }
 0x215   : > { %1486 = vrot.lane.b32.xlu1 %v2750_v17, %s2456_s7 }
 0x216   : > { %1653 = vrot.lane.b32.xlu0 %v2654_v42, %s2459_s8  ;;  %v3233_v11 = vpop.permute.xlu1 %851  ;;  %v3235_v61 = vpop.permute.xlu0 %1032 }
 0x217   : > { %5696 = vst [vmem:[#allocation101_spill] sm:$0xff] %v3233_v11  ;;  %5697 = vst [vmem:[#allocation102_spill] sm:$0xff] %v3235_v61 }
 0x219   : > { %1397 = vperm.xlu1 %2357, %v2599_v16  }
 0x21a   : > { %1665 = vrot.lane.b32.xlu0 %v2704_v62, %s2459_s8  ;;  %v3243_v36 = vpop.permute.xlu1 %875  ;;  %v3245_v47 = vpop.permute.xlu0 %1056 }
 0x21b   : > { %5699 = vst [vmem:[#allocation103_spill] sm:$0xff] %v3243_v36  ;;  %5700 = vst [vmem:[#allocation104_spill] sm:$0xff] %v3245_v47 }
 0x21d   : > { %2358 = vset.pattern.permute.xlu1 %v5698_v28 }
 0x21e   : > { %1743 = vperm.xlu1 %2358, %v2559_v2   ;;  %1574 = vperm.xlu0 %2356, %v2591_v13   ;;  %v3252_v61 = vpop.permute.xlu1 %505  ;;  %v3254_v11 = vpop.permute.xlu0 %686 }
 0x21f   : > { %5701 = vst [vmem:[#allocation105_spill] sm:$0xff] %v3252_v61  ;;  %5702 = vst [vmem:[#allocation106_spill] sm:$0xff] %v3254_v11 }
 0x222   : > { %1275 = vrot.lane.b32.xlu1 %v2762_v20, %s2453_s6  ;;  %2359 = vset.pattern.permute.xlu0 %v5698_v28  ;;  %v3261_v47 = vpop.permute.xlu1 %529  ;;  %v3263_v36 = vpop.permute.xlu0 %710 }
 0x223   : > { %1735 = vperm.xlu0 %2359, %v2552_v1   ;;  %2360 = vset.pattern.permute.xlu1 %v5677_v39  ;;  %5703 = vst [vmem:[#allocation107_spill] sm:$0xff] %v3261_v47  ;;  %5704 = vst [vmem:[#allocation108_spill] sm:$0xff] %v3263_v36 }
 0x226   : > { %1277 = vrot.lane.b32.xlu1 %v2837_v43, %s2453_s6  ;;  %v3271_v39 = vpop.permute.xlu1 %863  ;;  %v3273_v11 = vpop.permute.xlu0 %1044 }
 0x227   : > { %1747 = vperm.xlu0 %2359, %v2570_v4   ;;  %5705 = vst [vmem:[#allocation109_spill] sm:$0xff] %v3271_v39  ;;  %5706 = vst [vmem:[#allocation110_spill] sm:$0xff] %v3273_v11 }
 0x22a   : > { %1289 = vrot.lane.b32.xlu1 %v2873_v6, %s2453_s6  ;;  %v3281_v36 = vpop.permute.xlu1 %887  ;;  %v3283_v47 = vpop.permute.xlu0 %1068 }
 0x22b   : > { %1452 = vrot.lane.b32.xlu0 %v2762_v20, %s2456_s7  ;;  %5707 = vst [vmem:[#allocation111_spill] sm:$0xff] %v3281_v36  ;;  %5708 = vst [vmem:[#allocation112_spill] sm:$0xff] %v3283_v47 }
 0x22e   : > { %1301 = vrot.lane.b32.xlu1 %v2847_v46, %s2453_s6 }
 0x22f   : > { %1464 = vrot.lane.b32.xlu0 %v2801_v31, %s2456_s7 }
 0x232   : > { %1313 = vrot.lane.b32.xlu1 %v2879_v49, %s2453_s6 }
 0x233   : > { %1476 = vrot.lane.b32.xlu0 %v2777_v24, %s2456_s7 }
 0x236   : > { %1631 = vrot.lane.b32.xlu1 %v2718_v5, %s2459_s8 }
 0x237   : > { %1488 = vrot.lane.b32.xlu0 %v2811_v34, %s2456_s7 }
 0x23a   : > { %1643 = vrot.lane.b32.xlu1 %v2742_v12, %s2459_s8 }
 0x23b   : > { %v3289_v11 = vpop.permute.xlu1 %1136  ;;  %1806 = vrot.lane.b32.xlu0 %v2648_v38, %s2460_s9  ;;  %v3293_v39 = vpop.permute.xlu0 %1132 }
 0x23c   : > { %5709 = vst [vmem:[#allocation113_spill] sm:$0xff] %v3293_v39 }
 0x23e   : > { %1655 = vrot.lane.b32.xlu1 %v2724_v8, %s2459_s8 }
 0x23f   : > { %v3297_v36 = vpop.permute.xlu1 %1140  ;;  %1818 = vrot.lane.b32.xlu0 %v2694_v58, %s2460_s9  ;;  %v3301_v47 = vpop.permute.xlu0 %1144 }
 0x240   : > { %5710 = vst [vmem:[#allocation114_spill] sm:$0xff] %v3297_v36  ;;  %5711 = vst [vmem:[#allocation115_spill] sm:$0xff] %v3301_v47  ;;  %v5716_v47 = vmov 9  }
 0x242   : > { %1667 = vrot.lane.b32.xlu1 %v2750_v17, %s2459_s8 }
 0x243   : > { %v3305_v61 = vpop.permute.xlu1 %1148  ;;  %1830 = vrot.lane.b32.xlu0 %v2654_v42, %s2460_s9 }
 0x244   : > { %5712 = vst [vmem:[#allocation116_spill] sm:$0xff] %v3305_v61  ;;  %v3309_v44 = vpop.permute.xlu0 %1200 }
 0x245   : > { %5713 = vst [vmem:[#allocation117_spill] sm:$0xff] %v3309_v44  ;;  %v5482_v44 = vmov 10  }
 0x246   : > { %1578 = vperm.xlu1 %2360, %v2599_v16  }
 0x247   : > { %1842 = vrot.lane.b32.xlu0 %v2704_v62, %s2460_s9 }
 0x248   : > { %v3314_v27 = vpop.permute.xlu1 %1204  ;;  %v3316_v58 = vpop.permute.xlu0 %1212 }
 0x249   : > { %5714 = vst [vmem:[#allocation118_spill] sm:$0xff] %v3314_v27  ;;  %5715 = vst [vmem:[#allocation119_spill] sm:$0xff] %v3316_v58 }
 0x24a   : > { %2361 = vset.pattern.permute.xlu1 %v5716_v47 }
 0x24b   : > { %1924 = vperm.xlu1 %2361, %v2559_v2   ;;  %1751 = vperm.xlu0 %2359, %v2591_v13  }
 0x24c   : > { %v3321_v61 = vpop.permute.xlu1 %1208  ;;  %v3323_v42 = vpop.permute.xlu0 %1220 }
 0x24d   : > { %5717 = vst [vmem:[#allocation120_spill] sm:$0xff] %v3323_v42 }
 0x24f   : > { %2362 = vset.pattern.permute.xlu1 %v5482_v44  ;;  %2363 = vset.pattern.permute.xlu0 %v5716_v47 }
 0x250   : > { %1988 = vperm.xlu1 %2362, %v2552_v1   ;;  %v3328_v27 = vpop.permute.xlu1 %1216  ;;  %1928 = vperm.xlu0 %2363, %v2570_v4   ;;  %v3331_v58 = vpop.permute.xlu0 %1273 }
 0x251   : > { %5718 = vst [vmem:[#allocation121_spill] sm:$0xff] %v3328_v27  ;;  %5719 = vst [vmem:[#allocation122_spill] sm:$0xff] %v3331_v58 }
 0x254   : > { %1992 = vperm.xlu1 %2362, %v2564_v3   ;;  %v3334_v2 = vpop.permute.xlu1 %1271  ;;  %1281 = vrot.lane.b32.xlu0 %v2989_v18, %s2453_s6  ;;  %v3338_v13 = vpop.permute.xlu0 %1381 }
 0x255   : > { %5720 = vst [vmem:[#allocation123_spill] sm:$0xff] %v3334_v2  ;;  %5721 = vst [vmem:[#allocation124_spill] sm:$0xff] %v3338_v13  ;;  %v454_v13 = vlaneseq }
 0x258   : > { %1454 = vrot.lane.b32.xlu1 %v2837_v43, %s2456_s7  ;;  %v3342_v44 = vpop.permute.xlu1 %1377  ;;  %1293 = vrot.lane.b32.xlu0 %v3027_v30, %s2453_s6  ;;  %v3346_v1 = vpop.permute.xlu0 %1385 }
 0x259   : > { %5722 = vst [vmem:[#allocation125_spill] sm:$0xff] %v3342_v44  ;;  %2364 = vset.pattern.permute.xlu1 %v5698_v28 }
 0x25c   : > { %1466 = vrot.lane.b32.xlu1 %v2873_v6, %s2456_s7  ;;  %1305 = vrot.lane.b32.xlu0 %v2999_v56, %s2453_s6  ;;  %v3353_v3 = vpop.permute.xlu0 %1285 }
 0x25d   : > { %5723 = vst [vmem:[#allocation126_spill] sm:$0xff] %v3353_v3  ;;  %v3355_v4 = vpop.permute.xlu1 %1558 }
 0x25e   : > { %5724 = vst [vmem:[#allocation127_spill] sm:$0xff] %v3355_v4 }
 0x260   : > { %1478 = vrot.lane.b32.xlu1 %v2847_v46, %s2456_s7  ;;  %1317 = vrot.lane.b32.xlu0 %v3039_v60, %s2453_s6  ;;  %v3361_v27 = vpop.permute.xlu0 %1297 }
 0x261   : > { %5725 = vst [vmem:[#allocation128_spill] sm:$0xff] %v3361_v27  ;;  %v3363_v42 = vpop.permute.xlu1 %1562 }
 0x262   : > { %5726 = vst [vmem:[#allocation129_spill] sm:$0xff] %v3363_v42 }
 0x264   : > { %1490 = vrot.lane.b32.xlu1 %v2879_v49, %s2456_s7  ;;  %1635 = vrot.lane.b32.xlu0 %v2837_v43, %s2459_s8  ;;  %v3369_v28 = vpop.permute.xlu0 %1309 }
 0x265   : > { %5727 = vst [vmem:[#allocation130_spill] sm:$0xff] %v3369_v28 }
 0x266   : > { %v3371_v44 = vpop.permute.xlu1 %1389 }
 0x267   : > { %5728 = vst [vmem:[#allocation131_spill] sm:$0xff] %v3371_v44  ;;  %v3387_v44 = vand.u32 127, %v454_v13 }
 0x268   : > { %1808 = vrot.lane.b32.xlu1 %v2718_v5, %s2460_s9  ;;  %1647 = vrot.lane.b32.xlu0 %v2873_v6, %s2459_s8  ;;  %v3377_v4 = vpop.permute.xlu0 %1448 }
 0x269   : > { %5729 = vst [vmem:[#allocation132_spill] sm:$0xff] %v3377_v4  ;;  %v3401_v58 = vadd.s32 128, %v3387_v44  ;;  %vm5563_vm2 = vcmp.lt.s32.totalorder %v3387_v44, 16  ;;  %vm5561_vm5 = vcmp.lt.s32.totalorder %v3387_v44, 17  ;;  %vm5557_vm14 = vcmp.lt.s32.totalorder %v3387_v44, 1 }
 0x26a   : > { %v719_v62 = vsel %vm5563_vm2, %v2921_v51, %v2889_v50  ;;  %v550_v39 = vsel %vm5561_vm5, %v2931_v14, %v2883_v10  ;;  %vm5562_vm0 = vcmp.lt.s32.totalorder %v3387_v44, 15  ;;  %vm5535_vm1 = vcmp.lt.s32.totalorder %v3387_v44, 127 }
 0x26b   : > { %v3379_v42 = vpop.permute.xlu1 %1739 }
 0x26c   : > { %5730 = vst [vmem:[#allocation133_spill] sm:$0xff] %v3379_v42  ;;  %1820 = vrot.lane.b32.xlu1 %v2742_v12, %s2460_s9  ;;  %1659 = vrot.lane.b32.xlu0 %v2847_v46, %s2459_s8  ;;  %v3385_v28 = vpop.permute.xlu0 %1460  ;;  %v457_v42 = vadd.s32 256, %v3387_v44 }
 0x26d   : > { %5731 = vst [vmem:[#allocation134_spill] sm:$0xff] %v3385_v28 }
 0x26e   : > { %v461_v28 = vand.u32 255, %v457_v42 }
 0x26f   : > { %v3389_v27 = vpop.permute.xlu1 %1283 }
 0x270   : > { %5732 = vst [vmem:[#allocation135_spill] sm:$0xff] %v3389_v27  ;;  %1832 = vrot.lane.b32.xlu1 %v2724_v8, %s2460_s9  ;;  %1671 = vrot.lane.b32.xlu0 %v2879_v49, %s2459_s8  ;;  %v3395_v4 = vpop.permute.xlu0 %1472  ;;  %v3409_v27 = vadd.s32 384, %v3387_v44  ;;  %v5739_v8 = vmov 10   ;;  %vm3440_vm3 = vcmp.ge.s32.totalorder %v461_v28, 16  ;;  %v725_v49 = vsel %vm5563_vm2, %v2881_v7, %v2921_v51 }
 0x271   : > { %5733 = vst [vmem:[#allocation136_spill] sm:$0xff] %v3395_v4  ;;  %v459_v4 = vand.u32 255, %v3387_v44  ;;  %v747_v36 = vsel %vm3440_vm3, %v719_v62, 0.0  ;;  %v532_v62 = vsel %vm5561_vm5, %v2891_v9, %v2931_v14 }
 0x272   : > { %5736 = vst [vmem:[#allocation139_spill] sm:$0xff] %v3409_v27 }
 0x273   : > { %v3398_v2 = vpop.permute.xlu1 %1295  ;;  %v3424_v12 = vand.u32 15, %v459_v4  ;;  %vm3454_vm6 = vcmp.ge.s32.totalorder %v459_v4, 16  ;;  %v538_v4 = vsel %vm5561_vm5, %v2923_v0, %v2891_v9 }
 0x274   : > { %5734 = vst [vmem:[#allocation137_spill] sm:$0xff] %v3398_v2  ;;  %1844 = vrot.lane.b32.xlu1 %v2750_v17, %s2460_s9  ;;  %1936 = vperm.xlu0 %2363, %v2599_v16   ;;  %v3406_v13 = vpop.permute.xlu0 %1484  ;;  %v5508_v2 = vand.u32 255, %v3401_v58 }
 0x275   : > { %5735 = vst [vmem:[#allocation138_spill] sm:$0xff] %v3406_v13  ;;  %v3421_v13 = vand.u32 15, %v461_v28  ;;  %vm5520_vm7 = vcmp.ge.s32.totalorder %v3424_v12, 1  ;;  %v544_v28 = vsel %vm5561_vm5, %v2883_v10, %v2923_v0  ;;  %vm5534_vm11 = vcmp.le.s32.totalorder %v3424_v12, 14 }
 0x276   : > { %vm3501_vm13 = vmand %vm3454_vm6, %vm5520_vm7  ;;  %v5750_v0 = vmov 0  ;;  %v713_v10 = vsel %vm5563_vm2, %v2889_v50, %v2929_v53 }
 0x277   : > { %v3412_v3 = vpop.permute.xlu1 %1307  ;;  %vm5559_vm4 = vcmp.ge.s32.totalorder %v3421_v13, 1  ;;  %vm5528_vm8 = vcmp.le.s32.totalorder %v3421_v13, 14  ;;  %v5751_v0 = vsel %vm3501_vm13, 4294967295, %v5750_v0  ;;  %v568_v46 = vsel %vm3501_vm13, %v550_v39, 0.0 }
 0x278   : > { %5737 = vst [vmem:[#allocation140_spill] sm:$0xff] %v3412_v3  ;;  %1755 = vperm.xlu1 %2364, %v2599_v16   ;;  %1456 = vrot.lane.b32.xlu0 %v2907_v29, %s2456_s7  ;;  %v3418_v17 = vpop.permute.xlu0 %1393  ;;  %v3431_v16 = vand.u32 15, %v5508_v2  ;;  %v5743_v2 = vand.u32 255, %v3409_v27  ;;  %vm3471_vm10 = vmand %vm3440_vm3, %vm5559_vm4  ;;  %v796_v43 = vmul.f32 %v2779_v25, %v713_v10  ;;  %v616_v60 = vmul.f32 %v2781_v26, %v568_v46 }
 0x279   : > { %5738 = vst [vmem:[#allocation141_spill] sm:$0xff] %v3418_v17  ;;  %2367 = vset.pattern.permute.xlu0 %v5739_v8  ;;  %5752 = vst [vmem:[#allocation145_spill] sm:$0xff] %v5751_v0  ;;  %v570_v51 = vsel %vm3471_vm10, %v538_v4, 0.0  ;;  %v795_v4 = vmul.f32 %v2779_v25, %v747_v36  ;;  %v902_v36 = vsel %vm5562_vm0, %v2901_v23, %v2941_v35 }
 0x27a   : > { %v3448_v3 = vand.u32 15, %v5743_v2  ;;  %vm5560_vm9 = vcmp.ge.s32.totalorder %v3431_v16, 1  ;;  %vm5558_vm15 = vcmp.le.s32.totalorder %v3431_v16, 14  ;;  %vm3543_vm7 = vmand %vm3440_vm3, %vm5528_vm8  ;;  %v6067_v2 = vld [vmem:[#allocation109_spill] sm:$0xff] }
 0x27b   : > { %v3426_v5 = vpop.permute.xlu1 %1566  ;;  %v927_v10 = vsel %vm5558_vm15, %v902_v36, 0.0 }
 0x27c   : > { %1279 = vrot.lane.b32.xlu1 %v2907_v29, %s2453_s6  ;;  %1468 = vrot.lane.b32.xlu0 %v2947_v33, %s2456_s7  ;;  %vm5529_vm12 = vcmp.ge.s32.totalorder %v3448_v3, 1  ;;  %vm5573_vm8 = vcmp.le.s32.totalorder %v3448_v3, 14 }
 0x27d   : > { %v3437_v17 = vpop.permute.xlu0 %1570  ;;  %2365 = vset.pattern.permute.xlu1 %v5716_v47 }
 0x27e   : > { %5740 = vst [vmem:[#allocation142_spill] sm:$0xff] %v3437_v17  ;;  %v5744_v17 = vmov 0 }
 0x27f   : > { %v5745_v17 = vsel %vm3454_vm6, 4294967295, %v5744_v17 }
 0x280   : > { %5746 = vst [vmem:[#allocation143_spill] sm:$0xff] %v5745_v17  ;;  %1291 = vrot.lane.b32.xlu1 %v2947_v33, %s2453_s6  ;;  %v3463_v47 = vpop.permute.xlu1 %1916  ;;  %1480 = vrot.lane.b32.xlu0 %v2919_v52, %s2456_s7 }
 0x281   : > { %5747 = vst [vmem:[#allocation144_spill] sm:$0xff] %v3463_v47  ;;  %v731_v47 = vsel %vm5563_vm2, %v2929_v53, %v2881_v7  ;;  %v3488_v38 = vpop.permute.xlu0 %1287  ;;  %v569_v7 = vsel %vm5560_vm9, %v544_v28, 0.0  ;;  %v794_v28 = vmul.f32 %v2779_v25, %v725_v49  ;;  %v571_v53 = vsel %vm5529_vm12, %v532_v62, 0.0  ;;  %vm3574_vm12 = vmand %vm3454_vm6, %vm5534_vm11 }
 0x282   : > { %v745_v9 = vsel %vm3454_vm6, %v731_v47, 0.0  ;;  %v5754_v47 = vmov 0  ;;  %v896_v49 = vsel %vm5562_vm0, %v2941_v35, %v2913_v41  ;;  %v617_v62 = vmul.f32 %v2781_v26, %v569_v7 }
 0x283   : > { %v5755_v47 = vsel %vm3543_vm7, 4294967295, %v5754_v47  ;;  %v793_v6 = vmul.f32 %v2779_v25, %v745_v9  ;;  %v1083_v35 = vsel %vm5557_vm14, %v2899_v19, %v2939_v63  ;;  %v5757_v7 = vmov 0 }
 0x284   : > { %1303 = vrot.lane.b32.xlu1 %v2919_v52, %s2453_s6  ;;  %v3528_v14 = vpop.permute.xlu1 %1920  ;;  %1492 = vrot.lane.b32.xlu0 %v2959_v54, %s2456_s7  ;;  %5756 = vst [vmem:[#allocation147_spill] sm:$0xff] %v5755_v47  ;;  %v5758_v7 = vsel %vm3574_vm12, 4294967295, %v5757_v7  ;;  %v908_v25 = vsel %vm5562_vm0, %v2953_v40, %v2901_v23  ;;  %v928_v9 = vsel %vm3543_vm7, %v896_v49, 0.0  ;;  %v890_v23 = vsel %vm5562_vm0, %v2913_v41, %v2953_v40 }
 0x285   : > { %5753 = vst [vmem:[#allocation146_spill] sm:$0xff] %v3528_v14  ;;  %v1300_v50 = vpop.permute.xlu0 %1299  ;;  %v618_v14 = vmul.f32 %v2781_v26, %v570_v51  ;;  %5759 = vst [vmem:[#allocation148_spill] sm:$0xff] %v5758_v7  ;;  %v619_v51 = vmul.f32 %v2781_v26, %v571_v53  ;;  %v1104_v26 = vsel %vm5560_vm9, %v1083_v35, 0.0  ;;  %v926_v53 = vsel %vm3574_vm12, %v908_v25, 0.0 }
 0x286   : > { %v3558_v39 = vsel %vm5535_vm1, %v3488_v38, %v1300_v50  ;;  %v818_v36 = vadd.f32 %v794_v28, %v617_v62  ;;  %v975_v49 = vmul.f32 %v2845_v45, %v927_v10  ;;  %v976_v56 = vmul.f32 %v2845_v45, %v928_v9  ;;  %v5766_v9 = vld [vmem:[#allocation37_spill] sm:$0xff] }
 0x287   : > { %v929_v40 = vsel %vm5573_vm8, %v890_v23, 0.0  ;;  %v817_v35 = vadd.f32 %v793_v6, %v616_v60  ;;  %v1077_v28 = vsel %vm5557_vm14, %v2939_v63, %v2911_v37  ;;  %v1152_v25 = vmul.f32 %v2867_v59, %v1104_v26  ;;  %v5767_v23 = vld [vmem:[#allocation43_spill] sm:$0xff] }
 0x288   : > { %1315 = vrot.lane.b32.xlu1 %v2959_v54, %s2453_s6  ;;  %v3584_v46 = vpop.permute.xlu1 %1450  ;;  %1810 = vrot.lane.b32.xlu0 %v2762_v20, %s2460_s9  ;;  %v1071_v10 = vsel %vm5557_vm14, %v2911_v37, %v2951_v21  ;;  %v1089_v6 = vsel %vm5557_vm14, %v2951_v21, %v2899_v19  ;;  %v977_v60 = vmul.f32 %v2845_v45, %v929_v40  ;;  %v1105_v21 = vsel %vm5559_vm4, %v1077_v28, 0.0  ;;  %s2163_s6 = sld [smem:[#allocation2]] }
 0x289   : > { %5760 = vst [vmem:[#allocation149_spill] sm:$0xff] %v3584_v46  ;;  %v3597_v27 = vpop.permute.xlu0 %1311  ;;  %v539_v63 = vsel %vm5561_vm5, %v3001_v32, %v2969_v55  ;;  %v720_v37 = vsel %vm5563_vm2, %v3003_v15, %v2971_v22  ;;  %v999_v19 = vadd.f32 %v975_v49, %v818_v36  ;;  %vm5765_vm11 = vcmp.ge.s32.totalorder %v3424_v12, 1 }
 0x28a   : > { %v3602_v46 = vsel %vm5535_vm1, %v1300_v50, %v3597_v27  ;;  %v819_v50 = vadd.f32 %v795_v4, %v618_v14  ;;  %v545_v14 = vsel %vm5561_vm5, %v2961_v48, %v3001_v32  ;;  %v533_v4 = vsel %vm5561_vm5, %v2969_v55, %v3009_v57 }
 0x28b   : > { %5761 = vst [vmem:[#allocation150_spill] sm:$0xff] %v3602_v46  ;;  %v820_v46 = vadd.f32 %v796_v43, %v619_v51  ;;  %v974_v43 = vmul.f32 %v2845_v45, %v926_v53  ;;  %v1103_v32 = vsel %vm5765_vm11, %v1089_v6, 0.0  ;;  %v551_v55 = vsel %vm5561_vm5, %v3009_v57, %v2961_v48 }
 0x28c   : > { %1633 = vrot.lane.b32.xlu1 %v2762_v20, %s2459_s8  ;;  %v3614_v41 = vpop.permute.xlu1 %1462  ;;  %1822 = vrot.lane.b32.xlu0 %v2801_v31, %s2460_s9  ;;  %v1000_v45 = vadd.f32 %v976_v56, %v819_v50  ;;  %v726_v56 = vsel %vm5563_vm2, %v5766_v9, %v3003_v15  ;;  %v732_v26 = vsel %vm5563_vm2, %v5767_v23, %v5766_v9  ;;  %vm5769_vm1 = vcmp.ge.s32.totalorder %v3448_v3, 1  ;;  %v5772_v9 = vld [vmem:[#allocation44_spill] sm:$0xff] }
 0x28d   : > { %5762 = vst [vmem:[#allocation151_spill] sm:$0xff] %v3614_v41  ;;  %v3622_v62 = vpop.permute.xlu0 %1629  ;;  %v1106_v36 = vsel %vm5769_vm1, %v1071_v10, 0.0  ;;  %v573_v49 = vsel %vm5560_vm9, %v545_v14, 0.0  ;;  %v574_v15 = vsel %vm3471_vm10, %v539_v63, 0.0  ;;  %v751_v40 = vsel %vm3440_vm3, %v720_v37, 0.0  ;;  %vm5770_vm11 = vmmov %vm5769_vm1  ;;  %v5771_v10 = vld [vmem:[#allocation22_spill] sm:$0xff] }
 0x28e   : > { %5763 = vst [vmem:[#allocation152_spill] sm:$0xff] %v3622_v62  ;;  %v998_v48 = vadd.f32 %v974_v43, %v817_v35  ;;  %v1001_v57 = vadd.f32 %v977_v60, %v820_v46  ;;  %v575_v50 = vsel %vm5770_vm11, %v533_v4, 0.0  ;;  %v714_v28 = vsel %vm5563_vm2, %v2971_v22, %v5767_v23  ;;  %v5773_v37 = vld [vmem:[#allocation38_spill] sm:$0xff]  ;;  %v5775_v22 = vld [vmem:[#allocation13_spill] sm:$0xff]  ;;  %v5800_v41 = vld [vmem:[#allocation47_spill] sm:$0xff] }
 0x28f   : > { %v798_v6 = vmul.f32 %v5771_v10, %v726_v56  ;;  %v572_v14 = vsel %vm3501_vm13, %v551_v55, 0.0  ;;  %v749_v63 = vsel %vm3454_vm6, %v732_v26, 0.0  ;;  %v903_v46 = vsel %vm5562_vm0, %v5773_v37, %v5772_v9  ;;  %v5776_v56 = vld [vmem:[#allocation40_spill] sm:$0xff] }
 0x290   : > { %1645 = vrot.lane.b32.xlu1 %v2801_v31, %s2459_s8  ;;  %v3655_v51 = vpop.permute.xlu1 %1474  ;;  %1834 = vrot.lane.b32.xlu0 %v2777_v24, %s2460_s9  ;;  %v621_v43 = vmul.f32 %v5775_v22, %v573_v49  ;;  %v622_v60 = vmul.f32 %v5775_v22, %v574_v15  ;;  %v799_v4 = vmul.f32 %v5771_v10, %v751_v40  ;;  %vm5815_vm11 = vcmp.lt.s32.totalorder %v3387_v44, 127 }
 0x291   : > { %5764 = vst [vmem:[#allocation153_spill] sm:$0xff] %v3655_v51  ;;  %v3673_v53 = vpop.permute.xlu0 %1641  ;;  %v897_v55 = vsel %vm5562_vm0, %v5772_v9, %v5776_v56  ;;  %v1153_v26 = vmul.f32 %v2867_v59, %v1105_v21  ;;  %v1151_v62 = vmul.f32 %v2867_v59, %v1103_v32  ;;  %v1154_v49 = vmul.f32 %v2867_v59, %v1106_v36 }
 0x292   : > { %5768 = vst [vmem:[#allocation37_spill] sm:$0xff] %v3673_v53  ;;  %v623_v53 = vmul.f32 %v5775_v22, %v575_v50  ;;  %v620_v15 = vmul.f32 %v5775_v22, %v572_v14  ;;  %v797_v40 = vmul.f32 %v5771_v10, %v749_v63  ;;  %v931_v51 = vsel %vm5558_vm15, %v903_v46, 0.0  ;;  %v5787_v63 = vld [vmem:[#allocation41_spill] sm:$0xff]  ;;  %v5788_v46 = vld [vmem:[#allocation58_spill] sm:$0xff] }
 0x293   : > { %v3722_v9 = vadd.f32 %v1152_v25, %v999_v19  ;;  %v3726_v21 = vadd.f32 %v1151_v62, %v998_v48  ;;  %v932_v32 = vsel %vm3543_vm7, %v897_v55, 0.0  ;;  %v3736_v36 = vadd.f32 %v1154_v49, %v1001_v57  ;;  %v5783_v19 = vld [vmem:[#allocation45_spill] sm:$0xff]  ;;  %v5791_v55 = vld [vmem:[#allocation51_spill] sm:$0xff] }
 0x294   : > { %1657 = vrot.lane.b32.xlu1 %v2777_v24, %s2459_s8  ;;  %v3700_v35 = vpop.permute.xlu1 %1486  ;;  %1846 = vrot.lane.b32.xlu0 %v2811_v34, %s2460_s9  ;;  %v822_v50 = vadd.f32 %v798_v6, %v621_v43  ;;  %v3738_v25 = vadd.f32 %v799_v4, %v622_v60  ;;  %v1078_v57 = vsel %vm5557_vm14, %v5783_v19, %v5787_v63  ;;  %v5789_v6 = vld [vmem:[#allocation50_spill] sm:$0xff] }
 0x295   : > { %5774 = vst [vmem:[#allocation43_spill] sm:$0xff] %v3700_v35  ;;  %v3711_v23 = vpop.permute.xlu0 %1653  ;;  %v800_v35 = vmul.f32 %v5771_v10, %v714_v28  ;;  %5778 = vst [vmem:[#allocation44_spill] sm:$0xff] %v3722_v9  ;;  %v5786_v10 = vld [vmem:[#allocation23_spill] sm:$0xff]  ;;  %v546_v22 = vsel %vm5561_vm5, %v5789_v6, %v5788_v46  ;;  %v3757_v43 = vadd.f32 %v797_v40, %v620_v15  ;;  %v5790_v4 = vld [vmem:[#allocation46_spill] sm:$0xff] }
 0x296   : > { %5777 = vst [vmem:[#allocation22_spill] sm:$0xff] %v3711_v23  ;;  %v3724_v23 = vadd.f32 %v1153_v26, %v1000_v45  ;;  %5780 = vst [vmem:[#allocation13_spill] sm:$0xff] %v3726_v21  ;;  %v5784_v45 = vld [vmem:[#allocation39_spill] sm:$0xff]  ;;  %v979_v14 = vmul.f32 %v5786_v10, %v931_v51  ;;  %v3760_v60 = vmul.f32 %v5786_v10, %v932_v32  ;;  %v5792_v26 = vld [vmem:[#allocation57_spill] sm:$0xff] }
 0x297   : > { %5782 = vst [vmem:[#allocation154_spill] sm:$0xff] %v3736_v36  ;;  %v1084_v62 = vsel %vm5557_vm14, %v5784_v45, %v5783_v19  ;;  %v3746_v28 = vadd.f32 %v800_v35, %v623_v53  ;;  %v891_v51 = vsel %vm5562_vm0, %v5776_v56, %v5790_v4  ;;  %v909_v53 = vsel %vm5562_vm0, %v5790_v4, %v5773_v37  ;;  %v5793_v15 = vld [vmem:[#allocation49_spill] sm:$0xff]  ;;  %v5794_v56 = vld [vmem:[#allocation52_spill] sm:$0xff]  ;;  %v3789_v37 = vld [vmem:[%s5375_s3 + $0x20] sm:$0xff] }
 0x298   : > { %5779 = vst [vmem:[#allocation38_spill] sm:$0xff] %v3724_v23  ;;  %1669 = vrot.lane.b32.xlu1 %v2811_v34, %s2459_s8  ;;  %v3732_v59 = vpop.permute.xlu1 %1397  ;;  %1637 = vrot.lane.b32.xlu0 %v2907_v29, %s2459_s8  ;;  %v3772_v35 = vsel %vm5560_vm9, %v1084_v62, 0.0  ;;  %v721_v49 = vsel %vm5563_vm2, %v5792_v26, %v5791_v55  ;;  %v727_v40 = vsel %vm5563_vm2, %v5793_v15, %v5792_v26  ;;  %v3796_v19 = vsel %vm5559_vm4, %v1078_v57, 0.0  ;;  %v5795_v4 = vld [vmem:[#allocation59_spill] sm:$0xff]  ;;  %v5796_v26 = vld [vmem:[#allocation60_spill] sm:$0xff]  ;;  %v5804_v23 = vld [vmem:[#allocation54_spill] sm:$0xff] }
 0x299   : > { %5781 = vst [vmem:[#allocation40_spill] sm:$0xff] %v3732_v59  ;;  %v3744_v48 = vpop.permute.xlu0 %1665  ;;  %v540_v32 = vsel %vm5561_vm5, %v5788_v46, %v5794_v56  ;;  %v577_v62 = vsel %vm5560_vm9, %v546_v22, 0.0  ;;  %v733_v46 = vsel %vm5563_vm2, %v5795_v4, %v5793_v15  ;;  %v552_v59 = vsel %vm5561_vm5, %v5796_v26, %v5789_v6 }
 0x29a   : > { %5785 = vst [vmem:[#allocation45_spill] sm:$0xff] %v3744_v48  ;;  %v3812_v29 = vadd.f32 %v979_v14, %v822_v50  ;;  %v930_v57 = vsel %vm3574_vm12, %v909_v53, 0.0  ;;  %v933_v22 = vsel %vm5573_vm8, %v891_v51, 0.0  ;;  %v534_v15 = vsel %vm5561_vm5, %v5794_v56, %v5796_v26  ;;  %v5801_v14 = vld [vmem:[#allocation17_spill] sm:$0xff]  ;;  %v5802_v51 = vld [vmem:[#allocation15_spill] sm:$0xff]  ;;  %v5803_v26 = vld [vmem:[#allocation62_spill] sm:$0xff] }
 0x29b   : > { %v3826_v6 = vsel %vm5557_vm14, %v5787_v63, %v5800_v41  ;;  %v755_v50 = vsel %vm3440_vm3, %v721_v49, 0.0  ;;  %v578_v53 = vsel %vm3471_vm10, %v540_v32, 0.0  ;;  %v753_v36 = vsel %vm3454_vm6, %v733_v46, 0.0  ;;  %v5805_v32 = vld [vmem:[#allocation56_spill] sm:$0xff] }
 0x29c   : > { %1932 = vperm.xlu1 %2365, %v3789_v37   ;;  %1649 = vrot.lane.b32.xlu0 %v2947_v33, %s2459_s8  ;;  %5799 = vst [vmem:[#allocation41_spill] sm:$0xff] %v3812_v29  ;;  %v576_v56 = vsel %vm3501_vm13, %v552_v59, 0.0  ;;  %v904_v63 = vsel %vm5562_vm0, %v5804_v23, %v5803_v26  ;;  %v715_v49 = vsel %vm5563_vm2, %v5791_v55, %v5795_v4  ;;  %v2371_v46 = vld [vmem:[%s5375_s3 + $0x10] sm:$0xff]  ;;  %v5829_v29 = vand.u32 255, %v3401_v58 }
 0x29d   : > { %v3808_v48 = vpop.permute.xlu1 %1743  ;;  %v3810_v33 = vpop.permute.xlu0 %1574  ;;  %v898_v59 = vsel %vm5562_vm0, %v5803_v26, %v5805_v32  ;;  %v3868_v55 = vsel %vm5557_vm14, %v5800_v41, %v5784_v45  ;;  %v803_v4 = vmul.f32 %v5801_v14, %v755_v50  ;;  %v801_v9 = vmul.f32 %v5801_v14, %v753_v36 }
 0x29e   : > { %5797 = vst [vmem:[#allocation39_spill] sm:$0xff] %v3808_v48  ;;  %5798 = vst [vmem:[#allocation23_spill] sm:$0xff] %v3810_v33  ;;  %v802_v33 = vmul.f32 %v5801_v14, %v727_v40  ;;  %v625_v48 = vmul.f32 %v5802_v51, %v577_v62  ;;  %v579_v40 = vsel %vm5769_vm1, %v534_v15, 0.0  ;;  %v5806_v62 = vld [vmem:[#allocation64_spill] sm:$0xff]  ;;  %v626_v15 = vmul.f32 %v5802_v51, %v578_v53 }
 0x29f   : > { %v624_v21 = vmul.f32 %v5802_v51, %v576_v56  ;;  %v935_v41 = vsel %vm5558_vm15, %v904_v63, 0.0  ;;  %v804_v45 = vmul.f32 %v5801_v14, %v715_v49  ;;  %v627_v50 = vmul.f32 %v5802_v51, %v579_v40  ;;  %v5808_v56 = vld [vmem:[#allocation53_spill] sm:$0xff] }
 0x2a0   : > { %2366 = vset.pattern.permute.xlu1 %v5739_v8  ;;  %1661 = vrot.lane.b32.xlu0 %v2919_v52, %s2459_s8  ;;  %v910_v8 = vsel %vm5562_vm0, %v5806_v62, %v5804_v23  ;;  %v892_v23 = vsel %vm5562_vm0, %v5805_v32, %v5806_v62  ;;  %v936_v53 = vsel %vm3543_vm7, %v898_v59, 0.0  ;;  %v3894_v36 = vmul.f32 %v5786_v10, %v933_v22  ;;  %v5809_v62 = vld [vmem:[#allocation63_spill] sm:$0xff]  ;;  %v2372_v63 = vld [vmem:[%s5375_s3 + $0x18] sm:$0xff]  ;;  %v5813_v22 = vld [vmem:[#allocation26_spill] sm:$0xff] }
 0x2a1   : > { %1996 = vperm.xlu1 %2366, %v2371_v46   ;;  %v3862_v52 = vpop.permute.xlu1 %1275  ;;  %v3879_v46 = vmul.f32 %v5786_v10, %v930_v57  ;;  %v934_v32 = vsel %vm3574_vm12, %v910_v8, 0.0  ;;  %v826_v57 = vadd.f32 %v802_v33, %v625_v48  ;;  %v1091_v14 = vsel %vm5557_vm14, %v5809_v62, %v5808_v56  ;;  %v5811_v59 = vld [vmem:[#allocation55_spill] sm:$0xff]  ;;  %v5812_v10 = vld [vmem:[#allocation61_spill] sm:$0xff] }
 0x2a2   : > { %v3876_v26 = vpop.permute.xlu0 %1735  ;;  %v937_v51 = vsel %vm5573_vm8, %v892_v23, 0.0  ;;  %v827_v40 = vadd.f32 %v803_v4, %v626_v15  ;;  %v1079_v33 = vsel %vm5557_vm14, %v5812_v10, %v5811_v59  ;;  %v1085_v48 = vsel %vm5557_vm14, %v5808_v56, %v5812_v10  ;;  %v5821_v10 = vld [vmem:[#allocation74_spill] sm:$0xff] }
 0x2a3   : > { %5807 = vst [vmem:[#allocation58_spill] sm:$0xff] %v3876_v26  ;;  %v983_v8 = vmul.f32 %v5813_v22, %v935_v41  ;;  %v825_v26 = vadd.f32 %v801_v9, %v624_v21  ;;  %v1334_v4 = vsel %vm5815_vm11, %v3862_v52, %v3488_v38  ;;  %v828_v15 = vadd.f32 %v804_v45, %v627_v50  ;;  %v5819_v45 = vld [vmem:[#allocation65_spill] sm:$0xff] }
 0x2a4   : > { %1673 = vrot.lane.b32.xlu0 %v2959_v54, %s2459_s8  ;;  %v982_v54 = vmul.f32 %v5813_v22, %v934_v32  ;;  %v1073_v56 = vsel %vm5557_vm14, %v5811_v59, %v5809_v62  ;;  %vm5816_vm1 = vcmp.ge.s32.totalorder %v3424_v12, 1  ;;  %v985_v9 = vmul.f32 %v5813_v22, %v937_v51  ;;  %v5818_v32 = vld [vmem:[#allocation73_spill] sm:$0xff]  ;;  %v5820_v59 = vld [vmem:[#allocation68_spill] sm:$0xff] }
 0x2a5   : > { %2000 = vperm.xlu1 %2366, %v2372_v63   ;;  %v3905_v49 = vpop.permute.xlu1 %1277  ;;  %v984_v63 = vmul.f32 %v5813_v22, %v936_v53  ;;  %v1111_v41 = vsel %vm5816_vm1, %v1091_v14, 0.0  ;;  %v1112_v21 = vsel %vm5560_vm9, %v1085_v48, 0.0  ;;  %v5817_v53 = vld [vmem:[#allocation67_spill] sm:$0xff]  ;;  %v547_v50 = vsel %vm5561_vm5, %v5819_v45, %v5818_v32  ;;  %v5891_v47 = vld [vmem:[#allocation41_spill] sm:$0xff] }
 0x2a6   : > { %5810 = vst [vmem:[#allocation50_spill] sm:$0xff] %v3905_v49  ;;  %v3916_v23 = vpop.permute.xlu0 %1747  ;;  %v3938_v38 = vsel %vm5561_vm5, %v5818_v32, %v5817_v53  ;;  %v1159_v62 = vmul.f32 %v3289_v11, %v1111_v41  ;;  %v1113_v14 = vsel %vm5559_vm4, %v1079_v33, 0.0  ;;  %v1007_v51 = vadd.f32 %v983_v8, %v826_v57 }
 0x2a7   : > { %5814 = vst [vmem:[#allocation46_spill] sm:$0xff] %v3916_v23  ;;  %v3955_v48 = vsel %vm5563_vm2, %v5821_v10, %v5820_v59  ;;  %vm5822_vm11 = vcmp.le.s32.totalorder %v3424_v12, 14  ;;  %v1008_v41 = vadd.f32 %v984_v63, %v827_v40  ;;  %vm5823_vm1 = vcmp.ge.s32.totalorder %v3448_v3, 1 }
 0x2a8   : > { %2004 = vperm.xlu0 %2367, %v3789_v37   ;;  %v1360_v22 = vsel %vm5822_vm11, %v1334_v4, 0.0  ;;  %v1114_v23 = vsel %vm5823_vm1, %v1073_v56, 0.0  ;;  %v1006_v49 = vadd.f32 %v982_v54, %v825_v26  ;;  %v1231_v33 = vmul.f32 %v3321_v61, %v2762_v20  ;;  %v5824_v4 = vld [vmem:[#allocation66_spill] sm:$0xff]  ;;  %v5825_v56 = vld [vmem:[#allocation75_spill] sm:$0xff] }
 0x2a9   : > { %1458 = vrot.lane.b32.xlu1 %v2989_v18, %s2456_s7  ;;  %v3947_v37 = vpop.permute.xlu1 %1289  ;;  %v1009_v57 = vadd.f32 %v985_v9, %v828_v15  ;;  %v3967_v8 = vsel %vm5560_vm9, %v547_v50, 0.0  ;;  %v728_v40 = vsel %vm5563_vm2, %v5824_v4, %v5821_v10  ;;  %v1160_v54 = vmul.f32 %v3289_v11, %v1112_v21 }
 0x2aa   : > { %v3959_v32 = vpop.permute.xlu0 %1452  ;;  %v1183_v26 = vadd.f32 %v1159_v62, %v1006_v49  ;;  %v1408_v63 = vmul.f32 %v3346_v1, %v1360_v22  ;;  %v3989_v9 = vsel %vm5561_vm5, %v5825_v56, %v5819_v45  ;;  %vm5582_vm11 = vcmp.lt.s32.totalorder %v3387_v44, 113 }
 0x2ab   : > { %v1361_v50 = vsel %vm5558_vm15, %v3558_v39, 0.0  ;;  %vm5826_vm1 = vcmp.lt.s32.totalorder %v3387_v44, 127  ;;  %v1232_v62 = vmul.f32 %v3321_v61, %v2801_v31  ;;  %v1161_v39 = vmul.f32 %v3289_v11, %v1113_v14 }
 0x2ac   : > { %1816 = vrot.lane.b32.xlu0 %v2989_v18, %s2460_s9  ;;  %v1255_v10 = vadd.f32 %v1231_v33, %v1183_v26  ;;  %vm5828_vm14 = vmmov %vm5826_vm1  ;;  %v1162_v20 = vmul.f32 %v3289_v11, %v1114_v23  ;;  %vm5832_vm15 = vcmp.ge.s32.totalorder %v3424_v12, 1  ;;  %v5833_v11 = vld [vmem:[#allocation42_spill] sm:$0xff] }
 0x2ad   : > { %1470 = vrot.lane.b32.xlu1 %v3027_v30, %s2456_s7  ;;  %v1302_v15 = vpop.permute.xlu1 %1301  ;;  %v1340_v45 = vsel %vm5828_vm14, %v3597_v27, %v3862_v52  ;;  %v1184_v27 = vadd.f32 %v1160_v54, %v1007_v51  ;;  %v1409_v52 = vmul.f32 %v3346_v1, %v1361_v50  ;;  %v5834_v23 = vld [vmem:[#allocation150_spill] sm:$0xff]  ;;  %vm5835_vm14 = vcmp.le.s32.totalorder %v3421_v13, 14 }
 0x2ae   : > { %v3998_v49 = vsel %vm5826_vm1, %v3947_v37, %v1302_v15  ;;  %v1465_v21 = vpop.permute.xlu0 %1464  ;;  %vm4013_vm1 = vcmp.lt.s32.totalorder %v5829_v29, 240  ;;  %v1432_v33 = vadd.f32 %v1408_v63, %v1255_v10  ;;  %v1233_v29 = vmul.f32 %v3321_v61, %v2777_v24 }
 0x2af   : > { %5827 = vst [vmem:[#allocation51_spill] sm:$0xff] %v3998_v49  ;;  %v1511_v22 = vsel %vm5582_vm11, %v3959_v32, %v1465_v21  ;;  %v1362_v26 = vsel %vm5835_vm14, %v5834_v23, 0.0  ;;  %v1363_v51 = vsel %vm5573_vm8, %v1340_v45, 0.0  ;;  %v1234_v50 = vmul.f32 %v3321_v61, %v2811_v34  ;;  %vm4045_vm4 = vmand %vm4013_vm1, %vm5560_vm9 }
 0x2b0   : > { %v1541_v31 = vsel %vm5832_vm15, %v1511_v22, 0.0  ;;  %1828 = vrot.lane.b32.xlu0 %v3027_v30, %s2460_s9  ;;  %vm5836_vm15 = vcmp.lt.s32.totalorder %v3387_v44, 127  ;;  %v5838_v24 = vmov 0  ;;  %v1256_v10 = vadd.f32 %v1232_v62, %v1184_v27 }
 0x2b1   : > { %v1589_v14 = vmul.f32 %v3426_v5, %v1541_v31  ;;  %1482 = vrot.lane.b32.xlu1 %v5833_v11, %s2456_s7  ;;  %v4025_v58 = vpop.permute.xlu1 %1313  ;;  %v5839_v24 = vsel %vm4045_vm4, 4294967295, %v5838_v24  ;;  %v5842_v31 = vld [vmem:[#allocation139_spill] sm:$0xff]  ;;  %v1185_v34 = vadd.f32 %v1161_v39, %v1008_v41  ;;  %v1410_v27 = vmul.f32 %v3346_v1, %v1362_v26 }
 0x2b2   : > { %v4037_v54 = vsel %vm5836_vm15, %v1302_v15, %v4025_v58  ;;  %v1477_v63 = vpop.permute.xlu0 %1476  ;;  %5840 = vst [vmem:[#allocation49_spill] sm:$0xff] %v5839_v24  ;;  %v1186_v15 = vadd.f32 %v1162_v20, %v1009_v57  ;;  %v5843_v23 = vand.u32 255, %v5842_v31  ;;  %v1433_v62 = vadd.f32 %v1409_v52, %v1256_v10  ;;  %v5846_v20 = vld [vmem:[#allocation48_spill] sm:$0xff]  ;;  %v5855_v31 = vld [vmem:[#allocation69_spill] sm:$0xff] }
 0x2b3   : > { %5837 = vst [vmem:[#allocation57_spill] sm:$0xff] %v4037_v54  ;;  %v4049_v22 = vadd.f32 %v1589_v14, %v1432_v33  ;;  %v1505_v45 = vsel %vm5582_vm11, %v1465_v21, %v1477_v63  ;;  %v1411_v33 = vmul.f32 %v3346_v1, %v1363_v51  ;;  %v5847_v14 = vld [vmem:[#allocation19_spill] sm:$0xff]  ;;  %v535_v39 = vsel %vm5561_vm5, %v5817_v53, %v5825_v56  ;;  %v5848_v52 = vld [vmem:[#allocation76_spill] sm:$0xff] }
 0x2b4   : > { %vm4055_vm14 = vcmp.lt.s32.totalorder %v5843_v23, 240  ;;  %v1542_v61 = vsel %vm4045_vm4, %v1505_v45, 0.0  ;;  %1840 = vrot.lane.b32.xlu0 %v5833_v11, %s2460_s9  ;;  %v806_v41 = vmul.f32 %v5847_v14, %v728_v40  ;;  %v734_v26 = vsel %vm5563_vm2, %v5848_v52, %v5824_v4 }
 0x2b5   : > { %5841 = vst [vmem:[#allocation52_spill] sm:$0xff] %v4049_v22  ;;  %v1590_v57 = vmul.f32 %v3426_v5, %v1542_v61  ;;  %1494 = vrot.lane.b32.xlu1 %v5846_v20, %s2456_s7  ;;  %v4068_v21 = vpop.permute.xlu1 %1631  ;;  %v1257_v1 = vadd.f32 %v1233_v29, %v1185_v34  ;;  %vm5849_vm15 = vcmp.ge.s32.totalorder %v3448_v3, 1  ;;  %v5850_v10 = vmov 0  ;;  %v5854_v29 = vld [vmem:[#allocation77_spill] sm:$0xff]  ;;  %v5889_v22 = vld [vmem:[#allocation8_spill] sm:$0xff]  ;;  %s217_s7 = sand.u32 1, %s2433_s21  }
 0x2b6   : > { %v1489_v51 = vpop.permute.xlu0 %1488  ;;  %vm4083_vm9 = vmand %vm4055_vm14, %vm5849_vm15  ;;  %v1258_v40 = vadd.f32 %v1234_v50, %v1186_v15  ;;  %v580_v56 = vsel %vm3501_vm13, %v3989_v9, 0.0  ;;  %v905_v23 = vsel %vm5562_vm0, %v5855_v31, %v5854_v29  ;;  %vm5856_vm15 = vcmp.ge.s32.totalorder %v3421_v13, 1  ;;  %v5857_v61 = vld [vmem:[#allocation25_spill] sm:$0xff]  ;;  %s2182_s14 = scalar_lea.sflag [#allocation4], %s217_s7 }
 0x2b7   : > { %v5851_v10 = vsel %vm4083_vm9, 4294967295, %v5850_v10  ;;  %v4087_v45 = vadd.f32 %v1590_v57, %v1433_v62  ;;  %v1499_v53 = vsel %vm5582_vm11, %v1477_v63, %v1489_v51  ;;  %v1517_v4 = vsel %vm5582_vm11, %v1489_v51, %v3959_v32  ;;  %v5858_v57 = vld [vmem:[#allocation18_spill] sm:$0xff] }
 0x2b8   : > { %5852 = vst [vmem:[#allocation59_spill] sm:$0xff] %v5851_v10  ;;  %v1543_v50 = vsel %vm5856_vm15, %v1499_v53, 0.0  ;;  %v1544_v15 = vsel %vm4083_vm9, %v1517_v4, 0.0  ;;  %1852 = vrot.lane.b32.xlu0 %v5846_v20, %s2460_s9  ;;  %v1434_v63 = vadd.f32 %v1410_v27, %v1257_v1  ;;  %v1435_v32 = vadd.f32 %v1411_v33, %v1258_v40  ;;  %v5976_v10 = vld [vmem:[#allocation36_spill] sm:$0xff] }
 0x2b9   : > { %5853 = vst [vmem:[#allocation60_spill] sm:$0xff] %v4087_v45  ;;  %v1591_v34 = vmul.f32 %v3426_v5, %v1543_v50  ;;  %v1592_v9 = vmul.f32 %v3426_v5, %v1544_v15  ;;  %1812 = vrot.lane.b32.xlu1 %v5857_v61, %s2460_s9  ;;  %v4111_v62 = vpop.permute.xlu1 %1643  ;;  %v629_v51 = vmul.f32 %v5858_v57, %v3967_v8  ;;  %vm5859_vm15 = vcmp.ge.s32.totalorder %v3448_v3, 1  ;;  %v5866_v15 = vld [vmem:[#allocation79_spill] sm:$0xff] }
 0x2ba   : > { %v583_v53 = vsel %vm5859_vm15, %v535_v39, 0.0  ;;  %v716_v27 = vsel %vm5563_vm2, %v5820_v59, %v5848_v52  ;;  %v757_v33 = vsel %vm3454_vm6, %v734_v26, 0.0  ;;  %v4123_v5 = vpop.permute.xlu0 %1806  ;;  %v5860_v1 = vsel %vm3471_vm10, %v3938_v38, 0.0  ;;  %v5864_v26 = vld [vmem:[#allocation71_spill] sm:$0xff] }
 0x2bb   : > { %v630_v40 = vmul.f32 %v5858_v57, %v5860_v1  ;;  %v5861_v8 = vsel %vm3440_vm3, %v3955_v48, 0.0  ;;  %v4135_v4 = vadd.f32 %v1591_v34, %v1434_v63  ;;  %v4137_v59 = vadd.f32 %v1592_v9, %v1435_v32  ;;  %v5877_v45 = vld [vmem:[#allocation27_spill] sm:$0xff] }
 0x2bc   : > { %v807_v39 = vmul.f32 %v5847_v14, %v5861_v8  ;;  %v628_v52 = vmul.f32 %v5858_v57, %v580_v56  ;;  %v899_v50 = vsel %vm5562_vm0, %v5854_v29, %v5864_v26  ;;  %vm5865_vm15 = vcmp.le.s32.totalorder %v3431_v16, 14  ;;  %v5867_v29 = vld [vmem:[#allocation31_spill] sm:$0xff]  ;;  %v5871_v8 = vld [vmem:[#allocation78_spill] sm:$0xff] }
 0x2bd   : > { %5862 = vst [vmem:[#allocation47_spill] sm:$0xff] %v4135_v4  ;;  %5863 = vst [vmem:[#allocation17_spill] sm:$0xff] %v4137_v59  ;;  %v939_v38 = vsel %vm5865_vm15, %v905_v23, 0.0  ;;  %v911_v48 = vsel %vm5562_vm0, %v5866_v15, %v5855_v31  ;;  %v631_v63 = vmul.f32 %v5858_v57, %v583_v53  ;;  %v805_v32 = vmul.f32 %v5847_v14, %v757_v33  ;;  %v4159_v23 = vpop.permute.xlu1 %1655  ;;  %v5870_v33 = vld [vmem:[#allocation29_spill] sm:$0xff]  ;;  %v5876_v59 = vld [vmem:[#allocation80_spill] sm:$0xff] }
 0x2be   : > { %v808_v34 = vmul.f32 %v5847_v14, %v716_v27  ;;  %v893_v56 = vsel %vm5562_vm0, %v5864_v26, %v5866_v15  ;;  %1824 = vrot.lane.b32.xlu1 %v5867_v29, %s2460_s9  ;;  %v1004_v9 = vadd.f32 %v3760_v60, %v3738_v25  ;;  %v1002_v31 = vadd.f32 %v3879_v46, %v3757_v43  ;;  %v4171_v53 = vpop.permute.xlu0 %1818  ;;  %v5872_v25 = vld [vmem:[#allocation70_spill] sm:$0xff] }
 0x2bf   : > { %vm5868_vm15 = vcmp.ge.s32.totalorder %v3424_v12, 1  ;;  %vm5869_vm5 = vcmp.ge.s32.totalorder %v3448_v3, 1  ;;  %v940_v27 = vsel %vm3543_vm7, %v899_v50, 0.0  ;;  %v987_v1 = vmul.f32 %v5870_v33, %v939_v38 }
 0x2c0   : > { %v1107_v14 = vsel %vm5868_vm15, %v3868_v55, 0.0  ;;  %v1110_v57 = vsel %vm5869_vm5, %v3826_v6, 0.0  ;;  %vm5873_vm0 = vcmp.lt.s32.totalorder %v3387_v44, 1  ;;  %v938_v60 = vsel %vm3574_vm12, %v911_v48, 0.0  ;;  %v5874_v6 = vld [vmem:[#allocation72_spill] sm:$0xff] }
 0x2c1   : > { %v1086_v43 = vsel %vm5873_vm0, %v5872_v25, %v5871_v8  ;;  %v1005_v55 = vadd.f32 %v3894_v36, %v3746_v28  ;;  %v830_v46 = vadd.f32 %v806_v41, %v629_v51  ;;  %vm5875_vm5 = vmmov %vm5873_vm0  ;;  %v941_v50 = vsel %vm5573_vm8, %v893_v56, 0.0  ;;  %v4196_v28 = vpop.permute.xlu1 %1667 }
 0x2c2   : > { %v1080_v26 = vsel %vm5875_vm5, %v5871_v8, %v5874_v6  ;;  %v831_v38 = vadd.f32 %v807_v39, %v630_v40  ;;  %v829_v15 = vadd.f32 %v805_v32, %v628_v52  ;;  %v832_v4 = vadd.f32 %v808_v34, %v631_v63  ;;  %1836 = vrot.lane.b32.xlu1 %v5877_v45, %s2460_s9  ;;  %vm5879_vm5 = vmmov %vm5873_vm0  ;;  %v4206_v39 = vpop.permute.xlu0 %1830  ;;  %v5881_v34 = vld [vmem:[#allocation113_spill] sm:$0xff] }
 0x2c3   : > { %v1092_v48 = vsel %vm5873_vm0, %v5876_v59, %v5872_v25  ;;  %v988_v36 = vmul.f32 %v5870_v33, %v940_v27  ;;  %vm5878_vm15 = vcmp.ge.s32.totalorder %v3431_v16, 1  ;;  %v986_v51 = vmul.f32 %v5870_v33, %v938_v60 }
 0x2c4   : > { %v1116_v41 = vsel %vm5878_vm15, %v1086_v43, 0.0  ;;  %v1074_v40 = vsel %vm5879_vm5, %v5874_v6, %v5876_v59  ;;  %v1011_v52 = vadd.f32 %v987_v1, %v830_v46  ;;  %vm5880_vm0 = vcmp.ge.s32.totalorder %v3421_v13, 1  ;;  %v5884_v43 = vld [vmem:[#allocation114_spill] sm:$0xff]  ;;  %v5885_v46 = vld [vmem:[#allocation32_spill] sm:$0xff] }
 0x2c5   : > { %v1117_v63 = vsel %vm5880_vm0, %v1080_v26, 0.0  ;;  %v989_v32 = vmul.f32 %v5870_v33, %v941_v50  ;;  %v1155_v56 = vmul.f32 %v5881_v34, %v1107_v14  ;;  %vm5882_vm2 = vcmp.ge.s32.totalorder %v3424_v12, 1  ;;  %v4226_v6 = vpop.permute.xlu1 %1578  ;;  %v5887_v50 = vld [vmem:[#allocation6_spill] sm:$0xff] }
 0x2c6   : > { %v1115_v27 = vsel %vm5882_vm2, %v1092_v48, 0.0  ;;  %v1156_v8 = vmul.f32 %v5881_v34, %v3772_v35  ;;  %v1157_v25 = vmul.f32 %v5881_v34, %v3796_v19  ;;  %v1158_v59 = vmul.f32 %v5881_v34, %v1110_v57  ;;  %1848 = vrot.lane.b32.xlu1 %v5885_v46, %s2460_s9  ;;  %5886 = vst [vmem:[#allocation15_spill] sm:$0xff] %v4226_v6  ;;  %v5888_v57 = vld [vmem:[#allocation117_spill] sm:$0xff]  ;;  %v4231_v34 = vpop.permute.xlu0 %1842 }
 0x2c7   : > { %vm5883_vm15 = vcmp.ge.s32.totalorder %v3448_v3, 1  ;;  %v1163_v60 = vmul.f32 %v5884_v43, %v1115_v27  ;;  %v1164_v33 = vmul.f32 %v5884_v43, %v1116_v41  ;;  %v1165_v14 = vmul.f32 %v5884_v43, %v1117_v63  ;;  %v5890_v63 = vld [vmem:[#allocation7_spill] sm:$0xff] }
 0x2c8   : > { %v1118_v1 = vsel %vm5883_vm15, %v1074_v40, 0.0  ;;  %v1012_v35 = vadd.f32 %v988_v36, %v831_v38  ;;  %v1010_v26 = vadd.f32 %v986_v51, %v829_v15  ;;  %v1223_v48 = vmul.f32 %v5888_v57, %v5887_v50  ;;  %v5892_v15 = vld [vmem:[#allocation9_spill] sm:$0xff]  ;;  %v5893_v51 = vld [vmem:[#allocation10_spill] sm:$0xff] }
 0x2c9   : > { %v1166_v19 = vmul.f32 %v5884_v43, %v1118_v1  ;;  %v1013_v40 = vadd.f32 %v989_v32, %v832_v4  ;;  %v1179_v27 = vadd.f32 %v1155_v56, %v1002_v31  ;;  %v1224_v41 = vmul.f32 %v5888_v57, %v5889_v22  ;;  %v5894_v1 = vld [vmem:[#allocation118_spill] sm:$0xff]  ;;  %v5895_v22 = vld [vmem:[#allocation12_spill] sm:$0xff]  ;;  %v5896_v32 = vld [vmem:[#allocation11_spill] sm:$0xff] }
 0x2ca   : > { %v1225_v7 = vmul.f32 %v5888_v57, %v5890_v63  ;;  %v1180_v0 = vadd.f32 %v1156_v8, %v5891_v47  ;;  %v1181_v6 = vadd.f32 %v1157_v25, %v1004_v9  ;;  %v1182_v38 = vadd.f32 %v1158_v59, %v1005_v55  ;;  %1639 = vrot.lane.b32.xlu1 %v2989_v18, %s2459_s8  ;;  %v5897_v9 = vld [vmem:[#allocation13_spill] sm:$0xff]  ;;  %v4249_v8 = vpop.permute.xlu1 %1924  ;;  %v4251_v25 = vpop.permute.xlu0 %1751  ;;  %v5900_v59 = vld [vmem:[#allocation14_spill] sm:$0xff] }
 0x2cb   : > { %v1226_v36 = vmul.f32 %v5888_v57, %v5892_v15  ;;  %v1227_v43 = vmul.f32 %v5894_v1, %v5893_v51  ;;  %v1187_v50 = vadd.f32 %v1163_v60, %v1010_v26  ;;  %v1188_v17 = vadd.f32 %v1164_v33, %v1011_v52  ;;  %5898 = vst [vmem:[#allocation62_spill] sm:$0xff] %v4249_v8  ;;  %v5901_v60 = vld [vmem:[#allocation126_spill] sm:$0xff]  ;;  %v5907_v15 = vld [vmem:[#allocation135_spill] sm:$0xff] }
 0x2cc   : > { %v1189_v4 = vadd.f32 %v1165_v14, %v1012_v35  ;;  %v1228_v31 = vmul.f32 %v5894_v1, %v5895_v22  ;;  %v1229_v47 = vmul.f32 %v5894_v1, %v5896_v32  ;;  %v1247_v55 = vadd.f32 %v1223_v48, %v5897_v9  ;;  %5899 = vst [vmem:[#allocation54_spill] sm:$0xff] %v4251_v25  ;;  %v5902_v33 = vld [vmem:[#allocation122_spill] sm:$0xff]  ;;  %v5904_v35 = vld [vmem:[#allocation44_spill] sm:$0xff]  ;;  %v5906_v48 = vld [vmem:[#allocation119_spill] sm:$0xff] }
 0x2cd   : > { %v1190_v56 = vadd.f32 %v1166_v19, %v1013_v40  ;;  %v1230_v52 = vmul.f32 %v5894_v1, %v5900_v59  ;;  %vm5903_vm2 = vcmp.lt.s32.totalorder %v3387_v44, 127  ;;  %v1248_v26 = vadd.f32 %v1224_v41, %v5904_v35  ;;  %v5905_v57 = vld [vmem:[#allocation38_spill] sm:$0xff]  ;;  %v5908_v51 = vld [vmem:[#allocation123_spill] sm:$0xff]  ;;  %v5911_v59 = vld [vmem:[#allocation137_spill] sm:$0xff] }
 0x2ce   : > { %v1333_v14 = vsel %vm5903_vm2, %v5902_v33, %v5901_v60  ;;  %v4261_v63 = vadd.f32 %v1225_v7, %v5905_v57  ;;  %v1235_v19 = vmul.f32 %v5906_v48, %v5857_v61  ;;  %v1236_v40 = vmul.f32 %v5906_v48, %v5867_v29  ;;  %vm5909_vm5 = vmmov %vm5903_vm2  ;;  %v5910_v22 = vld [vmem:[#allocation154_spill] sm:$0xff]  ;;  %1651 = vrot.lane.b32.xlu1 %v3027_v30, %s2459_s8  ;;  %v5914_v35 = vld [vmem:[#allocation128_spill] sm:$0xff] }
 0x2cf   : > { %v1332_v1 = vsel %vm5909_vm5, %v5908_v51, %v5907_v15  ;;  %v4272_v32 = vadd.f32 %v1226_v36, %v5910_v22  ;;  %v1237_v41 = vmul.f32 %v5906_v48, %v5877_v45  ;;  %v1238_v7 = vmul.f32 %v5906_v48, %v5885_v46  ;;  %vm5912_vm0 = vmmov %vm5903_vm2  ;;  %v5933_v25 = vld [vmem:[#allocation138_spill] sm:$0xff] }
 0x2d0   : > { %v1251_v9 = vadd.f32 %v1227_v43, %v1179_v27  ;;  %v1326_v61 = vsel %vm5912_vm0, %v5907_v15, %v5911_v59  ;;  %vm5913_vm15 = vcmp.le.s32.totalorder %v3424_v12, 14  ;;  %v1252_v36 = vadd.f32 %v1228_v31, %v1180_v0  ;;  %vm5915_vm2 = vmmov %vm5912_vm0  ;;  %v5916_v27 = vld [vmem:[#allocation130_spill] sm:$0xff]  ;;  %v5919_v15 = vld [vmem:[#allocation140_spill] sm:$0xff]  ;;  %v4300_v31 = vpop.permute.xlu1 %1988 }
 0x2d1   : > { %v1356_v29 = vsel %vm5913_vm15, %v1333_v14, 0.0  ;;  %v1327_v45 = vsel %vm5915_vm2, %v5901_v60, %v5914_v35  ;;  %v1253_v57 = vadd.f32 %v1229_v47, %v1181_v6  ;;  %v1254_v46 = vadd.f32 %v1230_v52, %v1182_v38  ;;  %vm5917_vm5 = vmmov %vm5912_vm0  ;;  %v4302_v14 = vpop.permute.xlu0 %1928  ;;  %v5923_v60 = vld [vmem:[#allocation124_spill] sm:$0xff] }
 0x2d2   : > { %v1321_v43 = vsel %vm5917_vm5, %v5914_v35, %v5916_v27  ;;  %vm5918_vm0 = vmmov %vm5913_vm15  ;;  %5921 = vst [vmem:[#allocation56_spill] sm:$0xff] %v4302_v14  ;;  %v1339_v6 = vsel %vm5915_vm2, %v5916_v27, %v5902_v33  ;;  %vm5922_vm8 = vcmp.le.s32.totalorder %v3431_v16, 14  ;;  %v4310_v47 = vadd.f32 %v1235_v19, %v1187_v50  ;;  %1663 = vrot.lane.b32.xlu1 %v5833_v11, %s2459_s8  ;;  %v5928_v33 = vld [vmem:[#allocation132_spill] sm:$0xff] }
 0x2d3   : > { %v1352_v48 = vsel %vm5918_vm0, %v1332_v1, 0.0  ;;  %vm5920_vm15 = vmmov %vm5915_vm2  ;;  %v1353_v38 = vsel %vm5922_vm8, %v1326_v61, 0.0  ;;  %v4312_v52 = vadd.f32 %v1236_v40, %v1188_v17  ;;  %v1404_v1 = vmul.f32 %v5923_v60, %v1356_v29  ;;  %v5927_v17 = vld [vmem:[#allocation134_spill] sm:$0xff]  ;;  %v5929_v40 = vld [vmem:[#allocation125_spill] sm:$0xff] }
 0x2d4   : > { %v1320_v0 = vsel %vm5920_vm15, %v5911_v59, %v5919_v15  ;;  %vm5924_vm5 = vmmov %vm5922_vm8  ;;  %v4321_v35 = vadd.f32 %v1237_v41, %v1189_v4  ;;  %vm5926_vm8 = vcmp.le.s32.totalorder %v3421_v13, 14  ;;  %v1509_v19 = vsel %vm5582_vm11, %v5928_v33, %v5927_v17 }
 0x2d5   : > { %v1357_v22 = vsel %vm5924_vm5, %v1327_v45, 0.0  ;;  %vm5925_vm0 = vmmov %vm5915_vm2  ;;  %v1358_v50 = vsel %vm5926_vm8, %v1321_v43, 0.0  ;;  %v1400_v61 = vmul.f32 %v5929_v40, %v1352_v48  ;;  %vm5931_vm2 = vcmp.le.s32.totalorder %v3448_v3, 14  ;;  %v4343_v43 = vpop.permute.xlu1 %1992 }
 0x2d6   : > { %v1338_v59 = vsel %vm5925_vm0, %v5919_v15, %v5908_v51  ;;  %vm5930_vm15 = vmmov %vm5926_vm8  ;;  %v1359_v4 = vsel %vm5931_vm2, %v1339_v6, 0.0  ;;  %v5932_v51 = vld [vmem:[#allocation136_spill] sm:$0xff]  ;;  %v1401_v45 = vmul.f32 %v5929_v40, %v1353_v38  ;;  %v4341_v27 = vadd.f32 %v1238_v7, %v1190_v56  ;;  %v4345_v15 = vpop.permute.xlu0 %1281  ;;  %1675 = vrot.lane.b32.xlu1 %v5846_v20, %s2459_s8  ;;  %s2259_s8 = sshll.u32 %s217_s7, 5 }
 0x2d7   : > { %v1354_v29 = vsel %vm5930_vm15, %v1320_v0, 0.0  ;;  %v1503_v41 = vsel %vm5582_vm11, %v5927_v17, %v5932_v51  ;;  %v1405_v48 = vmul.f32 %v5923_v60, %v1357_v22  ;;  %v1497_v0 = vsel %vm5582_vm11, %v5932_v51, %v5933_v25  ;;  %vm5934_vm5 = vmmov %vm5931_vm2  ;;  %v5935_v17 = vld [vmem:[#allocation50_spill] sm:$0xff] }
 0x2d8   : > { %v1355_v6 = vsel %vm5934_vm5, %v1338_v59, 0.0  ;;  %v1335_v56 = vsel %vm5925_vm0, %v5935_v17, %v3947_v37  ;;  %v1406_v7 = vmul.f32 %v5923_v60, %v1358_v50  ;;  %vm5936_vm8 = vcmp.ge.s32.totalorder %v3424_v12, 1 }
 0x2d9   : > { %v1533_v38 = vsel %vm5936_vm8, %v1509_v19, 0.0  ;;  %v1515_v22 = vsel %vm5582_vm11, %v5933_v25, %v5928_v33  ;;  %v1402_v51 = vmul.f32 %v5929_v40, %v1354_v29  ;;  %v4368_v59 = vadd.f32 %v1404_v1, %v1251_v9  ;;  %v4378_v33 = vpop.permute.xlu1 %1454  ;;  %v5939_v1 = vld [vmem:[#allocation127_spill] sm:$0xff] }
 0x2da   : > { %v1407_v14 = vmul.f32 %v5923_v60, %v1359_v4  ;;  %v1424_v37 = vadd.f32 %v1400_v61, %v1247_v55  ;;  %v1534_v50 = vsel %vm4045_vm4, %v1503_v41, 0.0  ;;  %v1425_v8 = vadd.f32 %v1401_v45, %v1248_v26  ;;  %v1294_v29 = vpop.permute.xlu0 %1293  ;;  %v5942_v41 = vld [vmem:[#allocation149_spill] sm:$0xff] }
 0x2db   : > { %vm5937_vm15 = vcmp.ge.s32.totalorder %v3421_v13, 1  ;;  %v1403_v11 = vmul.f32 %v5929_v40, %v1355_v6  ;;  %vm5938_vm2 = vcmp.le.s32.totalorder %v3424_v12, 14  ;;  %v4380_v9 = vadd.f32 %v1405_v48, %v1252_v36  ;;  %v5941_v36 = vld [vmem:[#allocation151_spill] sm:$0xff] }
 0x2dc   : > { %v1535_v19 = vsel %vm5937_vm15, %v1497_v0, 0.0  ;;  %v1364_v25 = vsel %vm5938_vm2, %v1335_v56, 0.0  ;;  %v1581_v60 = vmul.f32 %v5939_v1, %v1533_v38  ;;  %v1536_v55 = vsel %vm4083_vm9, %v1515_v22, 0.0  ;;  %v2373_v48 = vld [vmem:[%s5375_s3 + $0x28] sm:$0xff]  ;;  %vm5947_vm2 = vmmov %vm5925_vm0 }
 0x2dd   : > { %vm5584_vm5 = vcmp.lt.s32.totalorder %v3387_v44, 112  ;;  %v4389_v26 = vsel %vm5925_vm0, %v4345_v15, %v1294_v29  ;;  %v4391_v40 = vadd.f32 %v1406_v7, %v1253_v57  ;;  %v1582_v61 = vmul.f32 %v5939_v1, %v1534_v50  ;;  %2008 = vperm.xlu1 %2366, %v2373_v48   ;;  %v5943_v56 = vld [vmem:[#allocation131_spill] sm:$0xff] }
 0x2de   : > { %5940 = vst [vmem:[#allocation64_spill] sm:$0xff] %v4389_v26  ;;  %v1426_v4 = vadd.f32 %v1402_v51, %v4261_v63  ;;  %v1510_v45 = vsel %vm5582_vm11, %v5942_v41, %v5941_v36  ;;  %v4402_v0 = vadd.f32 %v1407_v14, %v1254_v46  ;;  %v4404_v6 = vadd.f32 %v1581_v60, %v1424_v37  ;;  %v5944_v51 = vld [vmem:[#allocation51_spill] sm:$0xff]  ;;  %v1467_v26 = vpop.permute.xlu1 %1466  ;;  %v1306_v48 = vpop.permute.xlu0 %1305  ;;  %v5949_v37 = vld [vmem:[#allocation153_spill] sm:$0xff] }
 0x2df   : > { %v1583_v57 = vmul.f32 %v5939_v1, %v1535_v19  ;;  %v1412_v7 = vmul.f32 %v5943_v56, %v1364_v25  ;;  %v4408_v38 = vadd.f32 %v1582_v61, %v1425_v8  ;;  %v1584_v63 = vmul.f32 %v5939_v1, %v1536_v55  ;;  %v5950_v25 = vld [vmem:[#allocation43_spill] sm:$0xff]  ;;  %v5952_v55 = vld [vmem:[#allocation57_spill] sm:$0xff] }
 0x2e0   : > { %v1427_v22 = vadd.f32 %v1403_v11, %v4272_v32  ;;  %vm5945_vm8 = vcmp.le.s32.totalorder %v3431_v16, 14  ;;  %vm5946_vm15 = vcmp.ge.s32.totalorder %v3424_v12, 1  ;;  %v1341_v14 = vsel %vm5947_vm2, %v4025_v58, %v5935_v17 }
 0x2e1   : > { %v1365_v50 = vsel %vm5945_vm8, %v5944_v51, 0.0  ;;  %v1537_v46 = vsel %vm5946_vm15, %v1510_v45, 0.0  ;;  %v1512_v8 = vsel %vm5582_vm11, %v4378_v33, %v1467_v26  ;;  %v4426_v11 = vsel %vm5925_vm0, %v1294_v29, %v1306_v48  ;;  %v5951_v29 = vld [vmem:[#allocation33_spill] sm:$0xff] }
 0x2e2   : > { %5948 = vst [vmem:[#allocation53_spill] sm:$0xff] %v4426_v11  ;;  %v4428_v32 = vadd.f32 %v1583_v57, %v1426_v4  ;;  %v1504_v19 = vsel %vm5582_vm11, %v5941_v36, %v5949_v37  ;;  %v1498_v58 = vsel %vm5582_vm11, %v5949_v37, %v5950_v25  ;;  %vm5583_vm8 = vcmp.lt.s32.totalorder %v3387_v44, 111  ;;  %1814 = vrot.lane.b32.xlu1 %v5951_v29, %s2460_s9  ;;  %v5954_v4 = vld [vmem:[#allocation142_spill] sm:$0xff]  ;;  %v5955_v57 = vld [vmem:[#allocation129_spill] sm:$0xff] }
 0x2e3   : > { %v1545_v17 = vsel %vm5946_vm15, %v1512_v8, 0.0  ;;  %v1436_v1 = vadd.f32 %v1412_v7, %v4310_v47  ;;  %v1413_v60 = vmul.f32 %v5943_v56, %v1365_v50  ;;  %vm5953_vm2 = vcmp.le.s32.totalorder %v3421_v13, 14  ;;  %v1479_v7 = vpop.permute.xlu1 %1478  ;;  %v1318_v50 = vpop.permute.xlu0 %1317 }
 0x2e4   : > { %v1366_v61 = vsel %vm5953_vm2, %v5952_v55, 0.0  ;;  %v1593_v36 = vmul.f32 %v5954_v4, %v1545_v17  ;;  %v4449_v45 = vadd.f32 %v1584_v63, %v1427_v22  ;;  %v1585_v51 = vmul.f32 %v5955_v57, %v1537_v46 }
 0x2e5   : > { %v1516_v8 = vsel %vm5582_vm11, %v5950_v25, %v5942_v41  ;;  %vm5956_vm0 = vcmp.le.s32.totalorder %v3448_v3, 14  ;;  %v1538_v37 = vsel %vm4045_vm4, %v1504_v19, 0.0  ;;  %v1506_v63 = vsel %vm5582_vm11, %v1467_v26, %v1479_v7  ;;  %v5962_v25 = vld [vmem:[#allocation35_spill] sm:$0xff] }
 0x2e6   : > { %v1367_v47 = vsel %vm5956_vm0, %v1341_v14, 0.0  ;;  %v4460_v55 = vadd.f32 %v1593_v36, %v1436_v1  ;;  %vm5957_vm15 = vcmp.lt.s32.totalorder %v3387_v44, 127  ;;  %vm5959_vm2 = vcmp.ge.s32.totalorder %v3421_v13, 1  ;;  %1826 = vrot.lane.b32.xlu1 %v5962_v25, %s2460_s9  ;;  %v5964_v36 = vld [vmem:[#allocation152_spill] sm:$0xff] }
 0x2e7   : > { %v4466_v22 = vsel %vm5957_vm15, %v1306_v48, %v1318_v50  ;;  %v1539_v41 = vsel %vm5959_vm2, %v1498_v58, 0.0  ;;  %v1414_v46 = vmul.f32 %v5943_v56, %v1366_v61  ;;  %v1546_v14 = vsel %vm4045_vm4, %v1506_v63, 0.0  ;;  %vm5960_vm0 = vmmov %vm5957_vm15  ;;  %v5963_v61 = vld [vmem:[#allocation37_spill] sm:$0xff]  ;;  %v1491_v24 = vpop.permute.xlu1 %1490 }
 0x2e8   : > { %5958 = vst [vmem:[#allocation63_spill] sm:$0xff] %v4466_v22  ;;  %v4476_v19 = vsel %vm5960_vm0, %v1318_v50, %v4345_v15  ;;  %v1540_v26 = vsel %vm4083_vm9, %v1516_v8, 0.0  ;;  %v1437_v48 = vadd.f32 %v1413_v60, %v4312_v52  ;;  %v1415_v58 = vmul.f32 %v5943_v56, %v1367_v47  ;;  %v5965_v50 = vld [vmem:[#allocation22_spill] sm:$0xff]  ;;  %v4495_v52 = vpop.permute.xlu0 %1635  ;;  %vm5967_vm15 = vmmov %vm5959_vm2 }
 0x2e9   : > { %5961 = vst [vmem:[#allocation55_spill] sm:$0xff] %v4476_v19  ;;  %v1594_v17 = vmul.f32 %v5954_v4, %v1546_v14  ;;  %v1586_v1 = vmul.f32 %v5955_v57, %v1538_v37  ;;  %v1690_v15 = vsel %vm5584_vm5, %v5964_v36, %v5963_v61  ;;  %v1684_v63 = vsel %vm5584_vm5, %v5963_v61, %v5965_v50 }
 0x2ea   : > { %v1609_v8 = vadd.f32 %v1585_v51, %v4368_v59  ;;  %v1587_v56 = vmul.f32 %v5955_v57, %v1539_v41  ;;  %v1500_v47 = vsel %vm5582_vm11, %v1479_v7, %v1491_v24  ;;  %v1518_v37 = vsel %vm5582_vm11, %v1491_v24, %v4378_v33  ;;  %v5968_v41 = vld [vmem:[#allocation34_spill] sm:$0xff] }
 0x2eb   : > { %v4498_v60 = vadd.f32 %v1594_v17, %v1437_v48  ;;  %v1588_v14 = vmul.f32 %v5955_v57, %v1540_v26  ;;  %v1438_v61 = vadd.f32 %v1414_v46, %v4321_v35  ;;  %v1547_v59 = vsel %vm5967_vm15, %v1500_v47, 0.0  ;;  %1838 = vrot.lane.b32.xlu1 %v5968_v41, %s2460_s9  ;;  %v5969_v46 = vld [vmem:[#allocation45_spill] sm:$0xff]  ;;  %v6080_v41 = vld [vmem:[#allocation102_spill] sm:$0xff] }
 0x2ec   : > { %v1548_v51 = vsel %vm4083_vm9, %v1518_v37, 0.0  ;;  %v1439_v48 = vadd.f32 %v1415_v58, %v4341_v27  ;;  %v1691_v24 = vsel %vm5584_vm5, %v4068_v21, %v4111_v62  ;;  %v1595_v33 = vmul.f32 %v5954_v4, %v1547_v59  ;;  %v1809_v58 = vpop.permute.xlu1 %1808  ;;  %v4531_v17 = vpop.permute.xlu0 %1647  ;;  %v5975_v47 = vld [vmem:[#allocation133_spill] sm:$0xff] }
 0x2ed   : > { %5966 = vst [vmem:[#allocation61_spill] sm:$0xff] %v4498_v60  ;;  %v1596_v35 = vmul.f32 %v5954_v4, %v1548_v51  ;;  %v1610_v57 = vadd.f32 %v1586_v1, %v4380_v9  ;;  %v1711_v7 = vsel %vm4013_vm1, %v1684_v63, 0.0  ;;  %v1696_v26 = vsel %vm5584_vm5, %v5969_v46, %v5964_v36 }
 0x2ee   : > { %v1685_v27 = vsel %vm5584_vm5, %v4111_v62, %v4159_v23  ;;  %v1867_v9 = vsel %vm5583_vm8, %v4123_v5, %v4171_v53  ;;  %vm5970_vm2 = vcmp.le.s32.totalorder %v3431_v16, 14  ;;  %v1861_v62 = vsel %vm5583_vm8, %v4171_v53, %v4206_v39 }
 0x2ef   : > { %vm4541_vm0 = vmand %vm4013_vm1, %vm5970_vm2  ;;  %v4549_v1 = vadd.f32 %v1595_v33, %v1438_v61  ;;  %v4551_v36 = vadd.f32 %v1596_v35, %v1439_v48  ;;  %v1612_v63 = vadd.f32 %v1588_v14, %v4402_v0  ;;  %v1762_v37 = vmul.f32 %v5975_v47, %v1691_v24  ;;  %1850 = vrot.lane.b32.xlu1 %v5976_v10, %s2460_s9  ;;  %v5977_v14 = vld [vmem:[#allocation58_spill] sm:$0xff]  ;;  %s219_s9 = scalar_lea.vmem [#allocation3], %s2259_s8 }
 0x2f0   : > { %v1611_v59 = vadd.f32 %v1587_v56, %v4391_v40  ;;  %v1855_v51 = vsel %vm5583_vm8, %v4206_v39, %v4231_v34  ;;  %v1678_v53 = vsel %vm5584_vm5, %v5965_v50, %v5969_v46  ;;  %v1713_v0 = vsel %vm4055_vm14, %v1696_v26, 0.0  ;;  %v1821_v24 = vpop.permute.xlu1 %1820  ;;  %v4588_v33 = vpop.permute.xlu0 %1659  ;;  %s2196_s11 = sshll.u32 %s219_s9, 4  ;;  %s5330_s11 = int_to_ptr.vmem [resolvable:$true] %s2196_s11 }
 0x2f1   : > { %5973 = vst [vmem:[#allocation26_spill] sm:$0xff] %v4549_v1  ;;  %5974 = vst [vmem:[#allocation67_spill] sm:$0xff] %v4551_v36  ;;  %v1758_v61 = vmul.f32 %v5977_v14, %v1690_v15  ;;  %v1759_v40 = vmul.f32 %v5977_v14, %v1711_v7  ;;  %v1715_v56 = vsel %vm4013_vm1, %v1685_v27, 0.0  ;;  %vm5978_vm15 = vcmp.le.s32.totalorder %v3424_v12, 14  ;;  %s2379_s4 = scalar_lea.vmem %s5330_s11, 512  ;;  %p2386_p0 = scmp.lt.s32.totalorder %s5330_s11, %s2384_s16 }
 0x2f2   : > { %v1891_v39 = vsel %vm5978_vm15, %v1867_v9, 0.0  ;;  %v1892_v48 = vsel %vm4541_vm0, %v1861_v62, 0.0  ;;  %vm5979_vm2 = vcmp.le.s32.totalorder %v3448_v3, 14  ;;  %v1873_v15 = vsel %vm5583_vm8, %v4231_v34, %v4123_v5  ;;  %v5984_v62 = vld [vmem:[#allocation144_spill] sm:$0xff]  ;;  %p2380_p11 = scmp.ne.s32.totalorder %s5330_s11, %s2379_s4  ;;  %p2387_p1 = scmp.lt.s32.totalorder %s2385_s17, %s2379_s4 }
 0x2f3   : > { %vm4580_vm11 = vmand %vm4055_vm14, %vm5979_vm2  ;;  %v1679_v35 = vsel %vm5584_vm5, %v4159_v23, %v4196_v28  ;;  %v1697_v7 = vsel %vm5584_vm5, %v4196_v28, %v4068_v21  ;;  %vm5982_vm15 = vcmp.le.s32.totalorder %v3421_v13, 14  ;;  %v1868_v26 = vsel %vm5583_vm8, %v1809_v58, %v1821_v24  ;;  %v5985_v28 = vld [vmem:[#allocation146_spill] sm:$0xff] }
 0x2f4   : > { %v1893_v46 = vsel %vm5982_vm15, %v1855_v51, 0.0  ;;  %v1760_v5 = vmul.f32 %v5977_v14, %v1678_v53  ;;  %v1761_v34 = vmul.f32 %v5977_v14, %v1713_v0  ;;  %v1786_v27 = vadd.f32 %v1762_v37, %v1609_v8  ;;  %v1833_v37 = vpop.permute.xlu1 %1832  ;;  %p2381_p12 = pnand %p2380_p11, %p2535_p5  ;;  %p2388_p2 = por %p2387_p1, %p2386_p0 }
 0x2f5   : > { %vm5983_vm2 = vcmp.le.s32.totalorder %v3424_v12, 14  ;;  %v1763_v23 = vmul.f32 %v5975_v47, %v1715_v56  ;;  %v1940_v19 = vmul.f32 %v5984_v62, %v1892_v48  ;;  %v1894_v21 = vsel %vm4580_vm11, %v1873_v15, 0.0 }
 0x2f6   : > { %v1895_v9 = vsel %vm5983_vm2, %v1868_v26, 0.0  ;;  %v1939_v22 = vmul.f32 %v5984_v62, %v1891_v39  ;;  %v1717_v53 = vsel %vm4055_vm14, %v1697_v7, 0.0  ;;  %v1764_v0 = vmul.f32 %v5975_v47, %v1679_v35  ;;  %v4620_v26 = vpop.permute.xlu0 %1671  ;;  %p2382_p13 = pneg %p2381_p12 }
 0x2f7   : > { %v1943_v51 = vmul.f32 %v5985_v28, %v1895_v9  ;;  %v1941_v8 = vmul.f32 %v5984_v62, %v1893_v46  ;;  %v1782_v14 = vadd.f32 %v1758_v61, %v4404_v6  ;;  %v1783_v56 = vadd.f32 %v1759_v40, %v4408_v38 }
 0x2f8   : > { %v1862_v15 = vsel %vm5583_vm8, %v1821_v24, %v1833_v37  ;;  %v1784_v39 = vadd.f32 %v1760_v5, %v4428_v32  ;;  %v1785_v9 = vadd.f32 %v1761_v34, %v4449_v45  ;;  %v1942_v7 = vmul.f32 %v5984_v62, %v1894_v21  ;;  %v1845_v11 = vpop.permute.xlu1 %1844  ;;  %p2389_p3 = pnand %p2388_p2, %p2382_p13 }
 0x2f9   : > { %v1967_v48 = vadd.f32 %v1943_v51, %v1786_v27  ;;  %v1896_v35 = vsel %vm4541_vm0, %v1862_v15, 0.0  ;;  %v1787_v46 = vadd.f32 %v1763_v23, %v1610_v57  ;;  %v1765_v6 = vmul.f32 %v5975_v47, %v1717_v53 }
 0x2fa   : > { %v1964_v61 = vadd.f32 %v1940_v19, %v1783_v56  ;;  %v1944_v38 = vmul.f32 %v5985_v28, %v1896_v35  ;;  %v1963_v40 = vadd.f32 %v1939_v22, %v1782_v14  ;;  %v1788_v27 = vadd.f32 %v1764_v0, %v1611_v59  ;;  %v4642_v21 = vpop.permute.xlu0 %1936 }
 0x2fb   : > { %v1965_v24 = vadd.f32 %v1941_v8, %v1784_v39  ;;  %v2015_v51 = vadd.f32 %v4343_v43, %v1967_v48  ;;  %v1856_v5 = vsel %vm5583_vm8, %v1833_v37, %v1845_v11  ;;  %v1874_v57 = vsel %vm5583_vm8, %v1845_v11, %v1809_v58  ;;  %5986 = vst [vmem:[#allocation73_spill] sm:$0xff] %v4642_v21 }
 0x2fc   : > { %v2012_v32 = vadd.f32 %v4300_v31, %v1964_v61  ;;  %v1968_v45 = vadd.f32 %v1944_v38, %v1787_v46  ;;  %v1966_v34 = vadd.f32 %v1942_v7, %v1785_v9  ;;  %v2011_v19 = vadd.f32 %v4300_v31, %v1963_v40  ;;  %v4647_v8 = vpop.permute.xlu1 %1755 }
 0x2fd   : > { %v1897_v22 = vsel %vm5982_vm15, %v1856_v5, 0.0  ;;  %v1898_v47 = vsel %vm4580_vm11, %v1874_v57, 0.0  ;;  %v1789_v59 = vadd.f32 %v1765_v6, %v1612_v63  ;;  %v2013_v11 = vadd.f32 %v4300_v31, %v1965_v24  ;;  %5987 = vst [vmem:[#allocation65_spill] sm:$0xff] %v4647_v8 }
 0x2fe   : > { %v1945_v23 = vmul.f32 %v5985_v28, %v1897_v22  ;;  %v1946_v62 = vmul.f32 %v5985_v28, %v1898_v47  ;;  %v2016_v53 = vadd.f32 %v4343_v43, %v1968_v45  ;;  %v2014_v58 = vadd.f32 %v4300_v31, %v1966_v34  ;;  %v2374_v31 = vld [vmem:[%s5375_s3] sm:$0xff]  ;;  %v4654_v61 = vpop.permute.xlu0 %1456 }
 0x2ff   : > { %v2039_v0 = vmax.f32 %v2015_v51, 0.0  ;;  %v2036_v56 = vmax.f32 %v2012_v32, 0.0  ;;  %v2035_v63 = vmax.f32 %v2011_v19, 0.0  ;;  %v2462_v9 = vmov 11   ;;  %5988 = vst [vmem:[#allocation68_spill] sm:$0xff] %v4654_v61 }
 0x300   : > { %v1969_v37 = vadd.f32 %v1945_v23, %v1788_v27  ;;  %v1970_v14 = vadd.f32 %v1946_v62, %v1789_v59  ;;  %v2040_v48 = vmax.f32 %v2016_v53, 0.0  ;;  %2368 = vset.pattern.permute.xlu1 %v2462_v9  ;;  %2369 = vset.pattern.permute.xlu0 %v2462_v9  ;;  %v1280_v7 = vpop.permute.xlu1 %1279  ;;  %v2037_v46 = vmax.f32 %v2013_v11, 0.0  ;;  %v6000_v11 = vld [vmem:[#allocation83_spill] sm:$0xff]  ;;  %v6011_v9 = vld [vmem:[#allocation92_spill] sm:$0xff] }
 0x301   : > { %v2061_v35 = vpack.c.bf16 %v2039_v0, %v2035_v63  ;;  %2074 = vperm.xlu1 %2368, %v2374_v31   ;;  %v2038_v38 = vmax.f32 %v2014_v58, 0.0  ;;  %vm5989_vm2 = vcmp.lt.s32.totalorder %v3387_v44, 127  ;;  %v6001_v58 = vld [vmem:[#allocation89_spill] sm:$0xff] }
 0x302   : > { %v2017_v15 = vadd.f32 %v4343_v43, %v1969_v37  ;;  %v2062_v39 = vpack.c.bf16 %v2040_v48, %v2036_v56  ;;  %v2018_v28 = vadd.f32 %v4343_v43, %v1970_v14  ;;  %v4660_v32 = vpop.permute.xlu0 %1468  ;;  %vm5992_vm15 = vmmov %vm5989_vm2  ;;  %v6003_v37 = vld [vmem:[#allocation84_spill] sm:$0xff]  ;;  %v6004_v14 = vld [vmem:[#allocation90_spill] sm:$0xff] }
 0x303   : > { %5991 = vst [vmem:[#allocation66_spill] sm:$0xff] %v4660_v32  ;;  %vm5995_vm8 = vmmov %vm5989_vm2  ;;  %v6006_v48 = vld [vmem:[#allocation82_spill] sm:$0xff]  ;;  %v6040_v32 = vld [vmem:[#allocation95_spill] sm:$0xff] }
 0x304   : > { %v2041_v6 = vmax.f32 %v2017_v15, 0.0  ;;  %2081 = vmatprep.subr.bf16.mxu0 %v2062_v39  ;;  %v2042_v40 = vmax.f32 %v2018_v28, 0.0  ;;  %v1292_v24 = vpop.permute.xlu1 %1291  ;;  %vm5997_vm5 = vmmov %vm5989_vm2  ;;  %v6008_v15 = vld [vmem:[#allocation81_spill] sm:$0xff]  ;;  %v6009_v39 = vld [vmem:[#allocation91_spill] sm:$0xff] }
 0x305   : > { %2082 = vmatpush1.bf16.msra.mxu0 %v2061_v35  ;;  %v4658_v51 = vsel %vm5989_vm2, %v1280_v7, %v1292_v24  ;;  %vm6002_vm2 = vcmp.lt.s32.totalorder %v3387_v44, 16 }
 0x306   : > { %v2064_v27 = vpack.c.bf16 %v2042_v40, %v2038_v38  ;;  %v2063_v43 = vpack.c.bf16 %v2041_v6, %v2037_v46  ;;  %5990 = vst [vmem:[#allocation74_spill] sm:$0xff] %v4658_v51  ;;  %v4666_v34 = vpop.permute.xlu0 %1480  ;;  %v723_v0 = vsel %vm6002_vm2, %v6001_v58, %v6000_v11  ;;  %v6062_v51 = vld [vmem:[#allocation108_spill] sm:$0xff] }
 0x307   : > { %5994 = vst [vmem:[#allocation150_spill] sm:$0xff] %v4666_v34  ;;  %v763_v6 = vsel %vm3440_vm3, %v723_v0, 0.0 }
 0x308   : > { %2122 = vmatprep.subr.bf16.mxu1 %v2064_v27  ;;  %v1304_v45 = vpop.permute.xlu1 %1303 }
 0x309   : > { %2123 = vmatpush1.bf16.msra.mxu1 %v2063_v43  ;;  %v4664_v5 = vsel %vm5992_vm15, %v1292_v24, %v1304_v45  ;;  %vm6010_vm15 = vmmov %vm6002_vm2  ;;  %v6017_v43 = vld [vmem:[#allocation94_spill] sm:$0xff] }
 0x30a   : > { %5993 = vst [vmem:[#allocation75_spill] sm:$0xff] %v4664_v5  ;;  %v4678_v59 = vpop.permute.xlu0 %1492  ;;  %v735_v28 = vsel %vm6010_vm15, %v6009_v39, %v6008_v15  ;;  %v6018_v24 = vld [vmem:[#allocation86_spill] sm:$0xff] }
 0x30b   : > { %5999 = vst [vmem:[#allocation19_spill] sm:$0xff] %v4678_v59  ;;  %v6030_v59 = vld [vmem:[#allocation87_spill] sm:$0xff] }
 0x30c   : > { %v1316_v57 = vpop.permute.xlu1 %1315 }
 0x30d   : > { %v4670_v19 = vsel %vm5995_vm8, %v1304_v45, %v1316_v57  ;;  %v4674_v22 = vsel %vm5997_vm5, %v1316_v57, %v1280_v7  ;;  %vm6005_vm5 = vcmp.lt.s32.totalorder %v3387_v44, 17 }
 0x30e   : > { %5996 = vst [vmem:[#allocation139_spill] sm:$0xff] %v4670_v19  ;;  %5998 = vst [vmem:[#allocation48_spill] sm:$0xff] %v4674_v22  ;;  %v4684_v53 = vpop.permute.xlu0 %1810  ;;  %v542_v56 = vsel %vm6005_vm5, %v6004_v14, %v6003_v37 }
 0x30f   : > { %vm6007_vm8 = vmmov %vm6005_vm5  ;;  %v586_v40 = vsel %vm3471_vm10, %v542_v56, 0.0  ;;  %v6023_v56 = vld [vmem:[#allocation88_spill] sm:$0xff] }
 0x310   : > { %v4676_v47 = vpop.permute.xlu1 %1633  ;;  %v548_v63 = vsel %vm6007_vm8, %v6006_v48, %v6004_v14  ;;  %vm6012_vm9 = vmmov %vm6005_vm5  ;;  %vm6015_vm8 = vcmp.ge.s32.totalorder %v3431_v16, 1 }
 0x311   : > { %v536_v7 = vsel %vm6012_vm9, %v6003_v37, %v6011_v9  ;;  %vm6013_vm2 = vmmov %vm6005_vm5  ;;  %v585_v38 = vsel %vm6015_vm8, %v548_v63, 0.0  ;;  %v6025_v63 = vld [vmem:[#allocation24_spill] sm:$0xff]  ;;  %vm6028_vm8 = vcmp.le.s32.totalorder %v3431_v16, 14 }
 0x312   : > { %v554_v35 = vsel %vm6013_vm2, %v6011_v9, %v6006_v48  ;;  %vm6014_vm5 = vmmov %vm6010_vm15  ;;  %vm6019_vm15 = vcmp.lt.s32.totalorder %v3387_v44, 15  ;;  %vm6022_vm2 = vcmp.ge.s32.totalorder %v3448_v3, 1 }
 0x313   : > { %v729_v46 = vsel %vm6014_vm5, %v6008_v15, %v6001_v58  ;;  %vm6016_vm9 = vmmov %vm6014_vm5  ;;  %v906_v45 = vsel %vm6019_vm15, %v6018_v24, %v6017_v43  ;;  %v761_v58 = vsel %vm3454_vm6, %v735_v28, 0.0  ;;  %v584_v37 = vsel %vm3501_vm13, %v554_v35, 0.0  ;;  %v6027_v28 = vld [vmem:[#allocation16_spill] sm:$0xff] }
 0x314   : > { %v4680_v23 = vpop.permute.xlu1 %1645  ;;  %v717_v27 = vsel %vm6016_vm9, %v6000_v11, %v6009_v39  ;;  %v587_v14 = vsel %vm6022_vm2, %v536_v7, 0.0  ;;  %vm6024_vm5 = vmmov %vm6019_vm15  ;;  %v4740_v11 = vpop.permute.xlu0 %1822  ;;  %v810_v15 = vmul.f32 %v6025_v63, %v729_v46  ;;  %v811_v39 = vmul.f32 %v6025_v63, %v763_v6  ;;  %v6083_v46 = vld [vmem:[#allocation30_spill] sm:$0xff] }
 0x315   : > { %v900_v48 = vsel %vm6024_vm5, %v6017_v43, %v6023_v56  ;;  %v633_v21 = vmul.f32 %v6027_v28, %v585_v38  ;;  %v634_v35 = vmul.f32 %v6027_v28, %v586_v40  ;;  %v812_v8 = vmul.f32 %v6025_v63, %v717_v27  ;;  %v6033_v40 = vld [vmem:[#allocation85_spill] sm:$0xff]  ;;  %vm6037_vm2 = vmmov %vm6024_vm5 }
 0x316   : > { %v943_v7 = vsel %vm6028_vm8, %v906_v45, 0.0  ;;  %v809_v22 = vmul.f32 %v6025_v63, %v761_v58  ;;  %v632_v43 = vmul.f32 %v6027_v28, %v584_v37  ;;  %v635_v19 = vmul.f32 %v6027_v28, %v587_v14  ;;  %v6035_v45 = vld [vmem:[#allocation28_spill] sm:$0xff]  ;;  %vm6038_vm5 = vmmov %vm6037_vm2 }
 0x317   : > { %v944_v6 = vsel %vm3543_vm7, %v900_v48, 0.0  ;;  %vm6032_vm9 = vcmp.lt.s32.totalorder %v3387_v44, 1  ;;  %v991_v34 = vmul.f32 %v6035_v45, %v943_v7  ;;  %v6036_v58 = vld [vmem:[#allocation96_spill] sm:$0xff]  ;;  %v834_v14 = vadd.f32 %v810_v15, %v633_v21 }
 0x318   : > { %v4682_v62 = vpop.permute.xlu1 %1657  ;;  %vm6034_vm15 = vmmov %vm6032_vm9  ;;  %v912_v37 = vsel %vm6037_vm2, %v6036_v58, %v6018_v24  ;;  %v992_v48 = vmul.f32 %v6035_v45, %v944_v6  ;;  %v894_v63 = vsel %vm6038_vm5, %v6023_v56, %v6036_v58  ;;  %v4774_v28 = vpop.permute.xlu0 %1834  ;;  %v833_v61 = vadd.f32 %v809_v22, %v632_v43  ;;  %v6048_v43 = vld [vmem:[#allocation105_spill] sm:$0xff] }
 0x319   : > { %v836_v7 = vadd.f32 %v812_v8, %v635_v19  ;;  %vm6041_vm8 = vmmov %vm6032_vm9  ;;  %v942_v8 = vsel %vm3574_vm12, %v912_v37, 0.0  ;;  %v4796_v19 = vadd.f32 %v991_v34, %v834_v14  ;;  %vm6046_vm5 = vcmp.le.s32.totalorder %v3448_v3, 14  ;;  %v6053_v34 = vld [vmem:[#allocation100_spill] sm:$0xff]  ;;  %v6056_v37 = vld [vmem:[#allocation107_spill] sm:$0xff] }
 0x31a   : > { %v1093_v24 = vsel %vm6041_vm8, %v6040_v32, %v6033_v40  ;;  %vm6044_vm2 = vmmov %vm6041_vm8  ;;  %vm6049_vm8 = vcmp.lt.s32.totalorder %v3387_v44, 17 }
 0x31b   : > { %v1075_v56 = vsel %vm6044_vm2, %v6030_v59, %v6040_v32  ;;  %vm6055_vm2 = vcmp.lt.s32.totalorder %v3387_v44, 16 }
 0x31c   : > { %v4710_v31 = vpop.permute.xlu1 %1669 }
 0x320   : > { %v4744_v9 = vpop.permute.xlu1 %1932 }
 0x321   : > { %6026 = vst [vmem:[#allocation76_spill] sm:$0xff] %v4744_v9  ;;  %v6031_v9 = vld [vmem:[#allocation93_spill] sm:$0xff] }
 0x322   : > { %v1081_v38 = vsel %vm6032_vm9, %v6031_v9, %v6030_v59  ;;  %v1087_v27 = vsel %vm6034_vm15, %v6033_v40, %v6031_v9  ;;  %v835_v9 = vadd.f32 %v811_v39, %v634_v35  ;;  %vm6042_vm9 = vcmp.ge.s32.totalorder %v3431_v16, 1  ;;  %v6047_v35 = vld [vmem:[#allocation99_spill] sm:$0xff]  ;;  %v6054_v59 = vld [vmem:[#allocation106_spill] sm:$0xff] }
 0x323   : > { %v4784_v21 = vsel %vm6042_vm9, %v1087_v27, 0.0  ;;  %vm6043_vm15 = vcmp.ge.s32.totalorder %v3421_v13, 1  ;;  %v945_v39 = vsel %vm6046_vm5, %v894_v63, 0.0  ;;  %v543_v6 = vsel %vm6049_vm8, %v6048_v43, %v6047_v35  ;;  %vm6051_vm9 = vmmov %vm6049_vm8 }
 0x324   : > { %v4776_v5 = vpop.permute.xlu1 %1996  ;;  %v4788_v15 = vsel %vm6043_vm15, %v1081_v38, 0.0  ;;  %v6050_v38 = vld [vmem:[#allocation97_spill] sm:$0xff]  ;;  %v4808_v27 = vadd.f32 %v992_v48, %v835_v9  ;;  %vm6052_vm15 = vcmp.ge.s32.totalorder %v3424_v12, 1  ;;  %v724_v58 = vsel %vm6055_vm2, %v6054_v59, %v6053_v34  ;;  %vm6057_vm5 = vmmov %vm6049_vm8 }
 0x325   : > { %6039 = vst [vmem:[#allocation77_spill] sm:$0xff] %v4776_v5  ;;  %v549_v40 = vsel %vm6051_vm9, %v6050_v38, %v6048_v43  ;;  %v1119_v32 = vsel %vm6052_vm15, %v1093_v24, 0.0  ;;  %v537_v14 = vsel %vm6057_vm5, %v6047_v35, %v6056_v37  ;;  %vm6059_vm8 = vcmp.ge.s32.totalorder %v3448_v3, 1  ;;  %vm6060_vm9 = vmmov %vm6057_vm5  ;;  %v6061_v24 = vld [vmem:[#allocation98_spill] sm:$0xff] }
 0x326   : > { %v4824_v43 = vsel %vm6059_vm8, %v1075_v56, 0.0  ;;  %v990_v48 = vmul.f32 %v6035_v45, %v942_v8  ;;  %v555_v9 = vsel %vm6060_vm9, %v6056_v37, %v6050_v38  ;;  %vm6063_vm15 = vmmov %vm6055_vm2  ;;  %v993_v35 = vmul.f32 %v6035_v45, %v945_v39  ;;  %v6068_v39 = vld [vmem:[#allocation101_spill] sm:$0xff] }
 0x327   : > { %v736_v10 = vsel %vm6063_vm15, %v6062_v51, %v6061_v24  ;;  %vm6064_vm2 = vcmp.ge.s32.totalorder %v3431_v16, 1  ;;  %v590_v56 = vsel %vm3471_vm10, %v543_v6, 0.0  ;;  %vm6065_vm5 = vmmov %vm6063_vm15  ;;  %v767_v38 = vsel %vm3440_vm3, %v724_v58, 0.0 }
 0x328   : > { %v4820_v63 = vpop.permute.xlu1 %2000  ;;  %v589_v36 = vsel %vm6064_vm2, %v549_v40, 0.0  ;;  %v730_v8 = vsel %vm6065_vm5, %v6061_v24, %v6054_v59  ;;  %v591_v37 = vsel %vm6059_vm8, %v537_v14, 0.0  ;;  %vm6066_vm9 = vmmov %vm6065_vm5  ;;  %vm6069_vm10 = vcmp.lt.s32.totalorder %v3387_v44, 15  ;;  %v6070_v59 = vld [vmem:[#allocation103_spill] sm:$0xff]  ;;  %v6075_v24 = vld [vmem:[#allocation20_spill] sm:$0xff] }
 0x329   : > { %6058 = vst [vmem:[#allocation69_spill] sm:$0xff] %v4820_v63  ;;  %v4844_v63 = vpop.permute.xlu0 %1846  ;;  %v718_v45 = vsel %vm6066_vm9, %v6053_v34, %v6062_v51  ;;  %v907_v6 = vsel %vm6069_vm10, %v6068_v39, %v6067_v2  ;;  %v588_v40 = vsel %vm3501_vm13, %v555_v9, 0.0  ;;  %v765_v42 = vsel %vm3454_vm6, %v736_v10, 0.0  ;;  %vm6071_vm3 = vmmov %vm6069_vm10  ;;  %v6072_v14 = vld [vmem:[#allocation111_spill] sm:$0xff]  ;;  %v6076_v9 = vld [vmem:[#allocation21_spill] sm:$0xff] }
 0x32a   : > { %v901_v58 = vsel %vm6071_vm3, %v6067_v2, %v6070_v59  ;;  %vm6073_vm15 = vmmov %vm6071_vm3  ;;  %v637_v1 = vmul.f32 %v6075_v24, %v589_v36  ;;  %v638_v0 = vmul.f32 %v6075_v24, %v590_v56  ;;  %v814_v60 = vmul.f32 %v6076_v9, %v730_v8 }
 0x32b   : > { %v913_v51 = vsel %vm6073_vm15, %v6072_v14, %v6068_v39  ;;  %vm6077_vm6 = vmmov %vm6071_vm3  ;;  %v815_v57 = vmul.f32 %v6076_v9, %v767_v38  ;;  %v639_v2 = vmul.f32 %v6075_v24, %v591_v37  ;;  %v816_v5 = vmul.f32 %v6076_v9, %v718_v45  ;;  %v6079_v38 = vld [vmem:[#allocation110_spill] sm:$0xff] }
 0x32c   : > { %v4870_v34 = vpop.permute.xlu1 %1458  ;;  %v895_v10 = vsel %vm6077_vm6, %v6070_v59, %v6072_v14  ;;  %vm6078_vm13 = vcmp.le.s32.totalorder %v3431_v16, 14  ;;  %v636_v36 = vmul.f32 %v6075_v24, %v588_v40  ;;  %v813_v56 = vmul.f32 %v6076_v9, %v765_v42  ;;  %v6084_v24 = vld [vmem:[#allocation104_spill] sm:$0xff] }
 0x32d   : > { %6074 = vst [vmem:[#allocation25_spill] sm:$0xff] %v4870_v34  ;;  %v947_v39 = vsel %vm6078_vm13, %v907_v6, 0.0  ;;  %v948_v8 = vsel %vm3543_vm7, %v901_v58, 0.0  ;;  %v946_v34 = vsel %vm3574_vm12, %v913_v51, 0.0  ;;  %v1014_v59 = vadd.f32 %v990_v48, %v833_v61  ;;  %v4896_v6 = vpop.permute.xlu0 %1637 }
 0x32e   : > { %v1017_v14 = vadd.f32 %v993_v35, %v836_v7  ;;  %vm6081_vm2 = vcmp.lt.s32.totalorder %v3387_v44, 1  ;;  %vm6082_vm5 = vcmp.le.s32.totalorder %v3448_v3, 14  ;;  %v838_v42 = vadd.f32 %v814_v60, %v637_v1  ;;  %v6086_v7 = vld [vmem:[#allocation112_spill] sm:$0xff] }
 0x32f   : > { %v1088_v37 = vsel %vm6081_vm2, %v6080_v41, %v6079_v38  ;;  %v949_v45 = vsel %vm6082_vm5, %v895_v10, 0.0  ;;  %v995_v58 = vmul.f32 %v6083_v46, %v947_v39  ;;  %vm6085_vm7 = vmmov %vm6081_vm2  ;;  %v839_v48 = vadd.f32 %v815_v57, %v638_v0  ;;  %v6092_v0 = vld [vmem:[#allocation115_spill] sm:$0xff] }
 0x330   : > { %v4898_v40 = vpop.permute.xlu1 %1470  ;;  %v1082_v61 = vsel %vm6085_vm7, %v6079_v38, %v6084_v24  ;;  %vm6087_vm12 = vmmov %vm6081_vm2  ;;  %v840_v35 = vadd.f32 %v816_v5, %v639_v2  ;;  %v996_v51 = vmul.f32 %v6083_v46, %v948_v8  ;;  %v994_v9 = vmul.f32 %v6083_v46, %v946_v34  ;;  %v6093_v8 = vld [vmem:[#allocation116_spill] sm:$0xff] }
 0x331   : > { %v1094_v22 = vsel %vm6087_vm12, %v6086_v7, %v6080_v41  ;;  %v837_v10 = vadd.f32 %v813_v56, %v636_v36  ;;  %vm6088_vm8 = vcmp.ge.s32.totalorder %v3431_v16, 1  ;;  %v997_v1 = vmul.f32 %v6083_v46, %v949_v45  ;;  %vm6089_vm9 = vmmov %vm6081_vm2 }
 0x332   : > { %v1124_v60 = vsel %vm6088_vm8, %v1088_v37, 0.0  ;;  %v1076_v39 = vsel %vm6089_vm9, %v6084_v24, %v6086_v7  ;;  %vm6090_vm10 = vcmp.ge.s32.totalorder %v3421_v13, 1  ;;  %vm6091_vm3 = vcmp.ge.s32.totalorder %v3424_v12, 1 }
 0x333   : > { %v1125_v41 = vsel %vm6090_vm10, %v1082_v61, 0.0  ;;  %v1123_v5 = vsel %vm6091_vm3, %v1094_v22, 0.0  ;;  %v1167_v57 = vmul.f32 %v6092_v0, %v1119_v32  ;;  %v1168_v34 = vmul.f32 %v6092_v0, %v4784_v21  ;;  %v4934_v61 = vpop.permute.xlu0 %1649 }
 0x334   : > { %v4925_v2 = vpop.permute.xlu1 %1482  ;;  %v1019_v36 = vadd.f32 %v995_v58, %v838_v42  ;;  %v1169_v56 = vmul.f32 %v6092_v0, %v4788_v15  ;;  %v1171_v38 = vmul.f32 %v6093_v8, %v1123_v5  ;;  %v1172_v37 = vmul.f32 %v6093_v8, %v1124_v60  ;;  %v6102_v5 = vld [vmem:[#allocation46_spill] sm:$0xff] }
 0x335   : > { %v1020_v45 = vadd.f32 %v996_v51, %v839_v48  ;;  %v1018_v46 = vadd.f32 %v994_v9, %v837_v10  ;;  %vm6094_vm15 = vcmp.ge.s32.totalorder %v3448_v3, 1  ;;  %v1173_v32 = vmul.f32 %v6093_v8, %v1125_v41  ;;  %v6098_v51 = vld [vmem:[#allocation120_spill] sm:$0xff] }
 0x336   : > { %v1126_v24 = vsel %vm6094_vm15, %v1076_v39, 0.0  ;;  %v1021_v21 = vadd.f32 %v997_v1, %v840_v35  ;;  %v1170_v42 = vmul.f32 %v6092_v0, %v4824_v43  ;;  %vm6095_vm6 = vcmp.lt.s32.totalorder %v3387_v44, 112  ;;  %v6100_v39 = vld [vmem:[#allocation39_spill] sm:$0xff] }
 0x337   : > { %v1174_v58 = vmul.f32 %v6093_v8, %v1126_v24  ;;  %v1692_v15 = vsel %vm6095_vm6, %v4676_v47, %v4680_v23  ;;  %vm6096_vm13 = vmmov %vm6095_vm6  ;;  %v4947_v22 = vadd.f32 %v1167_v57, %v1014_v59  ;;  %v4950_v48 = vadd.f32 %v1168_v34, %v4796_v19  ;;  %v4999_v8 = vpop.permute.xlu0 %1661  ;;  %v6108_v24 = vld [vmem:[#allocation52_spill] sm:$0xff] }
 0x338   : > { %v1693_v7 = vsel %vm6096_vm13, %v4495_v52, %v4531_v17  ;;  %vm6097_vm2 = vmmov %vm6095_vm6  ;;  %v4956_v35 = vpop.permute.xlu1 %1494  ;;  %v1243_v9 = vmul.f32 %v6098_v51, %v2989_v18  ;;  %v1195_v10 = vadd.f32 %v1171_v38, %v1018_v46  ;;  %v4960_v60 = vadd.f32 %v1172_v37, %v1019_v36  ;;  %v6103_v36 = vld [vmem:[#allocation42_spill] sm:$0xff]  ;;  %v6105_v37 = vld [vmem:[#allocation121_spill] sm:$0xff] }
 0x339   : > { %v1686_v43 = vsel %vm6097_vm2, %v4680_v23, %v4682_v62  ;;  %v4963_v1 = vadd.f32 %v1169_v56, %v4808_v27  ;;  %v4965_v59 = vadd.f32 %v1173_v32, %v1020_v45  ;;  %vm6099_vm5 = vcmp.lt.s32.totalorder %v3387_v44, 111  ;;  %vm6101_vm7 = vmmov %vm6097_vm2 }
 0x33a   : > { %v1869_v19 = vsel %vm6099_vm5, %v4684_v53, %v4740_v11  ;;  %v1766_v23 = vmul.f32 %v6100_v39, %v1692_v15  ;;  %v1698_v18 = vsel %vm6101_vm7, %v4710_v31, %v4676_v47  ;;  %v4976_v41 = vadd.f32 %v1174_v58, %v1021_v21  ;;  %vm6104_vm12 = vmmov %vm6097_vm2 }
 0x33b   : > { %v1770_v0 = vmul.f32 %v6102_v5, %v1693_v7  ;;  %v4979_v27 = vadd.f32 %v1170_v42, %v1017_v14  ;;  %v1719_v57 = vsel %vm4013_vm1, %v1686_v43, 0.0  ;;  %v4985_v34 = vmul.f32 %v6098_v51, %v3027_v30  ;;  %vm6107_vm9 = vmmov %vm6097_vm2  ;;  %v6112_v7 = vld [vmem:[#allocation62_spill] sm:$0xff] }
 0x33c   : > { %v4989_v56 = vmul.f32 %v6098_v51, %v6103_v36  ;;  %v4993_v47 = vmul.f32 %v6098_v51, %v5846_v20  ;;  %v1687_v14 = vsel %vm6104_vm12, %v4531_v17, %v4588_v33  ;;  %v1813_v38 = vpop.permute.xlu1 %1812  ;;  %v5003_v30 = vmul.f32 %v6105_v37, %v5951_v29  ;;  %vm6109_vm10 = vmmov %vm6099_vm5 }
 0x33d   : > { %v5005_v45 = vadd.f32 %v1243_v9, %v1195_v10  ;;  %vm6106_vm8 = vcmp.le.s32.totalorder %v3424_v12, 14  ;;  %v1721_v20 = vsel %vm4055_vm14, %v1698_v18, 0.0  ;;  %v1699_v17 = vsel %vm6107_vm9, %v4620_v26, %v4495_v52  ;;  %vm6110_vm3 = vmmov %vm6097_vm2  ;;  %v6116_v10 = vld [vmem:[#allocation60_spill] sm:$0xff] }
 0x33e   : > { %v1899_v46 = vsel %vm6106_vm8, %v1869_v19, 0.0  ;;  %v1790_v32 = vadd.f32 %v1766_v23, %v6108_v24  ;;  %v1863_v29 = vsel %vm6109_vm10, %v4740_v11, %v4774_v28  ;;  %v1767_v21 = vmul.f32 %v6100_v39, %v1719_v57  ;;  %vm6111_vm15 = vmmov %vm6097_vm2  ;;  %v5054_v23 = vpop.permute.xlu0 %1673  ;;  %v6121_v24 = vld [vmem:[#allocation77_spill] sm:$0xff] }
 0x33f   : > { %v5023_v42 = vmul.f32 %v6105_v37, %v5962_v25  ;;  %v1794_v58 = vadd.f32 %v1770_v0, %v4460_v55  ;;  %v1723_v15 = vsel %vm4013_vm1, %v1687_v14, 0.0  ;;  %v1680_v52 = vsel %vm6110_vm3, %v4682_v62, %v4710_v31  ;;  %vm6113_vm6 = vmmov %vm6099_vm5  ;;  %v6119_v14 = vld [vmem:[#allocation34_spill] sm:$0xff] }
 0x340   : > { %v1681_v11 = vsel %vm6111_vm15, %v4588_v33, %v4620_v26  ;;  %v1947_v43 = vmul.f32 %v6112_v7, %v1899_v46  ;;  %v1875_v55 = vsel %vm6113_vm6, %v4844_v63, %v4684_v53  ;;  %v1769_v25 = vmul.f32 %v6100_v39, %v1721_v20  ;;  %v1825_v51 = vpop.permute.xlu1 %1824  ;;  %vm6114_vm13 = vmmov %vm6099_vm5  ;;  %v6120_v20 = vld [vmem:[#allocation17_spill] sm:$0xff] }
 0x341   : > { %v1725_v9 = vsel %vm4055_vm14, %v1699_v17, 0.0  ;;  %v1900_v62 = vsel %vm4541_vm0, %v1863_v29, 0.0  ;;  %v1857_v33 = vsel %vm6114_vm13, %v4774_v28, %v4844_v63  ;;  %vm6115_vm2 = vmmov %vm6099_vm5  ;;  %v1791_v53 = vadd.f32 %v1767_v21, %v6116_v10  ;;  %v6118_v63 = vld [vmem:[#allocation56_spill] sm:$0xff] }
 0x342   : > { %v1870_v26 = vsel %vm6115_vm2, %v1813_v38, %v1825_v51  ;;  %v1971_v31 = vadd.f32 %v1947_v43, %v1790_v32  ;;  %v1768_v19 = vmul.f32 %v6100_v39, %v1680_v52  ;;  %vm6117_vm5 = vmmov %vm6106_vm8  ;;  %v1771_v0 = vmul.f32 %v6102_v5, %v1723_v15 }
 0x343   : > { %v1903_v18 = vsel %vm6117_vm5, %v1870_v26, 0.0  ;;  %v1772_v57 = vmul.f32 %v6102_v5, %v1681_v11  ;;  %v1902_v28 = vsel %vm4580_vm11, %v1875_v55, 0.0  ;;  %v5065_v46 = vmul.f32 %v6105_v37, %v6119_v14  ;;  %vm6123_vm12 = vmmov %vm6115_vm2  ;;  %v6124_v55 = vld [vmem:[#allocation47_spill] sm:$0xff] }
 0x344   : > { %v1951_v36 = vmul.f32 %v6118_v63, %v1903_v18  ;;  %v1948_v39 = vmul.f32 %v6112_v7, %v1900_v62  ;;  %v1793_v17 = vadd.f32 %v1769_v25, %v6120_v20  ;;  %v2019_v32 = vadd.f32 %v6121_v24, %v1971_v31  ;;  %v1837_v29 = vpop.permute.xlu1 %1836  ;;  %v6125_v62 = vld [vmem:[#allocation61_spill] sm:$0xff]  ;;  %v6126_v18 = vld [vmem:[#allocation26_spill] sm:$0xff]  ;;  %v5085_v20 = vpop.permute.xlu0 %2004  ;;  %vm6128_vm8 = vmmov %vm6115_vm2 }
 0x345   : > { %v1773_v21 = vmul.f32 %v6102_v5, %v1725_v9  ;;  %vm6122_vm7 = vcmp.le.s32.totalorder %v3421_v13, 14  ;;  %v1864_v11 = vsel %vm6123_vm12, %v1825_v51, %v1837_v29  ;;  %v1950_v43 = vmul.f32 %v6112_v7, %v1902_v28  ;;  %v6127_v5 = vld [vmem:[#allocation69_spill] sm:$0xff]  ;;  %vm6129_vm9 = vmmov %vm6115_vm2 }
 0x346   : > { %v1901_v15 = vsel %vm6122_vm7, %v1857_v33, 0.0  ;;  %v1975_v52 = vadd.f32 %v1951_v36, %v1794_v58  ;;  %v1792_v26 = vadd.f32 %v1768_v19, %v6124_v55  ;;  %v1972_v10 = vadd.f32 %v1948_v39, %v1791_v53  ;;  %vm6131_vm10 = vmmov %vm6122_vm7 }
 0x347   : > { %v1904_v25 = vsel %vm4541_vm0, %v1864_v11, 0.0  ;;  %v1795_v31 = vadd.f32 %v1771_v0, %v6125_v62  ;;  %v1796_v14 = vadd.f32 %v1772_v57, %v6126_v18  ;;  %v1949_v58 = vmul.f32 %v6112_v7, %v1901_v15  ;;  %vm6134_vm3 = vmmov %vm6117_vm5 }
 0x348   : > { %v2023_v9 = vadd.f32 %v6127_v5, %v1975_v52  ;;  %v1952_v33 = vmul.f32 %v6118_v63, %v1904_v25  ;;  %v1974_v36 = vadd.f32 %v1950_v43, %v1793_v17  ;;  %v2020_v51 = vadd.f32 %v6121_v24, %v1972_v10  ;;  %v1849_v53 = vpop.permute.xlu1 %1848  ;;  %v6130_v52 = vld [vmem:[#allocation67_spill] sm:$0xff]  ;;  %vm6139_vm6 = vmmov %vm6122_vm7 }
 0x349   : > { %v2043_v28 = vmax.f32 %v2019_v32, 0.0  ;;  %v1858_v0 = vsel %vm6128_vm8, %v1837_v29, %v1849_v53  ;;  %v1876_v57 = vsel %vm6129_vm9, %v1849_v53, %v1813_v38  ;;  %v1797_v11 = vadd.f32 %v1773_v21, %v6130_v52  ;;  %v6132_v29 = vld [vmem:[#allocation36_spill] sm:$0xff]  ;;  %vm6143_vm2 = vmmov %vm6134_vm3 }
 0x34a   : > { %v2047_v19 = vmax.f32 %v2023_v9, 0.0  ;;  %v1976_v39 = vadd.f32 %v1952_v33, %v1795_v31  ;;  %v1973_v55 = vadd.f32 %v1949_v58, %v1792_v26  ;;  %v1905_v7 = vsel %vm6131_vm10, %v1858_v0, 0.0  ;;  %v6133_v38 = vld [vmem:[#allocation64_spill] sm:$0xff] }
 0x34b   : > { %v1906_v17 = vsel %vm4580_vm11, %v1876_v57, 0.0  ;;  %v1953_v32 = vmul.f32 %v6118_v63, %v1905_v7  ;;  %v1242_v25 = vmul.f32 %v6105_v37, %v6132_v29  ;;  %v1372_v21 = vsel %vm6134_vm3, %v6133_v38, 0.0  ;;  %v6144_v7 = vld [vmem:[#allocation66_spill] sm:$0xff]  ;;  %v6149_v38 = vld [vmem:[#allocation141_spill] sm:$0xff] }
 0x34c   : > { %v1954_v15 = vmul.f32 %v6118_v63, %v1906_v17  ;;  %v2024_v43 = vadd.f32 %v6127_v5, %v1976_v39  ;;  %v2065_v10 = vpack.c.bf16 %v2047_v19, %v2043_v28  ;;  %v2021_v26 = vadd.f32 %v6121_v24, %v1973_v55  ;;  %v5106_v31 = vpop.permute.xlu1 %1639  ;;  %v5116_v19 = vpop.permute.xlu0 %1816  ;;  %v6145_v17 = vld [vmem:[#allocation68_spill] sm:$0xff] }
 0x34d   : > { %v2022_v62 = vadd.f32 %v6121_v24, %v1974_v36  ;;  %v1977_v18 = vadd.f32 %v1953_v32, %v1796_v14  ;;  %v2044_v33 = vmax.f32 %v2020_v51, 0.0  ;;  %v1268_v58 = vadd.f32 %v4985_v34, %v4960_v60  ;;  %v6135_v24 = vld [vmem:[#allocation53_spill] sm:$0xff]  ;;  %v6137_v34 = vld [vmem:[#allocation40_spill] sm:$0xff] }
 0x34e   : > { %v1978_v9 = vadd.f32 %v1954_v15, %v1797_v11  ;;  %v2048_v63 = vmax.f32 %v2024_v43, 0.0  ;;  %v1269_v37 = vadd.f32 %v4989_v56, %v4965_v59  ;;  %v1270_v28 = vadd.f32 %v4993_v47, %v4976_v41  ;;  %v6138_v59 = vld [vmem:[#allocation63_spill] sm:$0xff]  ;;  %v6142_v47 = vld [vmem:[#allocation74_spill] sm:$0xff] }
 0x34f   : > { %v1263_v53 = vadd.f32 %v5003_v30, %v4947_v22  ;;  %vm6136_vm15 = vcmp.le.s32.totalorder %v3431_v16, 14  ;;  %v2025_v36 = vadd.f32 %v6127_v5, %v1977_v18  ;;  %v1420_v39 = vmul.f32 %v6137_v34, %v1372_v21  ;;  %v6140_v56 = vld [vmem:[#allocation55_spill] sm:$0xff] }
 0x350   : > { %v1373_v14 = vsel %vm6136_vm15, %v6135_v24, 0.0  ;;  %v2066_v51 = vpack.c.bf16 %v2048_v63, %v2044_v33  ;;  %v2026_v60 = vadd.f32 %v6127_v5, %v1978_v9  ;;  %v1374_v41 = vsel %vm6139_vm6, %v6138_v59, 0.0  ;;  %v1652_v0 = vpop.permute.xlu1 %1651  ;;  %v6147_v43 = vld [vmem:[#allocation75_spill] sm:$0xff]  ;;  %vm6148_vm7 = vmmov %vm6136_vm15 }
 0x351   : > { %vm6141_vm13 = vcmp.le.s32.totalorder %v3448_v3, 14  ;;  %v1368_v30 = vsel %vm6143_vm2, %v6142_v47, 0.0  ;;  %v2045_v57 = vmax.f32 %v2021_v26, 0.0  ;;  %v2049_v52 = vmax.f32 %v2025_v36, 0.0  ;;  %v6150_v26 = vld [vmem:[#allocation150_spill] sm:$0xff]  ;;  %v6152_v24 = vld [vmem:[#allocation19_spill] sm:$0xff] }
 0x352   : > { %v1375_v22 = vsel %vm6141_vm13, %v6140_v56, 0.0  ;;  %2083 = vmatprep.subr.bf16.mxu0 %v2066_v51  ;;  %v2046_v11 = vmax.f32 %v2022_v62, 0.0  ;;  %v2050_v5 = vmax.f32 %v2026_v60, 0.0  ;;  %v1421_v55 = vmul.f32 %v6137_v34, %v1373_v14 }
 0x353   : > { %vm6146_vm5 = vcmp.lt.s32.totalorder %v3387_v44, 113  ;;  %v1264_v15 = vadd.f32 %v5023_v42, %v4950_v48  ;;  %v1369_v29 = vsel %vm6148_vm7, %v6147_v43, 0.0  ;;  %2084 = vmatpush1.bf16.msra.mxu0 %v2065_v10  ;;  %v1416_v21 = vmul.f32 %v6149_v38, %v1368_v30  ;;  %v1829_v42 = vpop.permute.xlu0 %1828  ;;  %v6162_v30 = vld [vmem:[#allocation59_spill] sm:$0xff] }
 0x354   : > { %v1513_v32 = vsel %vm6146_vm5, %v6145_v17, %v6144_v7  ;;  %vm6151_vm12 = vmmov %vm6146_vm5  ;;  %v2068_v18 = vpack.c.bf16 %v2050_v5, %v2046_v11  ;;  %v2067_v9 = vpack.c.bf16 %v2049_v52, %v2045_v57  ;;  %v1422_v33 = vmul.f32 %v6137_v34, %v1374_v41  ;;  %v1664_v10 = vpop.permute.xlu1 %1663  ;;  %v6164_v52 = vld [vmem:[#allocation48_spill] sm:$0xff]  ;;  %v6166_v5 = vld [vmem:[#allocation23_spill] sm:$0xff] }
 0x355   : > { %v1507_v62 = vsel %vm6151_vm12, %v6144_v7, %v6150_v26  ;;  %v1423_v63 = vmul.f32 %v6137_v34, %v1375_v22  ;;  %vm6153_vm8 = vmmov %vm6146_vm5  ;;  %v1265_v48 = vadd.f32 %v5065_v46, %v4963_v1  ;;  %v1444_v14 = vadd.f32 %v1420_v39, %v5005_v45  ;;  %v6157_v46 = vld [vmem:[#allocation25_spill] sm:$0xff]  ;;  %v6160_v22 = vld [vmem:[#allocation139_spill] sm:$0xff] }
 0x356   : > { %v1501_v16 = vsel %vm6153_vm8, %v6150_v26, %v6152_v24  ;;  %v1417_v36 = vmul.f32 %v6149_v38, %v1369_v29  ;;  %vm6154_vm9 = vmmov %vm6146_vm5  ;;  %v1266_v60 = vadd.f32 %v1242_v25, %v4979_v27  ;;  %2124 = vmatprep.subr.bf16.mxu1 %v2068_v18  ;;  %v1445_v34 = vadd.f32 %v1421_v55, %v1268_v58  ;;  %v6171_v18 = vld [vmem:[#allocation15_spill] sm:$0xff] }
 0x357   : > { %v1519_v51 = vsel %vm6154_vm9, %v6152_v24, %v6145_v17  ;;  %vm6155_vm10 = vcmp.ge.s32.totalorder %v3424_v12, 1  ;;  %v1550_v1 = vsel %vm4045_vm4, %v1507_v62, 0.0  ;;  %vm6158_vm3 = vmmov %vm6146_vm5  ;;  %2125 = vmatpush1.bf16.msra.mxu1 %v2067_v9  ;;  %v1440_v39 = vadd.f32 %v1416_v21, %v1263_v53  ;;  %v1841_v43 = vpop.permute.xlu0 %1840 }
 0x358   : > { %v1549_v59 = vsel %vm6155_vm10, %v1513_v32, 0.0  ;;  %v1514_v45 = vsel %vm6158_vm3, %v6157_v46, %v4898_v40  ;;  %vm6159_vm15 = vcmp.ge.s32.totalorder %v3421_v13, 1  ;;  %v1370_v27 = vsel %vm6139_vm6, %v6160_v22, 0.0  ;;  %vm6161_vm13 = vmmov %vm6158_vm3  ;;  %v1676_v11 = vpop.permute.xlu1 %1675 }
 0x359   : > { %v1551_v56 = vsel %vm6159_vm15, %v1501_v16, 0.0  ;;  %v1508_v25 = vsel %vm6161_vm13, %v4898_v40, %v4925_v2  ;;  %v5180_v58 = vadd.f32 %v1422_v33, %v1269_v37  ;;  %v1447_v47 = vadd.f32 %v1423_v63, %v1270_v28  ;;  %vm6167_vm7 = vmmov %vm6155_vm10 }
 0x35a   : > { %vm6163_vm2 = vnez %v6162_v30  ;;  %vm6165_vm5 = vcmp.le.s32.totalorder %v3448_v3, 14  ;;  %v1597_v55 = vmul.f32 %v6166_v5, %v1549_v59  ;;  %v1598_v7 = vmul.f32 %v6166_v5, %v1550_v1  ;;  %vm6173_vm10 = vmmov %vm6158_vm3  ;;  %v6176_v59 = vld [vmem:[#allocation65_spill] sm:$0xff]  ;;  %v6178_v1 = vld [vmem:[#allocation54_spill] sm:$0xff] }
 0x35b   : > { %v1552_v57 = vsel %vm6163_vm2, %v1519_v51, 0.0  ;;  %v1371_v53 = vsel %vm6165_vm5, %v6164_v52, 0.0  ;;  %v1441_v17 = vadd.f32 %v1417_v36, %v1264_v15  ;;  %v1553_v32 = vsel %vm6167_vm7, %v1514_v45, 0.0 }
 0x35c   : > { %v5192_v40 = vmul.f32 %v6166_v5, %v1551_v56  ;;  %v1418_v37 = vmul.f32 %v6149_v38, %v1370_v27  ;;  %v1554_v28 = vsel %vm4045_vm4, %v1508_v25, 0.0  ;;  %vm6168_vm12 = vcmp.lt.s32.totalorder %v3387_v44, 112  ;;  %vm6172_vm4 = vmmov %vm6158_vm3  ;;  %v5219_v63 = vpop.permute.xlu1 %2008  ;;  %v1853_v27 = vpop.permute.xlu0 %1852 }
 0x35d   : > { %v1689_v3 = vsel %vm6168_vm12, %v1652_v0, %v1664_v10  ;;  %v5200_v29 = vmul.f32 %v6166_v5, %v1552_v57  ;;  %v1419_v15 = vmul.f32 %v6149_v38, %v1371_v53  ;;  %v1621_v21 = vadd.f32 %v1597_v55, %v1440_v39  ;;  %vm6169_vm8 = vmmov %vm6168_vm12 }
 0x35e   : > { %v1695_v26 = vsel %vm6169_vm8, %v5106_v31, %v1652_v0  ;;  %vm6170_vm9 = vmmov %vm6169_vm8  ;;  %v1601_v9 = vmul.f32 %v6171_v18, %v1553_v32  ;;  %v1502_v33 = vsel %vm6172_vm4, %v4925_v2, %v4956_v35  ;;  %v1520_v38 = vsel %vm6173_vm10, %v4956_v35, %v6157_v46 }
 0x35f   : > { %v1694_v62 = vsel %vm6170_vm9, %v4896_v6, %v4934_v61  ;;  %v1622_v0 = vadd.f32 %v1598_v7, %v1441_v17  ;;  %vm6174_vm3 = vcmp.lt.s32.totalorder %v3387_v44, 111  ;;  %v1602_v16 = vmul.f32 %v6171_v18, %v1554_v28  ;;  %vm6175_vm15 = vmmov %vm6169_vm8 }
 0x360   : > { %v1872_v24 = vsel %vm6174_vm3, %v5116_v19, %v1829_v42  ;;  %v1731_v36 = vsel %vm4013_vm1, %v1689_v3, 0.0  ;;  %v1442_v51 = vadd.f32 %v1418_v37, %v1265_v48  ;;  %v1688_v2 = vsel %vm6175_vm15, %v4934_v61, %v4999_v8  ;;  %vm6177_vm6 = vmmov %vm6169_vm8 }
 0x361   : > { %v1778_v35 = vmul.f32 %v6176_v59, %v1695_v26  ;;  %v1701_v41 = vsel %vm6177_vm6, %v1676_v11, %v5106_v31  ;;  %v1774_v46 = vmul.f32 %v6178_v1, %v1694_v62  ;;  %vm6179_vm13 = vmmov %vm6174_vm3  ;;  %vm6180_vm5 = vcmp.ge.s32.totalorder %v3421_v13, 1  ;;  %v1815_v31 = vpop.permute.xlu1 %1814 }
 0x362   : > { %v1866_v45 = vsel %vm6179_vm13, %v1829_v42, %v1841_v43  ;;  %v1555_v39 = vsel %vm6180_vm5, %v1502_v33, 0.0  ;;  %v1556_v48 = vsel %vm6163_vm2, %v1520_v38, 0.0  ;;  %v1443_v56 = vadd.f32 %v1419_v15, %v1266_v60  ;;  %vm6182_vm12 = vmmov %vm6177_vm6 }
 0x363   : > { %v1625_v22 = vadd.f32 %v1601_v9, %v1444_v14  ;;  %vm6181_vm7 = vcmp.le.s32.totalorder %v3424_v12, 14  ;;  %v1779_v25 = vmul.f32 %v6176_v59, %v1731_v36  ;;  %v1727_v57 = vsel %vm4013_vm1, %v1688_v2, 0.0  ;;  %vm6183_vm1 = vmmov %vm6177_vm6 }
 0x364   : > { %v1911_v61 = vsel %vm6181_vm7, %v1872_v24, 0.0  ;;  %v1626_v52 = vadd.f32 %v1602_v16, %v1445_v34  ;;  %v1683_v42 = vsel %vm6182_vm12, %v1664_v10, %v1676_v11  ;;  %v1733_v30 = vsel %vm4055_vm14, %v1701_v41, 0.0  ;;  %v6184_v34 = vld [vmem:[#allocation73_spill] sm:$0xff]  ;;  %vm6185_vm2 = vmmov %vm6174_vm3 }
 0x365   : > { %v1912_v14 = vsel %vm4541_vm0, %v1866_v45, 0.0  ;;  %v1603_v60 = vmul.f32 %v6171_v18, %v1555_v39  ;;  %v1604_v53 = vmul.f32 %v6171_v18, %v1556_v48  ;;  %v1802_v5 = vadd.f32 %v1778_v35, %v1625_v22  ;;  %vm6186_vm8 = vmmov %vm6185_vm2  ;;  %v1827_v28 = vpop.permute.xlu1 %1826 }
 0x366   : > { %v1798_v55 = vadd.f32 %v1774_v46, %v1621_v21  ;;  %v1700_v49 = vsel %vm6183_vm1, %v5054_v23, %v4896_v6  ;;  %v1959_v7 = vmul.f32 %v6184_v34, %v1911_v61  ;;  %v1860_v10 = vsel %vm6185_vm2, %v1841_v43, %v1853_v27  ;;  %vm6187_vm9 = vmmov %vm6183_vm1 }
 0x367   : > { %v1878_v11 = vsel %vm6186_vm8, %v1853_v27, %v5116_v19  ;;  %v1803_v17 = vadd.f32 %v1779_v25, %v1626_v52  ;;  %v1780_v32 = vmul.f32 %v6176_v59, %v1683_v42  ;;  %v1781_v37 = vmul.f32 %v6176_v59, %v1733_v30  ;;  %vm6188_vm4 = vmmov %vm6185_vm2 }
 0x368   : > { %v1775_v3 = vmul.f32 %v6178_v1, %v1727_v57  ;;  %v1682_v6 = vsel %vm6187_vm9, %v4999_v8, %v5054_v23  ;;  %v1960_v15 = vmul.f32 %v6184_v34, %v1912_v14  ;;  %v1871_v43 = vsel %vm6188_vm4, %v1815_v31, %v1827_v28  ;;  %vm6189_vm10 = vmmov %vm6181_vm7  ;;  %v6191_v23 = vld [vmem:[#allocation76_spill] sm:$0xff] }
 0x369   : > { %v1627_v19 = vadd.f32 %v1603_v60, %v5180_v58  ;;  %v1628_v21 = vadd.f32 %v1604_v53, %v1447_v47  ;;  %v1983_v26 = vadd.f32 %v1959_v7, %v1802_v5  ;;  %v1907_v62 = vsel %vm6189_vm10, %v1871_v43, 0.0  ;;  %v1839_v47 = vpop.permute.xlu1 %1838  ;;  %vm6193_vm15 = vmmov %vm6185_vm2 }
 0x36a   : > { %v1729_v18 = vsel %vm4055_vm14, %v1700_v49, 0.0  ;;  %vm6190_vm3 = vcmp.le.s32.totalorder %v3421_v13, 14  ;;  %v1914_v8 = vsel %vm4580_vm11, %v1878_v11, 0.0  ;;  %v1955_v33 = vmul.f32 %v6191_v23, %v1907_v62  ;;  %vm6192_vm14 = vmmov %vm6185_vm2  ;;  %v2059_v13 = vld [vmem:[%s5374_s2] sm:$0xff] }
 0x36b   : > { %v1913_v9 = vsel %vm6190_vm3, %v1860_v10, 0.0  ;;  %v1804_v38 = vadd.f32 %v1780_v32, %v1627_v19  ;;  %v1805_v24 = vadd.f32 %v1781_v37, %v1628_v21  ;;  %v1984_v16 = vadd.f32 %v1960_v15, %v1803_v17  ;;  %vm6195_vm6 = vmmov %vm6190_vm3  ;;  %v2375_v15 = vld [vmem:[%s2575_s18] sm:$0xff]  ;;  %v2376_v19 = vld [vmem:[%s2575_s18 + $0x8] sm:$0xff] }
 0x36c   : > { %v2031_v58 = vadd.f32 %v5219_v63, %v1983_v26  ;;  %v1623_v12 = vadd.f32 %v5192_v40, %v1442_v51  ;;  %v1776_v36 = vmul.f32 %v6178_v1, %v1682_v6  ;;  %v1979_v54 = vadd.f32 %v1955_v33, %v1798_v55 }
 0x36d   : > { %v1865_v2 = vsel %vm6192_vm14, %v1827_v28, %v1839_v47  ;;  %v1777_v59 = vmul.f32 %v6178_v1, %v1729_v18  ;;  %v1961_v35 = vmul.f32 %v6184_v34, %v1913_v9  ;;  %v1962_v41 = vmul.f32 %v6184_v34, %v1914_v8  ;;  %v1851_v1 = vpop.permute.xlu1 %1850 }
 0x36e   : > { %v1908_v46 = vsel %vm4541_vm0, %v1865_v2, 0.0  ;;  %v1799_v45 = vadd.f32 %v1775_v3, %v1622_v0  ;;  %v1624_v39 = vadd.f32 %v5200_v29, %v1443_v56  ;;  %v2027_v40 = vadd.f32 %v5085_v20, %v1979_v54  ;;  %vm6194_vm0 = vmmov %vm6185_vm2 }
 0x36f   : > { %v1956_v51 = vmul.f32 %v6191_v23, %v1908_v46  ;;  %v1985_v48 = vadd.f32 %v1961_v35, %v1804_v38  ;;  %v1986_v22 = vadd.f32 %v1962_v41, %v1805_v24  ;;  %v2032_v61 = vadd.f32 %v5219_v63, %v1984_v16  ;;  %v2378_v16 = vld [vmem:[%s2575_s18 + $0x18] sm:$0xff] }
 0x370   : > { %v2055_v27 = vmax.f32 %v2031_v58, 0.0  ;;  %v2051_v25 = vmax.f32 %v2027_v40, 0.0  ;;  %v1859_v52 = vsel %vm6193_vm15, %v1839_v47, %v1851_v1  ;;  %v1877_v4 = vsel %vm6194_vm0, %v1851_v1, %v1815_v31 }
 0x371   : > { %v1980_v57 = vadd.f32 %v1956_v51, %v1799_v45  ;;  %v1800_v0 = vadd.f32 %v1776_v36, %v1623_v12  ;;  %v1801_v29 = vadd.f32 %v1777_v59, %v1624_v39  ;;  %v1909_v56 = vsel %vm6195_vm6, %v1859_v52, 0.0 }
 0x372   : > { %v1910_v42 = vsel %vm4580_vm11, %v1877_v4, 0.0  ;;  %v1957_v30 = vmul.f32 %v6191_v23, %v1909_v56  ;;  %v2069_v53 = vpack.c.bf16 %v2055_v27, %v2051_v25  ;;  %v2033_v5 = vadd.f32 %v5219_v63, %v1985_v48 }
 0x373   : > { %v1958_v14 = vmul.f32 %v6191_v23, %v1910_v42  ;;  %v2028_v60 = vadd.f32 %v5085_v20, %v1980_v57  ;;  %v2056_v55 = vmax.f32 %v2032_v61, 0.0  ;;  %v2034_v44 = vadd.f32 %v5219_v63, %v1986_v22  ;;  %v2377_v23 = vld [vmem:[%s2575_s18 + $0x10] sm:$0xff] }
 0x374   : > { %v1981_v31 = vadd.f32 %v1957_v30, %v1800_v0  ;;  %v2060_v11 = vpack.c.bf16 %v2059_v13, %v2059_v13  ;;  %v2057_v17 = vmax.f32 %v2033_v5, 0.0  ;;  %vm2077_vm11 = vcmask 392192  }
 0x375   : > { %v1982_v49 = vadd.f32 %v1958_v14, %v1801_v29  ;;  %v2052_v34 = vmax.f32 %v2028_v60, 0.0  ;;  %v2058_v63 = vmax.f32 %v2034_v44, 0.0 }
 0x376   : > { %v2029_v50 = vadd.f32 %v5085_v20, %v1981_v31 }
 0x377   : > { %v2070_v7 = vpack.c.bf16 %v2056_v55, %v2052_v34  ;;  %v2030_v10 = vadd.f32 %v5085_v20, %v1982_v49  ;;  %v2164_v20 = vstv %s2163_s6 }
 0x378   : > { %v2053_v32 = vmax.f32 %v2029_v50, 0.0  ;;  %v2165_v43 = vmul.f32 %v2375_v15, %v2164_v20  ;;  %v2166_v21 = vmul.f32 %v2376_v19, %v2164_v20  ;;  %v2167_v33 = vmul.f32 %v2377_v23, %v2164_v20 }
 0x379   : > { %2085 = vmatprep.subr.bf16.mxu0 %v2070_v7  ;;  %v2054_v37 = vmax.f32 %v2030_v10, 0.0  ;;  %v2168_v58 = vmul.f32 %v2378_v16, %v2164_v20 }
 0x37a   : > { %2086 = vmatpush1.bf16.msra.mxu0 %v2069_v53  ;;  %v2071_v3 = vpack.c.bf16 %v2057_v17, %v2053_v32 }
 0x37b   : > { %v2072_v28 = vpack.c.bf16 %v2058_v63, %v2054_v37 }
 0x37d   : > { %2126 = vmatprep.subr.bf16.mxu1 %v2072_v28  ;;  %2270 = vmatmul.mubr.msk.bf16.vlgmr.msra.gmra.mrb[12].mxu0 %vm2077_vm11, %v2060_v11 }
 0x37e   : > { %2127 = vmatpush1.bf16.msra.mxu1 %v2071_v3 }
 0x380   : > { %v2075_v6 = vpop.permute.xlu1 %2074 }
 0x381   : > { %2271 = vmatmul.mubr.msk.bf16.vlgmr.msra.gmra.mrb[12].mxu1 %vm2077_vm11, %v2060_v11 }
 0x450   : > { %v2115_v26 = vpop.f32.mrb[12].mxu0 }
 0x451   : > { %v2117_v62 = vpop.f32.mrb[13].mxu0  ;;  %v2116_v18 = vadd.f32 %v2115_v26, %v2075_v6 }
 0x452   : > { %v2119_v9 = vpop.f32.mrb[14].mxu0  ;;  %v2118_v8 = vadd.f32 %v2117_v62, %v2075_v6 }
 0x453   : > { %v2169_v38 = vadd.f32 %v2165_v43, %v2116_v18  ;;  %v2120_v24 = vpop.f32.mrb[15].mxu0 }
 0x454   : > { %v2156_v47 = vpop.f32.mrb[12].mxu1  ;;  %v2170_v12 = vadd.f32 %v2166_v21, %v2118_v8 }
 0x455   : > { %v2158_v36 = vpop.f32.mrb[13].mxu1  ;;  %v2157_v54 = vadd.f32 %v2156_v47, %v2075_v6  ;;  %v2173_v2 = vmax.f32 %v2169_v38, 0.0 }
 0x456   : > { %v2160_v59 = vpop.f32.mrb[14].mxu1  ;;  %v2159_v35 = vadd.f32 %v2158_v36, %v2075_v6  ;;  %v2174_v41 = vmax.f32 %v2170_v12, 0.0 }
 0x457   : > { %v2171_v46 = vadd.f32 %v2167_v33, %v2157_v54  ;;  %2177 = vst [vmem:[%s219_s9] sm:$0xff] %v2173_v2  ;;  %v2161_v45 = vpop.f32.mrb[15].mxu1 }
 0x458   : > { %v2172_v39 = vadd.f32 %v2168_v58, %v2159_v35  ;;  %2178 = vst [vmem:[%s219_s9 + $0x8] sm:$0xff] %v2174_v41 }
 0x459   : > { %v2175_v40 = vmax.f32 %v2171_v46, 0.0 }
 0x45a   : > { %v2176_v51 = vmax.f32 %v2172_v39, 0.0 }
 0x45b   : > { %2179 = vst [vmem:[%s219_s9 + $0x10] sm:$0xff] %v2175_v40 }
 0x45c   : > { %2180 = vst [vmem:[%s219_s9 + $0x18] sm:$0xff] %v2176_v51 }
 0x45d   : > { %2392 = shalt.err (!%p2389_p3)
}
 0x45e   : > { %s2393_s19 = scalar_lea.hbm %s5328_s13, 512  ;;  %s2397_s27 = scalar_lea.hbm %s5377_s5, 1024 }
 0x45f   : > { %p2394_p4 = scmp.ne.s32.totalorder %s5328_s13, %s2393_s19  ;;  %p2398_p9 = scmp.lt.u32.totalorder %s5328_s13, %s5377_s5 }
 0x460   : > { %p2399_p10 = scmp.lt.u32.totalorder %s2397_s27, %s2393_s19  ;;  %p2401_p12 = scmp.lt.u32.totalorder %s2393_s19, %s5328_s13 }
 0x461   : > { %p2395_p7 = pnand %p2394_p4, %p2535_p5 }
 0x462   : > { %p2400_p11 = por %p2399_p10, %p2398_p9 }
 0x463   : > { %p2396_p8 = pneg %p2395_p7 }
 0x464   : > { %p2402_p13 = por %p2401_p12, %p2400_p11 }
 0x466   : > { %p2403_p0 = pnand %p2402_p13, %p2396_p8 }
 0x468   : > { %2406 = shalt.err (!%p2403_p0)
}
 0x469   : > { %2278 = dma.vmem_to_hbm [thread:$0]  (%p2535_p5), %s5330_s11, 512, %s5328_s13, %s2182_s14  }
 0x46a PF: > { %p2284_p1 = scmp.ge.s32.totalorder %s2441_s23, 2  ;;  %s2208_s8 = sand.u32 1, %s2429_s20  }
 0x46b   : > { %s2209_s9 = scalar_lea.sflag [#allocation4], %s2208_s8 }
 0x46c   : > { %p2281_p2 = pnand %p2284_p1, %p2539_p6 }
 0x46e   : > { %2424 = dma.done.wait (!%p2281_p2), %s2209_s9, 512  }
 0x46f   : > { %2426 = vsyncadd (!%p2281_p2), %s2209_s9, 4294966784  ;;  %p16_p3 = scmp.ge.s32.totalorder %s2522_s25, 4   ;;  %s6196_s20 = smov %s2433_s21 }
 0x470   : > { %s6197_s21 = smov %s2437_s22  ;;  %s6198_s22 = smov %s2533_s28 }
 0x471   : > { %s6199_s23 = smov %s2522_s25  ;;  %18 = sbr.rel (!%p16_p3) target bundleno = 5 (0x5), region = 75 }
 0x478   :  { %2214 = vsyncpa [#allocation4], 1 }
 0x479   :  { %2216 = vsyncpa [#allocation4 + $0x1], 1 }

</bundles_post_ra>
